<compile_context>
chip_gen: v7x
topology: tpu7x:2x2x1
jax: 0.10.0
libtpu: 0.0.40
codegen_flags: <defaults>
</compile_context>

<pallas_src>
import jax
import jax.numpy as jnp
from jax.experimental import pallas as pl
from jax.experimental.pallas import tpu as pltpu


# ----------------------------------------------------------------------------
# Fused kernel: a2S chain + S2a step on one [C, tile_L] slab.
# ----------------------------------------------------------------------------
def _fused_kernel(
    alpha_ref, y_ref,            # [1, bands, tl] f32, [1, M, tl] f32
    w_in_ref, b_in_ref,          # [64, bands] bf16, [64, 1] f32
    w1_ref, b1_ref,              # 64 -> 128
    w2_ref, b2_ref,              # 128 -> 256
    w3_ref, b3_ref,              # 256 -> 128
    w4a_ref, w4b_ref, b4_ref,    # 256 -> 64, split into two [64, 128] halves
    w5a_ref, w5b_ref, b5_ref,    # 128 -> 64, split into two [64, 64] halves
    w_out_ref, b_out_ref,        # 64 -> bands
    wm_mu_ref, wmdbt_ref,        # [bands, bands] (= mu*Wm), [bands, M] (= Wm@Db^T)
    s_out_ref, a_out_ref,        # [1, bands, tl] f32 each
):
    bf16 = jnp.bfloat16

    def dot(w_ref, x):
        # bf16 x bf16 -> f32 accumulation on the MXU.
        return jnp.dot(w_ref[...], x, preferred_element_type=jnp.float32)

    def conv(w_ref, x, b_ref):
        # bias-add + ReLU in f32, cast back to bf16 for the next matmul.
        return jnp.maximum(dot(w_ref, x) + b_ref[...], 0.0).astype(bf16)

    alpha = alpha_ref[0].astype(bf16)     # [bands, tl]
    y = y_ref[0].astype(bf16)             # [M, tl]

    # ---- Net_a2S ----
    x_64 = conv(w_in_ref, alpha, b_in_ref)
    x_128 = conv(w1_ref, x_64, b1_ref)
    x_256 = conv(w2_ref, x_128, b2_ref)
    xl_128 = conv(w3_ref, x_256, b3_ref)
    # conv_256_64(cat(x_128, xl_128))  -> split-weight matmuls (no concat)
    yl_64 = jnp.maximum(
        dot(w4a_ref, x_128) + dot(w4b_ref, xl_128) + b4_ref[...], 0.0).astype(bf16)
    # conv_128_64(cat(x_64, yl_64))    -> split-weight matmuls (no concat)
    y_64 = jnp.maximum(
        dot(w5a_ref, x_64) + dot(w5b_ref, yl_64) + b5_ref[...], 0.0).astype(bf16)
    s_f32 = jnp.maximum(dot(w_out_ref, y_64) + b_out_ref[...], 0.0)
    s_out_ref[0] = s_f32

    # ---- Net_S2a ----  relu((mu*Wm)@S + (Wm@Db^T)@Y), mu folded outside.
    a = dot(wm_mu_ref, s_f32.astype(bf16)) + dot(wmdbt_ref, y)
    a_out_ref[0] = jnp.maximum(a, 0.0)


# ----------------------------------------------------------------------------
# Tiling helpers.
# ----------------------------------------------------------------------------
def _round_up(x, m):
    return ((x + m - 1) // m) * m


def _vmem_capacity_bytes():
    try:
        return int(pltpu.get_tpu_info().vmem_capacity_bytes)
    except Exception:
        return 128 << 20   # v5e/v6e physical VMEM; conservative default


def _pick_tile_and_pad(l, cap):
    """Return (tl, l_pad): tl is a 128-multiple <= cap that divides l_pad >= l."""
    l128 = _round_up(l, 128)
    max_mult = max(1, min(cap, l128) // 128)
    best = 128
    for m in range(max_mult, 0, -1):
        if l128 % (m * 128) == 0:
            best = m * 128
            break
    if best >= (min(cap, l128) // 2) or best >= 1024:
        return best, l128
    # Divisor-based tile degenerated (e.g. prime L/128): pad further up to a
    # big tile instead of silently running tiny 128-wide tiles.
    tl = min(cap, l128)
    return tl, _round_up(l, tl)


# ----------------------------------------------------------------------------
# Forward pass (== Net_test_main.forward): returns (alpha_new, S), both NCL f32.
# ----------------------------------------------------------------------------
def fused_forward(params, alpha, Y, Db):
    n, bands, l = alpha.shape
    m = Y.shape[1]

    # ---- chip-aware tile selection ----
    vmem_cap = _vmem_capacity_bytes()
    small_vmem = vmem_cap <= (64 << 20)        # v7x-style budget
    cap = 2048 if small_vmem else 8192
    tl, l_pad = _pick_tile_and_pad(l, cap)
    if small_vmem:
        # keep >= 2 grid steps so both v7x TensorCores get work
        while n * (l_pad // tl) < 2 and tl >= 256:
            tl //= 2
    n_l_tiles = l_pad // tl
    vmem_limit = int(vmem_cap * 3 // 4)

    # ---- pad L to a multiple of the tile (zeros; sliced off afterwards) ----
    if l_pad != l:
        pad = l_pad - l
        alpha_in = jnp.pad(alpha, ((0, 0), (0, 0), (0, pad)))
        y_in = jnp.pad(Y, ((0, 0), (0, 0), (0, pad)))
    else:
        alpha_in, y_in = alpha, Y

    # ---- weight preparation (all folds done once, outside the kernel) ----
    w_in, b_in = params["conv_in"]
    w1, b1 = params["conv_64_128"]
    w2, b2 = params["conv_128_256"]
    w3, b3 = params["conv_256_128"]
    w4, b4 = params["conv_256_64"]
    w5, b5 = params["conv_128_64"]
    w_out, b_out = params["conv_out"]
    wm = params["myweight"]
    mu = params["mu"][0]

    w4a, w4b = w4[:, :128], w4[:, 128:]            # split the concat-layer weights
    w5a, w5b = w5[:, :64], w5[:, 64:]
    wm_mu = mu * wm                                # fold mu into Wm (f32)
    wmdbt = wm @ jnp.transpose(Db, (1, 0))         # Wm @ Db^T  [bands, M] (f32)

    def c16(w):
        return w.astype(jnp.bfloat16)

    # bf16 matmul weights; biases stay f32 (added to the f32 accumulator).
    weights = (c16(w_in), b_in, c16(w1), b1, c16(w2), b2, c16(w3), b3,
               c16(w4a), c16(w4b), b4, c16(w5a), c16(w5b), b5,
               c16(w_out), b_out, c16(wm_mu), c16(wmdbt))
    weight_specs = [pl.BlockSpec(w.shape, lambda b_, i_: (0, 0)) for w in weights]

    # Advisory cost estimate for XLA scheduling.
    contraction = (bands * 64 + 64 * 128 + 128 * 256 + 256 * 128 + 256 * 64
                   + 128 * 64 + 64 * bands + bands * bands + bands * m)
    flops = 2 * n * l_pad * contraction
    weight_bytes = sum(int(w.size) * w.dtype.itemsize for w in weights)
    bytes_accessed = 4 * (n * bands * l_pad + n * m * l_pad
                          + 2 * n * bands * l_pad) + weight_bytes

    stream_spec_in = pl.BlockSpec((1, bands, tl), lambda b, i: (b, 0, i))
    y_spec = pl.BlockSpec((1, m, tl), lambda b, i: (b, 0, i))
    out_spec = pl.BlockSpec((1, bands, tl), lambda b, i: (b, 0, i))

    s, a_new = pl.pallas_call(
        _fused_kernel,
        out_shape=(
            jax.ShapeDtypeStruct((n, bands, l_pad), jnp.float32),   # S
            jax.ShapeDtypeStruct((n, bands, l_pad), jnp.float32),   # alpha_new
        ),
        grid_spec=pltpu.PrefetchScalarGridSpec(
            num_scalar_prefetch=0,
            grid=(n, n_l_tiles),
            in_specs=[stream_spec_in, y_spec] + weight_specs,
            out_specs=[out_spec, out_spec],
        ),
        compiler_params=pltpu.CompilerParams(
            dimension_semantics=("parallel", "parallel"),
            vmem_limit_bytes=vmem_limit),
        cost_estimate=pl.CostEstimate(
            flops=flops, transcendentals=0, bytes_accessed=bytes_accessed),
    )(alpha_in, y_in, *weights)

    if l_pad != l:
        s = s[:, :, :l]
        a_new = a_new[:, :, :l]
    return a_new, s


# ----------------------------------------------------------------------------
# Deterministic parameter initialization (synthetic, same shapes as the module).
# ----------------------------------------------------------------------------
def init_params(bands, key):
    keys = jax.random.split(key, 20)
    ki = iter(range(20))

    def conv_params(cin, cout):
        w = 0.05 * jax.random.normal(keys[next(ki)], (cout, cin), jnp.float32)
        b = 0.01 * jax.random.normal(keys[next(ki)], (cout, 1), jnp.float32)
        return w, b

    return {
        "conv_in": conv_params(bands, 64),
        "conv_64_128": conv_params(64, 128),
        "conv_128_256": conv_params(128, 256),
        "conv_256_128": conv_params(256, 128),
        "conv_256_64": conv_params(256, 64),
        "conv_128_64": conv_params(128, 64),
        "conv_out": conv_params(64, bands),
        "mu": jnp.ones((1,), jnp.float32),
        "myweight": 0.05 * jax.random.normal(keys[next(ki)], (bands, bands), jnp.float32),
    }


# ----------------------------------------------------------------------------
# Pure-JAX f32 reference (literal transcription of the PyTorch forward).
# ----------------------------------------------------------------------------
def reference_forward(params, alpha, Y, Db):
    def conv(x, wb):  # x: [N, C, L]
        w, b = wb
        return jnp.maximum(jnp.einsum("oc,ncl->nol", w, x) + b[None], 0.0)

    x_64 = conv(alpha, params["conv_in"])
    x_128 = conv(x_64, params["conv_64_128"])
    x_256 = conv(x_128, params["conv_128_256"])
    xl_128 = conv(x_256, params["conv_256_128"])
    yl_64 = conv(jnp.concatenate((x_128, xl_128), axis=1), params["conv_256_64"])
    y_64 = conv(jnp.concatenate((x_64, yl_64), axis=1), params["conv_128_64"])
    s = conv(y_64, params["conv_out"])

    dbt = jnp.transpose(Db, (1, 0))                       # [bands, M]
    temp = params["mu"][0] * s + jnp.einsum("bm,nml->nbl", dbt, Y)
    a = jnp.maximum(jnp.einsum("ob,nbl->nol", params["myweight"], temp), 0.0)
    return a, s


if __name__ == "__main__":
    # L=200 deliberately not a multiple of 128 to exercise the pad-and-slice path.
    bands, N, L, M = 8, 2, 200, 16

    key = jax.random.PRNGKey(0)
    k_alpha, k_y, k_db, k_params = jax.random.split(key, 4)

    alpha = jax.random.normal(k_alpha, (N, bands, L), jnp.float32)
    Y = jax.random.normal(k_y, (N, M, L), jnp.float32)
    Db = jax.random.normal(k_db, (M, bands), jnp.float32)
    params = init_params(bands, k_params)

    fwd = jax.jit(fused_forward)
    alpha_new, S = fwd(params, alpha, Y, Db)
    jax.block_until_ready((alpha_new, S))

    ref_alpha_new, ref_S = reference_forward(params, alpha, Y, Db)
    assert alpha_new.shape == (N, bands, L) and S.shape == (N, bands, L)
    # bf16 matmul chain vs f32 reference -> loosened tolerance.
    assert jnp.allclose(S, ref_S, atol=1e-2, rtol=5e-2)
    assert jnp.allclose(alpha_new, ref_alpha_new, atol=1e-2, rtol=5e-2)

    print("KERNEL_OK")
</pallas_src>

<mosaic_0001>
module attributes {stable_mosaic.version = 11 : i64} {
  func.func @_fused_kernel(%arg0: i32, %arg1: i32, %arg2: memref<1x8x256xf32, #tpu.memory_space<vmem>>, %arg3: memref<1x16x256xf32, #tpu.memory_space<vmem>>, %arg4: memref<64x8xbf16, #tpu.memory_space<vmem>>, %arg5: memref<64x1xf32, #tpu.memory_space<vmem>>, %arg6: memref<128x64xbf16, #tpu.memory_space<vmem>>, %arg7: memref<128x1xf32, #tpu.memory_space<vmem>>, %arg8: memref<256x128xbf16, #tpu.memory_space<vmem>>, %arg9: memref<256x1xf32, #tpu.memory_space<vmem>>, %arg10: memref<128x256xbf16, #tpu.memory_space<vmem>>, %arg11: memref<128x1xf32, #tpu.memory_space<vmem>>, %arg12: memref<64x128xbf16, #tpu.memory_space<vmem>>, %arg13: memref<64x128xbf16, #tpu.memory_space<vmem>>, %arg14: memref<64x1xf32, #tpu.memory_space<vmem>>, %arg15: memref<64x64xbf16, #tpu.memory_space<vmem>>, %arg16: memref<64x64xbf16, #tpu.memory_space<vmem>>, %arg17: memref<64x1xf32, #tpu.memory_space<vmem>>, %arg18: memref<8x64xbf16, #tpu.memory_space<vmem>>, %arg19: memref<8x1xf32, #tpu.memory_space<vmem>>, %arg20: memref<8x8xbf16, #tpu.memory_space<vmem>>, %arg21: memref<8x16xbf16, #tpu.memory_space<vmem>>, %arg22: memref<1x8x256xf32, #tpu.memory_space<vmem>>, %arg23: memref<1x8x256xf32, #tpu.memory_space<vmem>>) attributes {dimension_semantics = [#tpu.dimension_semantics<parallel>, #tpu.dimension_semantics<parallel>], iteration_bounds = array<i64: 2, 1>, scalar_prefetch = 0 : i64, scratch_operands = 0 : i64, tpu.core_type = #tpu.core_type<tc>, window_params = [{transform_indices = @transform_0, window_bounds = array<i64: 1, 8, 256>}, {transform_indices = @transform_1, window_bounds = array<i64: 1, 16, 256>}, {pipeline_mode = #tpu.pipeline_mode<synchronous>, transform_indices = @transform_2, window_bounds = array<i64: 64, 8>}, {pipeline_mode = #tpu.pipeline_mode<synchronous>, transform_indices = @transform_3, window_bounds = array<i64: 64, 1>}, {pipeline_mode = #tpu.pipeline_mode<synchronous>, transform_indices = @transform_4, window_bounds = array<i64: 128, 64>}, {pipeline_mode = #tpu.pipeline_mode<synchronous>, transform_indices = @transform_5, window_bounds = array<i64: 128, 1>}, {pipeline_mode = #tpu.pipeline_mode<synchronous>, transform_indices = @transform_6, window_bounds = array<i64: 256, 128>}, {pipeline_mode = #tpu.pipeline_mode<synchronous>, transform_indices = @transform_7, window_bounds = array<i64: 256, 1>}, {pipeline_mode = #tpu.pipeline_mode<synchronous>, transform_indices = @transform_8, window_bounds = array<i64: 128, 256>}, {pipeline_mode = #tpu.pipeline_mode<synchronous>, transform_indices = @transform_9, window_bounds = array<i64: 128, 1>}, {pipeline_mode = #tpu.pipeline_mode<synchronous>, transform_indices = @transform_10, window_bounds = array<i64: 64, 128>}, {pipeline_mode = #tpu.pipeline_mode<synchronous>, transform_indices = @transform_11, window_bounds = array<i64: 64, 128>}, {pipeline_mode = #tpu.pipeline_mode<synchronous>, transform_indices = @transform_12, window_bounds = array<i64: 64, 1>}, {pipeline_mode = #tpu.pipeline_mode<synchronous>, transform_indices = @transform_13, window_bounds = array<i64: 64, 64>}, {pipeline_mode = #tpu.pipeline_mode<synchronous>, transform_indices = @transform_14, window_bounds = array<i64: 64, 64>}, {pipeline_mode = #tpu.pipeline_mode<synchronous>, transform_indices = @transform_15, window_bounds = array<i64: 64, 1>}, {pipeline_mode = #tpu.pipeline_mode<synchronous>, transform_indices = @transform_16, window_bounds = array<i64: 8, 64>}, {pipeline_mode = #tpu.pipeline_mode<synchronous>, transform_indices = @transform_17, window_bounds = array<i64: 8, 1>}, {pipeline_mode = #tpu.pipeline_mode<synchronous>, transform_indices = @transform_18, window_bounds = array<i64: 8, 8>}, {pipeline_mode = #tpu.pipeline_mode<synchronous>, transform_indices = @transform_19, window_bounds = array<i64: 8, 16>}, {transform_indices = @transform_20, window_bounds = array<i64: 1, 8, 256>}, {transform_indices = @transform_21, window_bounds = array<i64: 1, 8, 256>}]} {
    %c0 = arith.constant 0 : index
    %c0_0 = arith.constant 0 : index
    %c0_1 = arith.constant 0 : index
    %0 = vector.load %arg2[%c0, %c0_0, %c0_1] : memref<1x8x256xf32, #tpu.memory_space<vmem>>, vector<1x8x256xf32>
    %1 = vector.shape_cast %0 : vector<1x8x256xf32> to vector<8x256xf32>
    %2 = arith.truncf %1 : vector<8x256xf32> to vector<8x256xbf16>
    %c0_2 = arith.constant 0 : index
    %c0_3 = arith.constant 0 : index
    %c0_4 = arith.constant 0 : index
    %3 = vector.load %arg3[%c0_2, %c0_3, %c0_4] : memref<1x16x256xf32, #tpu.memory_space<vmem>>, vector<1x16x256xf32>
    %4 = vector.shape_cast %3 : vector<1x16x256xf32> to vector<16x256xf32>
    %5 = arith.truncf %4 : vector<16x256xf32> to vector<16x256xbf16>
    %c0_5 = arith.constant 0 : index
    %c0_6 = arith.constant 0 : index
    %6 = vector.load %arg4[%c0_5, %c0_6] : memref<64x8xbf16, #tpu.memory_space<vmem>>, vector<64x8xbf16>
    %cst = arith.constant dense<0.000000e+00> : vector<64x256xf32>
    %7 = tpu.matmul %6, %2, %cst {dimension_numbers = #tpu.dot_dimension_numbers<[1], [0], [0], [1], [0, 0, 1, 1], [], []>} : vector<64x8xbf16>, vector<8x256xbf16>, vector<64x256xf32> -> vector<64x256xf32>
    %c0_7 = arith.constant 0 : index
    %c0_8 = arith.constant 0 : index
    %8 = vector.load %arg5[%c0_7, %c0_8] : memref<64x1xf32, #tpu.memory_space<vmem>>, vector<64x1xf32>
    %9 = vector.broadcast %8 : vector<64x1xf32> to vector<64x256xf32>
    %10 = arith.addf %7, %9 : vector<64x256xf32>
    %cst_9 = arith.constant 0.000000e+00 : f32
    %11 = vector.broadcast %cst_9 : f32 to vector<64x256xf32>
    %12 = arith.maximumf %10, %11 : vector<64x256xf32>
    %13 = arith.truncf %12 : vector<64x256xf32> to vector<64x256xbf16>
    %c0_10 = arith.constant 0 : index
    %c0_11 = arith.constant 0 : index
    %14 = vector.load %arg6[%c0_10, %c0_11] : memref<128x64xbf16, #tpu.memory_space<vmem>>, vector<128x64xbf16>
    %cst_12 = arith.constant dense<0.000000e+00> : vector<128x256xf32>
    %15 = tpu.matmul %14, %13, %cst_12 {dimension_numbers = #tpu.dot_dimension_numbers<[1], [0], [0], [1], [0, 0, 1, 1], [], []>} : vector<128x64xbf16>, vector<64x256xbf16>, vector<128x256xf32> -> vector<128x256xf32>
    %c0_13 = arith.constant 0 : index
    %c0_14 = arith.constant 0 : index
    %16 = vector.load %arg7[%c0_13, %c0_14] : memref<128x1xf32, #tpu.memory_space<vmem>>, vector<128x1xf32>
    %17 = vector.broadcast %16 : vector<128x1xf32> to vector<128x256xf32>
    %18 = arith.addf %15, %17 : vector<128x256xf32>
    %cst_15 = arith.constant 0.000000e+00 : f32
    %19 = vector.broadcast %cst_15 : f32 to vector<128x256xf32>
    %20 = arith.maximumf %18, %19 : vector<128x256xf32>
    %21 = arith.truncf %20 : vector<128x256xf32> to vector<128x256xbf16>
    %c0_16 = arith.constant 0 : index
    %c0_17 = arith.constant 0 : index
    %22 = vector.load %arg8[%c0_16, %c0_17] : memref<256x128xbf16, #tpu.memory_space<vmem>>, vector<256x128xbf16>
    %cst_18 = arith.constant dense<0.000000e+00> : vector<256x256xf32>
    %23 = tpu.matmul %22, %21, %cst_18 {dimension_numbers = #tpu.dot_dimension_numbers<[1], [0], [0], [1], [0, 0, 1, 1], [], []>} : vector<256x128xbf16>, vector<128x256xbf16>, vector<256x256xf32> -> vector<256x256xf32>
    %c0_19 = arith.constant 0 : index
    %c0_20 = arith.constant 0 : index
    %24 = vector.load %arg9[%c0_19, %c0_20] : memref<256x1xf32, #tpu.memory_space<vmem>>, vector<256x1xf32>
    %25 = vector.broadcast %24 : vector<256x1xf32> to vector<256x256xf32>
    %26 = arith.addf %23, %25 : vector<256x256xf32>
    %cst_21 = arith.constant 0.000000e+00 : f32
    %27 = vector.broadcast %cst_21 : f32 to vector<256x256xf32>
    %28 = arith.maximumf %26, %27 : vector<256x256xf32>
    %29 = arith.truncf %28 : vector<256x256xf32> to vector<256x256xbf16>
    %c0_22 = arith.constant 0 : index
    %c0_23 = arith.constant 0 : index
    %30 = vector.load %arg10[%c0_22, %c0_23] : memref<128x256xbf16, #tpu.memory_space<vmem>>, vector<128x256xbf16>
    %cst_24 = arith.constant dense<0.000000e+00> : vector<128x256xf32>
    %31 = tpu.matmul %30, %29, %cst_24 {dimension_numbers = #tpu.dot_dimension_numbers<[1], [0], [0], [1], [0, 0, 1, 1], [], []>} : vector<128x256xbf16>, vector<256x256xbf16>, vector<128x256xf32> -> vector<128x256xf32>
    %c0_25 = arith.constant 0 : index
    %c0_26 = arith.constant 0 : index
    %32 = vector.load %arg11[%c0_25, %c0_26] : memref<128x1xf32, #tpu.memory_space<vmem>>, vector<128x1xf32>
    %33 = vector.broadcast %32 : vector<128x1xf32> to vector<128x256xf32>
    %34 = arith.addf %31, %33 : vector<128x256xf32>
    %cst_27 = arith.constant 0.000000e+00 : f32
    %35 = vector.broadcast %cst_27 : f32 to vector<128x256xf32>
    %36 = arith.maximumf %34, %35 : vector<128x256xf32>
    %37 = arith.truncf %36 : vector<128x256xf32> to vector<128x256xbf16>
    %c0_28 = arith.constant 0 : index
    %c0_29 = arith.constant 0 : index
    %38 = vector.load %arg12[%c0_28, %c0_29] : memref<64x128xbf16, #tpu.memory_space<vmem>>, vector<64x128xbf16>
    %cst_30 = arith.constant dense<0.000000e+00> : vector<64x256xf32>
    %39 = tpu.matmul %38, %21, %cst_30 {dimension_numbers = #tpu.dot_dimension_numbers<[1], [0], [0], [1], [0, 0, 1, 1], [], []>} : vector<64x128xbf16>, vector<128x256xbf16>, vector<64x256xf32> -> vector<64x256xf32>
    %c0_31 = arith.constant 0 : index
    %c0_32 = arith.constant 0 : index
    %40 = vector.load %arg13[%c0_31, %c0_32] : memref<64x128xbf16, #tpu.memory_space<vmem>>, vector<64x128xbf16>
    %cst_33 = arith.constant dense<0.000000e+00> : vector<64x256xf32>
    %41 = tpu.matmul %40, %37, %cst_33 {dimension_numbers = #tpu.dot_dimension_numbers<[1], [0], [0], [1], [0, 0, 1, 1], [], []>} : vector<64x128xbf16>, vector<128x256xbf16>, vector<64x256xf32> -> vector<64x256xf32>
    %42 = arith.addf %39, %41 : vector<64x256xf32>
    %c0_34 = arith.constant 0 : index
    %c0_35 = arith.constant 0 : index
    %43 = vector.load %arg14[%c0_34, %c0_35] : memref<64x1xf32, #tpu.memory_space<vmem>>, vector<64x1xf32>
    %44 = vector.broadcast %43 : vector<64x1xf32> to vector<64x256xf32>
    %45 = arith.addf %42, %44 : vector<64x256xf32>
    %cst_36 = arith.constant 0.000000e+00 : f32
    %46 = vector.broadcast %cst_36 : f32 to vector<64x256xf32>
    %47 = arith.maximumf %45, %46 : vector<64x256xf32>
    %48 = arith.truncf %47 : vector<64x256xf32> to vector<64x256xbf16>
    %c0_37 = arith.constant 0 : index
    %c0_38 = arith.constant 0 : index
    %49 = vector.load %arg15[%c0_37, %c0_38] : memref<64x64xbf16, #tpu.memory_space<vmem>>, vector<64x64xbf16>
    %cst_39 = arith.constant dense<0.000000e+00> : vector<64x256xf32>
    %50 = tpu.matmul %49, %13, %cst_39 {dimension_numbers = #tpu.dot_dimension_numbers<[1], [0], [0], [1], [0, 0, 1, 1], [], []>} : vector<64x64xbf16>, vector<64x256xbf16>, vector<64x256xf32> -> vector<64x256xf32>
    %c0_40 = arith.constant 0 : index
    %c0_41 = arith.constant 0 : index
    %51 = vector.load %arg16[%c0_40, %c0_41] : memref<64x64xbf16, #tpu.memory_space<vmem>>, vector<64x64xbf16>
    %cst_42 = arith.constant dense<0.000000e+00> : vector<64x256xf32>
    %52 = tpu.matmul %51, %48, %cst_42 {dimension_numbers = #tpu.dot_dimension_numbers<[1], [0], [0], [1], [0, 0, 1, 1], [], []>} : vector<64x64xbf16>, vector<64x256xbf16>, vector<64x256xf32> -> vector<64x256xf32>
    %53 = arith.addf %50, %52 : vector<64x256xf32>
    %c0_43 = arith.constant 0 : index
    %c0_44 = arith.constant 0 : index
    %54 = vector.load %arg17[%c0_43, %c0_44] : memref<64x1xf32, #tpu.memory_space<vmem>>, vector<64x1xf32>
    %55 = vector.broadcast %54 : vector<64x1xf32> to vector<64x256xf32>
    %56 = arith.addf %53, %55 : vector<64x256xf32>
    %cst_45 = arith.constant 0.000000e+00 : f32
    %57 = vector.broadcast %cst_45 : f32 to vector<64x256xf32>
    %58 = arith.maximumf %56, %57 : vector<64x256xf32>
    %59 = arith.truncf %58 : vector<64x256xf32> to vector<64x256xbf16>
    %c0_46 = arith.constant 0 : index
    %c0_47 = arith.constant 0 : index
    %60 = vector.load %arg18[%c0_46, %c0_47] : memref<8x64xbf16, #tpu.memory_space<vmem>>, vector<8x64xbf16>
    %cst_48 = arith.constant dense<0.000000e+00> : vector<8x256xf32>
    %61 = tpu.matmul %60, %59, %cst_48 {dimension_numbers = #tpu.dot_dimension_numbers<[1], [0], [0], [1], [0, 0, 1, 1], [], []>} : vector<8x64xbf16>, vector<64x256xbf16>, vector<8x256xf32> -> vector<8x256xf32>
    %c0_49 = arith.constant 0 : index
    %c0_50 = arith.constant 0 : index
    %62 = vector.load %arg19[%c0_49, %c0_50] : memref<8x1xf32, #tpu.memory_space<vmem>>, vector<8x1xf32>
    %63 = vector.broadcast %62 : vector<8x1xf32> to vector<8x256xf32>
    %64 = arith.addf %61, %63 : vector<8x256xf32>
    %cst_51 = arith.constant 0.000000e+00 : f32
    %65 = vector.broadcast %cst_51 : f32 to vector<8x256xf32>
    %66 = arith.maximumf %64, %65 : vector<8x256xf32>
    %c0_52 = arith.constant 0 : index
    %c0_53 = arith.constant 0 : index
    %c0_54 = arith.constant 0 : index
    %67 = vector.load %arg22[%c0_52, %c0_53, %c0_54] : memref<1x8x256xf32, #tpu.memory_space<vmem>>, vector<1x8x256xf32>
    %68 = vector.shape_cast %67 : vector<1x8x256xf32> to vector<8x256xf32>
    %69 = vector.shape_cast %66 : vector<8x256xf32> to vector<1x8x256xf32>
    tpu.vector_store %arg22[%c0_52, %c0_53, %c0_54], %69 {strides = array<i32>} : memref<1x8x256xf32, #tpu.memory_space<vmem>>, vector<1x8x256xf32>,
    %70 = arith.truncf %66 : vector<8x256xf32> to vector<8x256xbf16>
    %c0_55 = arith.constant 0 : index
    %c0_56 = arith.constant 0 : index
    %71 = vector.load %arg20[%c0_55, %c0_56] : memref<8x8xbf16, #tpu.memory_space<vmem>>, vector<8x8xbf16>
    %cst_57 = arith.constant dense<0.000000e+00> : vector<8x256xf32>
    %72 = tpu.matmul %71, %70, %cst_57 {dimension_numbers = #tpu.dot_dimension_numbers<[1], [0], [0], [1], [0, 0, 1, 1], [], []>} : vector<8x8xbf16>, vector<8x256xbf16>, vector<8x256xf32> -> vector<8x256xf32>
    %c0_58 = arith.constant 0 : index
    %c0_59 = arith.constant 0 : index
    %73 = vector.load %arg21[%c0_58, %c0_59] : memref<8x16xbf16, #tpu.memory_space<vmem>>, vector<8x16xbf16>
    %cst_60 = arith.constant dense<0.000000e+00> : vector<8x256xf32>
    %74 = tpu.matmul %73, %5, %cst_60 {dimension_numbers = #tpu.dot_dimension_numbers<[1], [0], [0], [1], [0, 0, 1, 1], [], []>} : vector<8x16xbf16>, vector<16x256xbf16>, vector<8x256xf32> -> vector<8x256xf32>
    %75 = arith.addf %72, %74 : vector<8x256xf32>
    %cst_61 = arith.constant 0.000000e+00 : f32
    %76 = vector.broadcast %cst_61 : f32 to vector<8x256xf32>
    %77 = arith.maximumf %75, %76 : vector<8x256xf32>
    %c0_62 = arith.constant 0 : index
    %c0_63 = arith.constant 0 : index
    %c0_64 = arith.constant 0 : index
    %78 = vector.load %arg23[%c0_62, %c0_63, %c0_64] : memref<1x8x256xf32, #tpu.memory_space<vmem>>, vector<1x8x256xf32>
    %79 = vector.shape_cast %78 : vector<1x8x256xf32> to vector<8x256xf32>
    %80 = vector.shape_cast %77 : vector<8x256xf32> to vector<1x8x256xf32>
    tpu.vector_store %arg23[%c0_62, %c0_63, %c0_64], %80 {strides = array<i32>} : memref<1x8x256xf32, #tpu.memory_space<vmem>>, vector<1x8x256xf32>,
    return
  }
  func.func @transform_0(%arg0: i32, %arg1: i32) -> (i32, i32, i32) {
    %c0_i32 = arith.constant 0 : i32
    %c0_i32_0 = arith.constant 0 : i32
    return %arg0, %c0_i32, %arg1 : i32, i32, i32
  }
  func.func @transform_1(%arg0: i32, %arg1: i32) -> (i32, i32, i32) {
    %c0_i32 = arith.constant 0 : i32
    %c0_i32_0 = arith.constant 0 : i32
    return %arg0, %c0_i32, %arg1 : i32, i32, i32
  }
  func.func @transform_2(%arg0: i32, %arg1: i32) -> (i32, i32) {
    %c0_i32 = arith.constant 0 : i32
    %c0_i32_0 = arith.constant 0 : i32
    %c0_i32_1 = arith.constant 0 : i32
    return %c0_i32, %c0_i32_0 : i32, i32
  }
  func.func @transform_3(%arg0: i32, %arg1: i32) -> (i32, i32) {
    %c0_i32 = arith.constant 0 : i32
    %c0_i32_0 = arith.constant 0 : i32
    %c0_i32_1 = arith.constant 0 : i32
    return %c0_i32, %c0_i32_0 : i32, i32
  }
  func.func @transform_4(%arg0: i32, %arg1: i32) -> (i32, i32) {
    %c0_i32 = arith.constant 0 : i32
    %c0_i32_0 = arith.constant 0 : i32
    %c0_i32_1 = arith.constant 0 : i32
    return %c0_i32, %c0_i32_0 : i32, i32
  }
  func.func @transform_5(%arg0: i32, %arg1: i32) -> (i32, i32) {
    %c0_i32 = arith.constant 0 : i32
    %c0_i32_0 = arith.constant 0 : i32
    %c0_i32_1 = arith.constant 0 : i32
    return %c0_i32, %c0_i32_0 : i32, i32
  }
  func.func @transform_6(%arg0: i32, %arg1: i32) -> (i32, i32) {
    %c0_i32 = arith.constant 0 : i32
    %c0_i32_0 = arith.constant 0 : i32
    %c0_i32_1 = arith.constant 0 : i32
    return %c0_i32, %c0_i32_0 : i32, i32
  }
  func.func @transform_7(%arg0: i32, %arg1: i32) -> (i32, i32) {
    %c0_i32 = arith.constant 0 : i32
    %c0_i32_0 = arith.constant 0 : i32
    %c0_i32_1 = arith.constant 0 : i32
    return %c0_i32, %c0_i32_0 : i32, i32
  }
  func.func @transform_8(%arg0: i32, %arg1: i32) -> (i32, i32) {
    %c0_i32 = arith.constant 0 : i32
    %c0_i32_0 = arith.constant 0 : i32
    %c0_i32_1 = arith.constant 0 : i32
    return %c0_i32, %c0_i32_0 : i32, i32
  }
  func.func @transform_9(%arg0: i32, %arg1: i32) -> (i32, i32) {
    %c0_i32 = arith.constant 0 : i32
    %c0_i32_0 = arith.constant 0 : i32
    %c0_i32_1 = arith.constant 0 : i32
    return %c0_i32, %c0_i32_0 : i32, i32
  }
  func.func @transform_10(%arg0: i32, %arg1: i32) -> (i32, i32) {
    %c0_i32 = arith.constant 0 : i32
    %c0_i32_0 = arith.constant 0 : i32
    %c0_i32_1 = arith.constant 0 : i32
    return %c0_i32, %c0_i32_0 : i32, i32
  }
  func.func @transform_11(%arg0: i32, %arg1: i32) -> (i32, i32) {
    %c0_i32 = arith.constant 0 : i32
    %c0_i32_0 = arith.constant 0 : i32
    %c0_i32_1 = arith.constant 0 : i32
    return %c0_i32, %c0_i32_0 : i32, i32
  }
  func.func @transform_12(%arg0: i32, %arg1: i32) -> (i32, i32) {
    %c0_i32 = arith.constant 0 : i32
    %c0_i32_0 = arith.constant 0 : i32
    %c0_i32_1 = arith.constant 0 : i32
    return %c0_i32, %c0_i32_0 : i32, i32
  }
  func.func @transform_13(%arg0: i32, %arg1: i32) -> (i32, i32) {
    %c0_i32 = arith.constant 0 : i32
    %c0_i32_0 = arith.constant 0 : i32
    %c0_i32_1 = arith.constant 0 : i32
    return %c0_i32, %c0_i32_0 : i32, i32
  }
  func.func @transform_14(%arg0: i32, %arg1: i32) -> (i32, i32) {
    %c0_i32 = arith.constant 0 : i32
    %c0_i32_0 = arith.constant 0 : i32
    %c0_i32_1 = arith.constant 0 : i32
    return %c0_i32, %c0_i32_0 : i32, i32
  }
  func.func @transform_15(%arg0: i32, %arg1: i32) -> (i32, i32) {
    %c0_i32 = arith.constant 0 : i32
    %c0_i32_0 = arith.constant 0 : i32
    %c0_i32_1 = arith.constant 0 : i32
    return %c0_i32, %c0_i32_0 : i32, i32
  }
  func.func @transform_16(%arg0: i32, %arg1: i32) -> (i32, i32) {
    %c0_i32 = arith.constant 0 : i32
    %c0_i32_0 = arith.constant 0 : i32
    %c0_i32_1 = arith.constant 0 : i32
    return %c0_i32, %c0_i32_0 : i32, i32
  }
  func.func @transform_17(%arg0: i32, %arg1: i32) -> (i32, i32) {
    %c0_i32 = arith.constant 0 : i32
    %c0_i32_0 = arith.constant 0 : i32
    %c0_i32_1 = arith.constant 0 : i32
    return %c0_i32, %c0_i32_0 : i32, i32
  }
  func.func @transform_18(%arg0: i32, %arg1: i32) -> (i32, i32) {
    %c0_i32 = arith.constant 0 : i32
    %c0_i32_0 = arith.constant 0 : i32
    %c0_i32_1 = arith.constant 0 : i32
    return %c0_i32, %c0_i32_0 : i32, i32
  }
  func.func @transform_19(%arg0: i32, %arg1: i32) -> (i32, i32) {
    %c0_i32 = arith.constant 0 : i32
    %c0_i32_0 = arith.constant 0 : i32
    %c0_i32_1 = arith.constant 0 : i32
    return %c0_i32, %c0_i32_0 : i32, i32
  }
  func.func @transform_20(%arg0: i32, %arg1: i32) -> (i32, i32, i32) {
    %c0_i32 = arith.constant 0 : i32
    %c0_i32_0 = arith.constant 0 : i32
    return %arg0, %c0_i32, %arg1 : i32, i32, i32
  }
  func.func @transform_21(%arg0: i32, %arg1: i32) -> (i32, i32, i32) {
    %c0_i32 = arith.constant 0 : i32
    %c0_i32_0 = arith.constant 0 : i32
    return %arg0, %c0_i32, %arg1 : i32, i32, i32
  }
}

</mosaic_0001>

<bundles_post_ra>
// kernel: fused_forward.1
= control target key start
LH: loop header
LB: loop body
LE: loop exit
PB: predicated region body
PF: predicated region fallthrough
CT: control target
= control target key end

     0   :  { %s5941_s0 = inlined_call_operand.hbm [shape: f32[2,8,256], index: 0, kind: input, shape index: {}]   ;;  %s5942_s1 = inlined_call_operand.hbm [shape: f32[2,16,256], index: 1, kind: input, shape index: {}]   ;;  %s5943_s2 = inlined_call_operand.hbm [shape: bf16[64,8], index: 2, kind: input, shape index: {}]   ;;  %s5944_s3 = inlined_call_operand.hbm [shape: f32[64,1], index: 3, kind: input, shape index: {}]   ;;  %s5945_s4 = inlined_call_operand.hbm [shape: bf16[128,64], index: 4, kind: input, shape index: {}]   ;;  %s5946_s5 = inlined_call_operand.hbm [shape: f32[128,1], index: 5, kind: input, shape index: {}]   ;;  %s5947_s6 = inlined_call_operand.hbm [shape: bf16[256,128], index: 6, kind: input, shape index: {}]   ;;  %s5948_s7 = inlined_call_operand.hbm [shape: f32[256,1], index: 7, kind: input, shape index: {}]   ;;  %s5949_s8 = inlined_call_operand.hbm [shape: bf16[128,256], index: 8, kind: input, shape index: {}]   ;;  %s5950_s9 = inlined_call_operand.hbm [shape: f32[128,1], index: 9, kind: input, shape index: {}]   ;;  %s5951_s10 = inlined_call_operand.hbm [shape: bf16[64,128], index: 10, kind: input, shape index: {}]   ;;  %s5952_s11 = inlined_call_operand.hbm [shape: bf16[64,128], index: 11, kind: input, shape index: {}]   ;;  %s5953_s12 = inlined_call_operand.hbm [shape: f32[64,1], index: 12, kind: input, shape index: {}]   ;;  %s5954_s13 = inlined_call_operand.hbm [shape: bf16[64,64], index: 13, kind: input, shape index: {}]   ;;  %s5955_s14 = inlined_call_operand.hbm [shape: bf16[64,64], index: 14, kind: input, shape index: {}]   ;;  %s5956_s15 = inlined_call_operand.hbm [shape: f32[64,1], index: 15, kind: input, shape index: {}]   ;;  %s5957_s16 = inlined_call_operand.hbm [shape: bf16[8,64], index: 16, kind: input, shape index: {}]   ;;  %s5958_s17 = inlined_call_operand.hbm [shape: f32[8,1], index: 17, kind: input, shape index: {}]   ;;  %s5959_s18 = inlined_call_operand.hbm [shape: bf16[8,8], index: 18, kind: input, shape index: {}]   ;;  %s5960_s19 = inlined_call_operand.hbm [shape: bf16[8,16], index: 19, kind: input, shape index: {}]   ;;  %s5961_s20 = inlined_call_operand.hbm [shape: f32[2,8,256], index: 20, kind: output, shape index: {0}]   ;;  %s5962_s21 = inlined_call_operand.hbm [shape: f32[2,8,256], index: 21, kind: output, shape index: {1}]  }
   0x1   :  { %5996 = sst [smem:[#allocation59_spill]] %s5941_s0 }
   0x2   :  { %5997 = sst [smem:[#allocation60_spill]] %s5942_s1 }
   0x3   :  { %5998 = sst [smem:[#allocation61_spill]] %s5943_s2 }
   0x4   :  { %5999 = sst [smem:[#allocation62_spill]] %s5944_s3 }
   0x5   :  { %6000 = sst [smem:[#allocation63_spill]] %s5945_s4 }
   0x6   :  { %6001 = sst [smem:[#allocation64_spill]] %s5946_s5 }
   0x7   :  { %6002 = sst [smem:[#allocation65_spill]] %s5947_s6 }
   0x8   :  { %6003 = sst [smem:[#allocation66_spill]] %s5948_s7 }
   0x9   :  { %6004 = sst [smem:[#allocation67_spill]] %s5949_s8 }
   0xa   :  { %6005 = sst [smem:[#allocation68_spill]] %s5950_s9 }
   0xb   :  { %6006 = sst [smem:[#allocation69_spill]] %s5951_s10 }
   0xc   :  { %6007 = sst [smem:[#allocation70_spill]] %s5952_s11 }
   0xd   :  { %6008 = sst [smem:[#allocation71_spill]] %s5953_s12 }
   0xe   :  { %6009 = sst [smem:[#allocation72_spill]] %s5954_s13 }
   0xf   :  { %6010 = sst [smem:[#allocation73_spill]] %s5955_s14 }
  0x10   :  { %6011 = sst [smem:[#allocation74_spill]] %s5960_s19 }
  0x11   :  { %6012 = sst [smem:[#allocation75_spill]] %s5961_s20 }
  0x12   :  { %6013 = sst [smem:[#allocation76_spill]] %s5962_s21 }
  0x13   :  { %27 = vsyncpa [#allocation3], 0 }
  0x14   :  { %29 = vsyncpa [#allocation3 + $0x1], 0 }
  0x15   :  { %30 = vsyncpa [#allocation6], 0 }
  0x16   :  { %32 = vsyncpa [#allocation6 + $0x1], 0 }
  0x17   :  { %33 = vsyncpa [#allocation9], 0 }
  0x18   :  { %34 = vsyncpa [#allocation12], 0 }
  0x19   :  { %35 = vsyncpa [#allocation15], 0 }
  0x1a   :  { %36 = vsyncpa [#allocation18], 0 }
  0x1b   :  { %37 = vsyncpa [#allocation21], 0 }
  0x1c   :  { %38 = vsyncpa [#allocation24], 0 }
  0x1d   :  { %39 = vsyncpa [#allocation27], 0 }
  0x1e   :  { %40 = vsyncpa [#allocation30], 0 }
  0x1f   :  { %41 = vsyncpa [#allocation33], 0 }
  0x20   :  { %42 = vsyncpa [#allocation4], 0 }
  0x21   :  { %44 = vsyncpa [#allocation4 + $0x1], 0 }
  0x22   :  { %45 = vsyncpa [#allocation36], 0 }
  0x23   :  { %47 = vsyncpa [#allocation36 + $0x1], 0  ;;  %s5010_s2 = smov 0   ;;  %s5012_s25 = smov 0  }
  0x24   :  { %s5014_s26 = smov 0   ;;  %s5016_s27 = smov 0  }
  0x25   :  { %s5018_s3 = smov 0   ;;  %s5020_s28 = smov 0  }
  0x26 LB: > { %6014 = sst [smem:[#allocation51_spill]] %s4849_s2  ;;  %s5041_s29 = sadd.s32 4294967295, %s4869_s28   ;;  %s4869_s28 = sphi %s5020_s28, %s53_s28   ;;  %s4865_s3 = sphi %s5018_s3, %s6099_s3   ;;  %s4861_s27 = sphi %s5016_s27, %s6095_s27   ;;  %s4857_s26 = sphi %s5014_s26, %s6098_s26   ;;  %s4853_s25 = sphi %s5012_s25, %s6094_s25   ;;  %s4849_s2 = sphi %s5010_s2, %s6097_s2  }
  0x27   : > { %6015 = sst [smem:[#allocation52_spill]] %s4853_s25  ;;  %p3635_p0 = scmp.ge.s32.totalorder %s4869_s28, 1 }
  0x28   : > { %6016 = sst [smem:[#allocation53_spill]] %s4857_s26  ;;  %p5988_p1 = scmp.eq.s32.totalorder %s5041_s29, 0 }
  0x29   : > { %6017 = sst [smem:[#allocation54_spill]] %s4861_s27  ;;  %p560_p2 = scmp.lt.s32.totalorder %s4869_s28, 3 }
  0x2a   : > { %6018 = sst [smem:[#allocation55_spill]] %s4865_s3  ;;  %s4871_s4 = smov [#allocation7]  }
  0x2b   : > { %6019 = sst [smem:[#allocation56_spill]] %s4869_s28  ;;  %p5046_p3 = pnand %p3635_p0, %p560_p2 }
  0x2c   : > { %6020 = sst [smem:[#allocation57_spill]] %s5041_s29  ;;  %s572_s30 = sshll.u32 %s4871_s4, 4  ;;  %s5050_s30 = int_to_ptr.vmem [resolvable:$true] %s572_s30 }
  0x2d   : > { %s6021_s0 = scalar_select %p5046_p3, 1, 0 }
  0x2e   : > { %p3897_p4 = pneg %p5046_p3  ;;  %s4872_s22 = smov [#allocation8]  }
  0x2f   : > { %6022 = sst [smem:[#allocation58_spill]] %s6021_s0  ;;  %s585_s23 = sshll.u32 %s4872_s22, 4  ;;  %s5061_s23 = int_to_ptr.vmem [resolvable:$true] %s585_s23 }
  0x30   : > { %p5057_p6 = pnand %p3897_p4, %p5988_p1  ;;  %s6024_s21 = sld [smem:[#allocation61_spill]] }
  0x32   : > { %p5071_p8 = pneg %p5057_p6 }
  0x36   : > { %s4147_s20 = scalar_lea.hbm %s6024_s21, 512 }
  0x37   : > { %p4148_p7 = scmp.ne.s32.totalorder %s6024_s21, %s4147_s20  ;;  %p4154_p11 = scmp.lt.u32.totalorder %s4147_s20, %s6024_s21 }
  0x39   : > { %p4150_p9 = pnand %p5071_p8, %p4148_p7 }
  0x3b   : > { %p4151_p10 = pneg %p4150_p9 }
  0x3d   : > { %p4156_p12 = pnand %p4154_p11, %p4151_p10 }
  0x3f   : > { %4159 = shalt.err (!%p4156_p12)
}
  0x40   : > { %s4160_s27 = scalar_lea.vmem %s5050_s30, 512  ;;  %p4168_p4 = scmp.lt.s32.totalorder %s5050_s30, %s5050_s30 }
  0x41   : > { %p4161_p13 = scmp.ne.s32.totalorder %s5050_s30, %s4160_s27  ;;  %p4169_p5 = scmp.lt.s32.totalorder %s4160_s27, %s4160_s27 }
  0x43   : > { %p4163_p0 = pnand %p4161_p13, %p5071_p8  ;;  %p4170_p7 = por %p4169_p5, %p4168_p4 }
  0x45   : > { %p4164_p2 = pneg %p4163_p0 }
  0x47   : > { %p4171_p9 = pnand %p4170_p7, %p4164_p2 }
  0x49   : > { %4174 = shalt.err (!%p4171_p9)
}
  0x4a   : > { %s5983_s1 = smov 64   ;;  %s5985_s20 = smov 4  }
  0x4b   : > { %3900 = dma.hbm_to_vmem [thread:$0]  (!%p5057_p6), %s6024_s21, 512, %s5050_s30, [#allocation6], %s5983_s1, %s5983_s1, %s5985_s20  }
  0x4c   : > { %s6026_s2 = sld [smem:[#allocation62_spill]] }
  0x52   : > { %s6027_s19 = smov %s6026_s2  ;;  %s4175_s27 = scalar_lea.hbm %s6026_s2, 1024 }
  0x53   : > { %p4176_p5 = scmp.ne.s32.totalorder %s6027_s19, %s4175_s27  ;;  %p4182_p12 = scmp.lt.u32.totalorder %s4175_s27, %s6027_s19 }
  0x55   : > { %p4178_p10 = pnand %p4176_p5, %p5071_p8 }
  0x57   : > { %p4179_p11 = pneg %p4178_p10 }
  0x59   : > { %p4184_p13 = pnand %p4182_p12, %p4179_p11 }
  0x5b   : > { %4187 = shalt.err (!%p4184_p13)
}
  0x5c   : > { %s4188_s30 = scalar_lea.vmem %s5061_s23, 1024  ;;  %p4196_p7 = scmp.lt.s32.totalorder %s5061_s23, %s5061_s23 }
  0x5d   : > { %p4189_p0 = scmp.ne.s32.totalorder %s5061_s23, %s4188_s30  ;;  %p4197_p9 = scmp.lt.s32.totalorder %s4188_s30, %s4188_s30 }
  0x5f   : > { %p4191_p2 = pnand %p4189_p0, %p5071_p8  ;;  %p4198_p5 = por %p4197_p9, %p4196_p7 }
  0x61   : > { %p4192_p4 = pneg %p4191_p2 }
  0x63   : > { %p4199_p10 = pnand %p4198_p5, %p4192_p4 }
  0x65   : > { %4202 = shalt.err (!%p4199_p10)
}
  0x66   : > { %s5990_s2 = smov 128   ;;  %s5992_s25 = smov 8  }
  0x67   : > { %3903 = dma.hbm_to_vmem [thread:$0]  (!%p5057_p6), %s6027_s19, 1024, %s5061_s23, [#allocation9], %s5990_s2, %s5990_s2, %s5992_s25  }
  0x68   : > { %s4877_s28 = smov [#allocation11]   ;;  %s4878_s24 = smov [#allocation14]  }
  0x69   : > { %s611_s29 = sshll.u32 %s4877_s28, 4  ;;  %s637_s4 = sshll.u32 %s4878_s24, 4  ;;  %s612_s29 = int_to_ptr.vmem [resolvable:$true] %s611_s29  ;;  %s5121_s4 = int_to_ptr.vmem [resolvable:$true] %s637_s4 }
  0x6a   : > { %s6028_s30 = sld [smem:[#allocation64_spill]] }
  0x70   : > { %s4203_s1 = scalar_lea.hbm %s6028_s30, 2048 }
  0x71   : > { %p4204_p11 = scmp.ne.s32.totalorder %s6028_s30, %s4203_s1  ;;  %p4210_p0 = scmp.lt.u32.totalorder %s4203_s1, %s6028_s30 }
  0x73   : > { %p4206_p12 = pnand %p4204_p11, %p5071_p8 }
  0x75   : > { %p4207_p13 = pneg %p4206_p12 }
  0x77   : > { %p4212_p2 = pnand %p4210_p0, %p4207_p13 }
  0x79   : > { %4215 = shalt.err (!%p4212_p2)
}
  0x7a   : > { %s4216_s3 = scalar_lea.vmem %s612_s29, 2048  ;;  %p4224_p5 = scmp.lt.s32.totalorder %s612_s29, %s612_s29 }
  0x7b   : > { %p4217_p4 = scmp.ne.s32.totalorder %s612_s29, %s4216_s3  ;;  %p4225_p10 = scmp.lt.s32.totalorder %s4216_s3, %s4216_s3 }
  0x7d   : > { %p4219_p7 = pnand %p4217_p4, %p5071_p8  ;;  %p4226_p1 = por %p4225_p10, %p4224_p5 }
  0x7f   : > { %p4220_p9 = pneg %p4219_p7 }
  0x81   : > { %p4227_p3 = pnand %p4226_p1, %p4220_p9 }
  0x83   : > { %4230 = shalt.err (!%p4227_p3)
}
  0x84   : > { %3909 = dma.hbm_to_vmem [thread:$0]  (!%p5057_p6), %s6028_s30, 2048, %s612_s29, [#allocation12], %s5990_s2, %s5990_s2, %s5992_s25  }
  0x85   : > { %s6029_s7 = sld [smem:[#allocation66_spill]] }
  0x8b   : > { %s4231_s24 = scalar_lea.hbm %s6029_s7, 4096 }
  0x8c   : > { %p4232_p11 = scmp.ne.s32.totalorder %s6029_s7, %s4231_s24  ;;  %p4238_p12 = scmp.lt.u32.totalorder %s4231_s24, %s6029_s7 }
  0x8e   : > { %p4234_p1 = pnand %p4232_p11, %p5071_p8 }
  0x90   : > { %p4235_p3 = pneg %p4234_p1 }
  0x92   : > { %p4240_p13 = pnand %p4238_p12, %p4235_p3 }
  0x94   : > { %4243 = shalt.err (!%p4240_p13)
}
  0x95   : > { %s4244_s29 = scalar_lea.vmem %s5121_s4, 4096  ;;  %p4252_p7 = scmp.lt.s32.totalorder %s5121_s4, %s5121_s4 }
  0x96   : > { %p4245_p0 = scmp.ne.s32.totalorder %s5121_s4, %s4244_s29  ;;  %p4253_p9 = scmp.lt.s32.totalorder %s4244_s29, %s4244_s29 }
  0x98   : > { %p4247_p2 = pnand %p4245_p0, %p5071_p8  ;;  %p4254_p5 = por %p4253_p9, %p4252_p7 }
  0x9a   : > { %p4248_p4 = pneg %p4247_p2 }
  0x9c   : > { %p4255_p10 = pnand %p4254_p5, %p4248_p4 }
  0x9e   : > { %4258 = shalt.err (!%p4255_p10)
}
  0x9f   : > { %3915 = dma.hbm_to_vmem [thread:$0]  (!%p5057_p6), %s6029_s7, 4096, %s5121_s4, [#allocation15], %s5990_s2, %s5990_s2, %s5992_s25  }
  0xa0   : > { %s4879_s1 = smov [#allocation17]   ;;  %s4880_s28 = smov [#allocation20]  }
  0xa1   : > { %s663_s20 = sshll.u32 %s4879_s1, 4  ;;  %s689_s24 = sshll.u32 %s4880_s28, 4  ;;  %s664_s20 = int_to_ptr.vmem [resolvable:$true] %s663_s20  ;;  %s5170_s24 = int_to_ptr.vmem [resolvable:$true] %s689_s24 }
  0xa2   : > { %s6030_s9 = sld [smem:[#allocation68_spill]] }
  0xa8   : > { %s4259_s26 = scalar_lea.hbm %s6030_s9, 2048 }
  0xa9   : > { %p4260_p11 = scmp.ne.s32.totalorder %s6030_s9, %s4259_s26  ;;  %p4266_p12 = scmp.lt.u32.totalorder %s4259_s26, %s6030_s9 }
  0xab   : > { %p4262_p1 = pnand %p4260_p11, %p5071_p8 }
  0xad   : > { %p4263_p3 = pneg %p4262_p1 }
  0xaf   : > { %p4268_p13 = pnand %p4266_p12, %p4263_p3 }
  0xb1   : > { %4271 = shalt.err (!%p4268_p13)
}
  0xb2   : > { %s4272_s21 = scalar_lea.vmem %s664_s20, 2048  ;;  %p4280_p7 = scmp.lt.s32.totalorder %s664_s20, %s664_s20 }
  0xb3   : > { %p4273_p0 = scmp.ne.s32.totalorder %s664_s20, %s4272_s21  ;;  %p4281_p9 = scmp.lt.s32.totalorder %s4272_s21, %s4272_s21 }
  0xb5   : > { %p4275_p2 = pnand %p4273_p0, %p5071_p8  ;;  %p4282_p5 = por %p4281_p9, %p4280_p7 }
  0xb7   : > { %p4276_p4 = pneg %p4275_p2 }
  0xb9   : > { %p4283_p10 = pnand %p4282_p5, %p4276_p4 }
  0xbb   : > { %4286 = shalt.err (!%p4283_p10)
}
  0xbc   : > { %3921 = dma.hbm_to_vmem [thread:$0]  (!%p5057_p6), %s6030_s9, 2048, %s664_s20, [#allocation18], %s5990_s2, %s5990_s2, %s5992_s25  }
  0xbd   : > { %s6031_s11 = sld [smem:[#allocation70_spill]] }
  0xc3   : > { %s4287_s26 = scalar_lea.hbm %s6031_s11, 512 }
  0xc4   : > { %p4288_p11 = scmp.ne.s32.totalorder %s6031_s11, %s4287_s26  ;;  %p4294_p12 = scmp.lt.u32.totalorder %s4287_s26, %s6031_s11 }
  0xc6   : > { %p4290_p1 = pnand %p4288_p11, %p5071_p8 }
  0xc8   : > { %p4291_p3 = pneg %p4290_p1 }
  0xca   : > { %p4296_p13 = pnand %p4294_p12, %p4291_p3 }
  0xcc   : > { %4299 = shalt.err (!%p4296_p13)
}
  0xcd   : > { %s4300_s20 = scalar_lea.vmem %s5170_s24, 512  ;;  %p4308_p7 = scmp.lt.s32.totalorder %s5170_s24, %s5170_s24 }
  0xce   : > { %p4301_p0 = scmp.ne.s32.totalorder %s5170_s24, %s4300_s20  ;;  %p4309_p9 = scmp.lt.s32.totalorder %s4300_s20, %s4300_s20 }
  0xd0   : > { %p4303_p2 = pnand %p4301_p0, %p5071_p8  ;;  %p4310_p5 = por %p4309_p9, %p4308_p7 }
  0xd2   : > { %p4304_p4 = pneg %p4303_p2 }
  0xd4   : > { %p4311_p10 = pnand %p4310_p5, %p4304_p4 }
  0xd6   : > { %4314 = shalt.err (!%p4311_p10)
}
  0xd7   : > { %s6032_s21 = smov 4   ;;  %s6033_s1 = smov 64  }
  0xd8   : > { %3927 = dma.hbm_to_vmem [thread:$0]  (!%p5057_p6), %s6031_s11, 512, %s5170_s24, [#allocation21], %s6033_s1, %s6033_s1, %s6032_s21  }
  0xd9   : > { %s4881_s27 = smov [#allocation23]   ;;  %s4882_s23 = smov [#allocation26]  }
  0xda   : > { %s715_s26 = sshll.u32 %s4881_s27, 4  ;;  %s741_s29 = sshll.u32 %s4882_s23, 4  ;;  %s716_s26 = int_to_ptr.vmem [resolvable:$true] %s715_s26  ;;  %s5219_s29 = int_to_ptr.vmem [resolvable:$true] %s741_s29 }
  0xdb   : > { %s6034_s13 = sld [smem:[#allocation72_spill]] }
  0xe1   : > { %s4315_s20 = scalar_lea.hbm %s6034_s13, 512 }
  0xe2   : > { %p4316_p11 = scmp.ne.s32.totalorder %s6034_s13, %s4315_s20  ;;  %p4322_p12 = scmp.lt.u32.totalorder %s4315_s20, %s6034_s13 }
  0xe4   : > { %p4318_p1 = pnand %p4316_p11, %p5071_p8 }
  0xe6   : > { %p4319_p3 = pneg %p4318_p1 }
  0xe8   : > { %p4324_p13 = pnand %p4322_p12, %p4319_p3 }
  0xea   : > { %4327 = shalt.err (!%p4324_p13)
}
  0xeb   : > { %s4328_s22 = scalar_lea.vmem %s716_s26, 512  ;;  %p4336_p7 = scmp.lt.s32.totalorder %s716_s26, %s716_s26 }
  0xec   : > { %p4329_p0 = scmp.ne.s32.totalorder %s716_s26, %s4328_s22  ;;  %p4337_p9 = scmp.lt.s32.totalorder %s4328_s22, %s4328_s22 }
  0xee   : > { %p4331_p2 = pnand %p4329_p0, %p5071_p8  ;;  %p4338_p5 = por %p4337_p9, %p4336_p7 }
  0xf0   : > { %p4332_p4 = pneg %p4331_p2 }
  0xf2   : > { %p4339_p10 = pnand %p4338_p5, %p4332_p4 }
  0xf4   : > { %4342 = shalt.err (!%p4339_p10)
}
  0xf5   : > { %3933 = dma.hbm_to_vmem [thread:$0]  (!%p5057_p6), %s6034_s13, 512, %s716_s26, [#allocation24], %s6033_s1, %s6033_s1, %s6032_s21  }
  0xf6   : > { %s4343_s3 = scalar_lea.hbm %s5956_s15, 1024 }
  0xf7   : > { %p4344_p11 = scmp.ne.s32.totalorder %s5956_s15, %s4343_s3  ;;  %p4350_p12 = scmp.lt.u32.totalorder %s4343_s3, %s5956_s15 }
  0xf9   : > { %p4346_p1 = pnand %p4344_p11, %p5071_p8 }
  0xfb   : > { %p4347_p3 = pneg %p4346_p1 }
  0xfd   : > { %p4352_p13 = pnand %p4350_p12, %p4347_p3 }
  0xff   : > { %4355 = shalt.err (!%p4352_p13)
}
 0x100   : > { %s4356_s26 = scalar_lea.vmem %s5219_s29, 1024  ;;  %p4364_p7 = scmp.lt.s32.totalorder %s5219_s29, %s5219_s29 }
 0x101   : > { %p4357_p0 = scmp.ne.s32.totalorder %s5219_s29, %s4356_s26  ;;  %p4365_p9 = scmp.lt.s32.totalorder %s4356_s26, %s4356_s26 }
 0x103   : > { %p4359_p2 = pnand %p4357_p0, %p5071_p8  ;;  %p4366_p5 = por %p4365_p9, %p4364_p7 }
 0x105   : > { %p4360_p4 = pneg %p4359_p2 }
 0x107   : > { %p4367_p10 = pnand %p4366_p5, %p4360_p4 }
 0x109   : > { %4370 = shalt.err (!%p4367_p10)
}
 0x10a   : > { %s6035_s22 = smov 8   ;;  %s6036_s2 = smov 128  }
 0x10b   : > { %3939 = dma.hbm_to_vmem [thread:$0]  (!%p5057_p6), %s5956_s15, 1024, %s5219_s29, [#allocation27], %s6036_s2, %s6036_s2, %s6035_s22  }
 0x10c   : > { %s4883_s23 = smov [#allocation29]   ;;  %s4884_s4 = smov [#allocation10]  }
 0x10d   : > { %s766_s3 = sshll.u32 %s4883_s23, 4  ;;  %s598_s20 = sshll.u32 %s4884_s4, 4  ;;  %s767_s3 = int_to_ptr.vmem [resolvable:$true] %s766_s3  ;;  %s5268_s20 = int_to_ptr.vmem [resolvable:$true] %s598_s20 }
 0x10e   : > { %s4371_s26 = scalar_lea.hbm %s5958_s17, 128 }
 0x10f   : > { %p4372_p11 = scmp.ne.s32.totalorder %s5958_s17, %s4371_s26  ;;  %p4378_p12 = scmp.lt.u32.totalorder %s4371_s26, %s5958_s17 }
 0x111   : > { %p4374_p1 = pnand %p4372_p11, %p5071_p8 }
 0x113   : > { %p4375_p3 = pneg %p4374_p1 }
 0x115   : > { %p4380_p13 = pnand %p4378_p12, %p4375_p3 }
 0x117   : > { %4383 = shalt.err (!%p4380_p13)
}
 0x118   : > { %s4384_s27 = scalar_lea.vmem %s767_s3, 128  ;;  %p4392_p7 = scmp.lt.s32.totalorder %s767_s3, %s767_s3 }
 0x119   : > { %p4385_p0 = scmp.ne.s32.totalorder %s767_s3, %s4384_s27  ;;  %p4393_p9 = scmp.lt.s32.totalorder %s4384_s27, %s4384_s27 }
 0x11b   : > { %p4387_p2 = pnand %p4385_p0, %p5071_p8  ;;  %p4394_p5 = por %p4393_p9, %p4392_p7 }
 0x11d   : > { %p4388_p4 = pneg %p4387_p2 }
 0x11f   : > { %p4395_p10 = pnand %p4394_p5, %p4388_p4 }
 0x121   : > { %4398 = shalt.err (!%p4395_p10)
}
 0x122   : > { %3945 = dma.hbm_to_vmem [thread:$0]  (!%p5057_p6), %s5958_s17, 128, %s767_s3, [#allocation30]  }
 0x123   : > { %s6037_s28 = sld [smem:[#allocation63_spill]] }
 0x129   : > { %s6038_s24 = smov %s6037_s28  ;;  %s4399_s26 = scalar_lea.hbm %s6037_s28, 1024 }
 0x12a   : > { %p4400_p11 = scmp.ne.s32.totalorder %s6038_s24, %s4399_s26  ;;  %p4406_p12 = scmp.lt.u32.totalorder %s4399_s26, %s6038_s24 }
 0x12c   : > { %p4402_p1 = pnand %p4400_p11, %p5071_p8 }
 0x12e   : > { %p4403_p3 = pneg %p4402_p1 }
 0x130   : > { %p4408_p13 = pnand %p4406_p12, %p4403_p3 }
 0x132   : > { %4411 = shalt.err (!%p4408_p13)
}
 0x133   : > { %s4412_s3 = scalar_lea.vmem %s5268_s20, 1024  ;;  %p4420_p7 = scmp.lt.s32.totalorder %s5268_s20, %s5268_s20 }
 0x134   : > { %p4413_p0 = scmp.ne.s32.totalorder %s5268_s20, %s4412_s3  ;;  %p4421_p9 = scmp.lt.s32.totalorder %s4412_s3, %s4412_s3 }
 0x136   : > { %p4415_p2 = pnand %p4413_p0, %p5071_p8  ;;  %p4422_p5 = por %p4421_p9, %p4420_p7 }
 0x138   : > { %p4416_p4 = pneg %p4415_p2 }
 0x13a   : > { %p4423_p10 = pnand %p4422_p5, %p4416_p4 }
 0x13c   : > { %4426 = shalt.err (!%p4423_p10)
}
 0x13d   : > { %3906 = dma.hbm_to_vmem [thread:$0]  (!%p5057_p6), %s6038_s24, 1024, %s5268_s20, [#allocation9], %s6033_s1, %s6033_s1, %s6032_s21  }
 0x13e   : > { %s4885_s9 = smov [#allocation13]   ;;  %s4886_s4 = smov [#allocation16]  }
 0x13f   : > { %s624_s23 = sshll.u32 %s4885_s9, 4  ;;  %s650_s28 = sshll.u32 %s4886_s4, 4  ;;  %s625_s23 = int_to_ptr.vmem [resolvable:$true] %s624_s23  ;;  %s5314_s28 = int_to_ptr.vmem [resolvable:$true] %s650_s28 }
 0x140   : > { %s6039_s6 = sld [smem:[#allocation65_spill]] }
 0x146   : > { %s4427_s29 = scalar_lea.hbm %s6039_s6, 2048 }
 0x147   : > { %p4428_p11 = scmp.ne.s32.totalorder %s6039_s6, %s4427_s29  ;;  %p4434_p12 = scmp.lt.u32.totalorder %s4427_s29, %s6039_s6 }
 0x149   : > { %p4430_p1 = pnand %p4428_p11, %p5071_p8 }
 0x14b   : > { %p4431_p3 = pneg %p4430_p1 }
 0x14d   : > { %p4436_p13 = pnand %p4434_p12, %p4431_p3 }
 0x14f   : > { %4439 = shalt.err (!%p4436_p13)
}
 0x150   : > { %s4440_s7 = scalar_lea.vmem %s625_s23, 2048  ;;  %p4448_p7 = scmp.lt.s32.totalorder %s625_s23, %s625_s23 }
 0x151   : > { %p4441_p0 = scmp.ne.s32.totalorder %s625_s23, %s4440_s7  ;;  %p4449_p9 = scmp.lt.s32.totalorder %s4440_s7, %s4440_s7 }
 0x153   : > { %p4443_p2 = pnand %p4441_p0, %p5071_p8  ;;  %p4450_p5 = por %p4449_p9, %p4448_p7 }
 0x155   : > { %p4444_p4 = pneg %p4443_p2 }
 0x157   : > { %p4451_p10 = pnand %p4450_p5, %p4444_p4 }
 0x159   : > { %4454 = shalt.err (!%p4451_p10)
}
 0x15a   : > { %3912 = dma.hbm_to_vmem [thread:$0]  (!%p5057_p6), %s6039_s6, 2048, %s625_s23, [#allocation12], %s6033_s1, %s6033_s1, %s6032_s21  }
 0x15b   : > { %s6040_s8 = sld [smem:[#allocation67_spill]] }
 0x161   : > { %s4455_s29 = scalar_lea.hbm %s6040_s8, 2048 }
 0x162   : > { %p4456_p11 = scmp.ne.s32.totalorder %s6040_s8, %s4455_s29  ;;  %p4462_p12 = scmp.lt.u32.totalorder %s4455_s29, %s6040_s8 }
 0x164   : > { %p4458_p1 = pnand %p4456_p11, %p5071_p8 }
 0x166   : > { %p4459_p3 = pneg %p4458_p1 }
 0x168   : > { %p4464_p13 = pnand %p4462_p12, %p4459_p3 }
 0x16a   : > { %4467 = shalt.err (!%p4464_p13)
}
 0x16b   : > { %s4468_s23 = scalar_lea.vmem %s5314_s28, 2048  ;;  %p4476_p7 = scmp.lt.s32.totalorder %s5314_s28, %s5314_s28 }
 0x16c   : > { %p4469_p0 = scmp.ne.s32.totalorder %s5314_s28, %s4468_s23  ;;  %p4477_p9 = scmp.lt.s32.totalorder %s4468_s23, %s4468_s23 }
 0x16e   : > { %p4471_p2 = pnand %p4469_p0, %p5071_p8  ;;  %p4478_p5 = por %p4477_p9, %p4476_p7 }
 0x170   : > { %p4472_p4 = pneg %p4471_p2 }
 0x172   : > { %p4479_p10 = pnand %p4478_p5, %p4472_p4 }
 0x174   : > { %4482 = shalt.err (!%p4479_p10)
}
 0x175   : > { %3918 = dma.hbm_to_vmem [thread:$0]  (!%p5057_p6), %s6040_s8, 2048, %s5314_s28, [#allocation15], %s6036_s2, %s6036_s2, %s6035_s22  }
 0x176   : > { %s4887_s4 = smov [#allocation19]   ;;  %s4888_s25 = smov [#allocation22]  }
 0x177   : > { %s676_s26 = sshll.u32 %s4887_s4, 4  ;;  %s702_s29 = sshll.u32 %s4888_s25, 4  ;;  %s677_s26 = int_to_ptr.vmem [resolvable:$true] %s676_s26  ;;  %s5363_s29 = int_to_ptr.vmem [resolvable:$true] %s702_s29 }
 0x178   : > { %s6041_s10 = sld [smem:[#allocation69_spill]] }
 0x17e   : > { %s4483_s11 = scalar_lea.hbm %s6041_s10, 512 }
 0x17f   : > { %p4484_p11 = scmp.ne.s32.totalorder %s6041_s10, %s4483_s11  ;;  %p4490_p12 = scmp.lt.u32.totalorder %s4483_s11, %s6041_s10 }
 0x181   : > { %p4486_p1 = pnand %p4484_p11, %p5071_p8 }
 0x183   : > { %p4487_p3 = pneg %p4486_p1 }
 0x185   : > { %p4492_p13 = pnand %p4490_p12, %p4487_p3 }
 0x187   : > { %4495 = shalt.err (!%p4492_p13)
}
 0x188   : > { %s4496_s9 = scalar_lea.vmem %s677_s26, 512  ;;  %p4504_p7 = scmp.lt.s32.totalorder %s677_s26, %s677_s26 }
 0x189   : > { %p4497_p0 = scmp.ne.s32.totalorder %s677_s26, %s4496_s9  ;;  %p4505_p9 = scmp.lt.s32.totalorder %s4496_s9, %s4496_s9 }
 0x18b   : > { %p4499_p2 = pnand %p4497_p0, %p5071_p8  ;;  %p4506_p5 = por %p4505_p9, %p4504_p7 }
 0x18d   : > { %p4500_p4 = pneg %p4499_p2 }
 0x18f   : > { %p4507_p10 = pnand %p4506_p5, %p4500_p4 }
 0x191   : > { %4510 = shalt.err (!%p4507_p10)
}
 0x192   : > { %3924 = dma.hbm_to_vmem [thread:$0]  (!%p5057_p6), %s6041_s10, 512, %s677_s26, [#allocation18], %s6033_s1, %s6033_s1, %s6032_s21  }
 0x193   : > { %s6042_s12 = sld [smem:[#allocation71_spill]] }
 0x199   : > { %s4511_s11 = scalar_lea.hbm %s6042_s12, 1024 }
 0x19a   : > { %p4512_p11 = scmp.ne.s32.totalorder %s6042_s12, %s4511_s11  ;;  %p4518_p12 = scmp.lt.u32.totalorder %s4511_s11, %s6042_s12 }
 0x19c   : > { %p4514_p1 = pnand %p4512_p11, %p5071_p8 }
 0x19e   : > { %p4515_p3 = pneg %p4514_p1 }
 0x1a0   : > { %p4520_p13 = pnand %p4518_p12, %p4515_p3 }
 0x1a2   : > { %4523 = shalt.err (!%p4520_p13)
}
 0x1a3   : > { %s4524_s26 = scalar_lea.vmem %s5363_s29, 1024  ;;  %p4532_p7 = scmp.lt.s32.totalorder %s5363_s29, %s5363_s29 }
 0x1a4   : > { %p4525_p0 = scmp.ne.s32.totalorder %s5363_s29, %s4524_s26  ;;  %p4533_p9 = scmp.lt.s32.totalorder %s4524_s26, %s4524_s26 }
 0x1a6   : > { %p4527_p2 = pnand %p4525_p0, %p5071_p8  ;;  %p4534_p5 = por %p4533_p9, %p4532_p7 }
 0x1a8   : > { %p4528_p4 = pneg %p4527_p2 }
 0x1aa   : > { %p4535_p10 = pnand %p4534_p5, %p4528_p4 }
 0x1ac   : > { %4538 = shalt.err (!%p4535_p10)
}
 0x1ad   : > { %3930 = dma.hbm_to_vmem [thread:$0]  (!%p5057_p6), %s6042_s12, 1024, %s5363_s29, [#allocation21], %s6036_s2, %s6036_s2, %s6035_s22  }
 0x1ae   : > { %s4889_s25 = smov [#allocation25]   ;;  %s4890_s3 = smov [#allocation28]  }
 0x1af   : > { %s728_s27 = sshll.u32 %s4889_s25, 4  ;;  %s755_s11 = sshll.u32 %s4890_s3, 4  ;;  %s729_s27 = int_to_ptr.vmem [resolvable:$true] %s728_s27  ;;  %s5412_s11 = int_to_ptr.vmem [resolvable:$true] %s755_s11 }
 0x1b0   : > { %s6043_s14 = sld [smem:[#allocation73_spill]] }
 0x1b6   : > { %s4539_s7 = scalar_lea.hbm %s6043_s14, 512 }
 0x1b7   : > { %p4540_p11 = scmp.ne.s32.totalorder %s6043_s14, %s4539_s7  ;;  %p4546_p12 = scmp.lt.u32.totalorder %s4539_s7, %s6043_s14 }
 0x1b9   : > { %p4542_p1 = pnand %p4540_p11, %p5071_p8 }
 0x1bb   : > { %p4543_p3 = pneg %p4542_p1 }
 0x1bd   : > { %p4548_p13 = pnand %p4546_p12, %p4543_p3 }
 0x1bf   : > { %4551 = shalt.err (!%p4548_p13)
}
 0x1c0   : > { %s4552_s2 = scalar_lea.vmem %s729_s27, 512  ;;  %p4560_p7 = scmp.lt.s32.totalorder %s729_s27, %s729_s27 }
 0x1c1   : > { %p4553_p0 = scmp.ne.s32.totalorder %s729_s27, %s4552_s2  ;;  %p4561_p9 = scmp.lt.s32.totalorder %s4552_s2, %s4552_s2 }
 0x1c3   : > { %p4555_p2 = pnand %p4553_p0, %p5071_p8  ;;  %p4562_p5 = por %p4561_p9, %p4560_p7 }
 0x1c5   : > { %p4556_p4 = pneg %p4555_p2 }
 0x1c7   : > { %p4563_p10 = pnand %p4562_p5, %p4556_p4 }
 0x1c9   : > { %4566 = shalt.err (!%p4563_p10)
}
 0x1ca   : > { %3936 = dma.hbm_to_vmem [thread:$0]  (!%p5057_p6), %s6043_s14, 512, %s729_s27, [#allocation24], %s6033_s1, %s6033_s1, %s6032_s21  }
 0x1cb   : > { %s4567_s20 = scalar_lea.hbm %s5957_s16, 64 }
 0x1cc   : > { %p4568_p11 = scmp.ne.s32.totalorder %s5957_s16, %s4567_s20  ;;  %p4574_p12 = scmp.lt.u32.totalorder %s4567_s20, %s5957_s16 }
 0x1ce   : > { %p4570_p1 = pnand %p4568_p11, %p5071_p8 }
 0x1d0   : > { %p4571_p3 = pneg %p4570_p1 }
 0x1d2   : > { %p4576_p13 = pnand %p4574_p12, %p4571_p3 }
 0x1d4   : > { %4579 = shalt.err (!%p4576_p13)
}
 0x1d5   : > { %s4580_s21 = scalar_lea.vmem %s5412_s11, 64  ;;  %p4588_p7 = scmp.lt.s32.totalorder %s5412_s11, %s5412_s11 }
 0x1d6   : > { %p4581_p0 = scmp.ne.s32.totalorder %s5412_s11, %s4580_s21  ;;  %p4589_p9 = scmp.lt.s32.totalorder %s4580_s21, %s4580_s21 }
 0x1d8   : > { %p4583_p2 = pnand %p4581_p0, %p5071_p8  ;;  %p4590_p5 = por %p4589_p9, %p4588_p7 }
 0x1da   : > { %p4584_p4 = pneg %p4583_p2 }
 0x1dc   : > { %p4591_p10 = pnand %p4590_p5, %p4584_p4 }
 0x1de   : > { %4594 = shalt.err (!%p4591_p10)
}
 0x1df   : > { %3942 = dma.hbm_to_vmem [thread:$0]  (!%p5057_p6), %s5957_s16, 64, %s5412_s11, [#allocation27]  }
 0x1e0   : > { %s4891_s9 = smov [#allocation31]   ;;  %s4892_s2 = smov [#allocation32]  }
 0x1e1   : > { %s777_s22 = sshll.u32 %s4891_s9, 4  ;;  %s788_s29 = sshll.u32 %s4892_s2, 4  ;;  %s778_s22 = int_to_ptr.vmem [resolvable:$true] %s777_s22  ;;  %s5458_s29 = int_to_ptr.vmem [resolvable:$true] %s788_s29 }
 0x1e2   : > { %s4595_s3 = scalar_lea.hbm %s5959_s18, 64 }
 0x1e3   : > { %p4596_p11 = scmp.ne.s32.totalorder %s5959_s18, %s4595_s3  ;;  %p4602_p12 = scmp.lt.u32.totalorder %s4595_s3, %s5959_s18 }
 0x1e5   : > { %p4598_p1 = pnand %p4596_p11, %p5071_p8 }
 0x1e7   : > { %p4599_p3 = pneg %p4598_p1 }
 0x1e9   : > { %p4604_p13 = pnand %p4602_p12, %p4599_p3 }
 0x1eb   : > { %4607 = shalt.err (!%p4604_p13)
}
 0x1ec   : > { %s4608_s28 = scalar_lea.vmem %s778_s22, 64  ;;  %p4616_p7 = scmp.lt.s32.totalorder %s778_s22, %s778_s22 }
 0x1ed   : > { %p4609_p0 = scmp.ne.s32.totalorder %s778_s22, %s4608_s28  ;;  %p4617_p9 = scmp.lt.s32.totalorder %s4608_s28, %s4608_s28 }
 0x1ef   : > { %p4611_p2 = pnand %p4609_p0, %p5071_p8  ;;  %p4618_p5 = por %p4617_p9, %p4616_p7 }
 0x1f1   : > { %p4612_p4 = pneg %p4611_p2 }
 0x1f3   : > { %p4619_p10 = pnand %p4618_p5, %p4612_p4 }
 0x1f5   : > { %4622 = shalt.err (!%p4619_p10)
}
 0x1f6   : > { %3948 = dma.hbm_to_vmem [thread:$0]  (!%p5057_p6), %s5959_s18, 64, %s778_s22, [#allocation30]  }
 0x1f7   : > { %s6044_s9 = sld [smem:[#allocation74_spill]] }
 0x1fd   : > { %s4623_s2 = scalar_lea.hbm %s6044_s9, 64 }
 0x1fe   : > { %p4624_p11 = scmp.ne.s32.totalorder %s6044_s9, %s4623_s2  ;;  %p4630_p12 = scmp.lt.u32.totalorder %s4623_s2, %s6044_s9 }
 0x200   : > { %p4626_p1 = pnand %p4624_p11, %p5071_p8 }
 0x202   : > { %p4627_p3 = pneg %p4626_p1 }
 0x204   : > { %p4632_p13 = pnand %p4630_p12, %p4627_p3 }
 0x206   : > { %4635 = shalt.err (!%p4632_p13)
}
 0x207   : > { %s4636_s22 = scalar_lea.vmem %s5458_s29, 64  ;;  %p4644_p7 = scmp.lt.s32.totalorder %s5458_s29, %s5458_s29 }
 0x208   : > { %p4637_p0 = scmp.ne.s32.totalorder %s5458_s29, %s4636_s22  ;;  %p4645_p9 = scmp.lt.s32.totalorder %s4636_s22, %s4636_s22 }
 0x20a   : > { %p4639_p2 = pnand %p4637_p0, %p5071_p8  ;;  %p4646_p5 = por %p4645_p9, %p4644_p7 }
 0x20c   : > { %p4640_p4 = pneg %p4639_p2 }
 0x20e   : > { %p4647_p10 = pnand %p4646_p5, %p4640_p4 }
 0x210   : > { %4650 = shalt.err (!%p4647_p10)
}
 0x211   : > { %s6045_s11 = sld [smem:[#allocation56_spill]]  ;;  %s6046_s28 = sld [smem:[#allocation55_spill]] }
 0x212   : > { %s6047_s26 = sld [smem:[#allocation53_spill]]  ;;  %s6048_s21 = sld [smem:[#allocation52_spill]] }
 0x213   : > { %s6049_s0 = sld [smem:[#allocation51_spill]]  ;;  %s6050_s1 = sld [smem:[#allocation57_spill]] }
 0x214   : > { %3951 = dma.hbm_to_vmem [thread:$0]  (!%p5057_p6), %s6044_s9, 64, %s5458_s29, [#allocation33]  }
 0x217   : > { %s3634_s27 = sadd.s32 4294967294, %s6045_s11   ;;  %s65_s2 = sadd.s32 1, %s6046_s28 }
 0x218   : > { %p67_p8 = scmp.ge.s32.totalorder %s65_s2, 2  ;;  %s74_s5 = sadd.s32 1, %s6047_s26 }
 0x219   : > { %p81_p11 = scmp.ne.s32.totalorder %s6047_s26, %s6048_s21  ;;  %p82_p1 = scmp.eq.s32.totalorder %s6045_s11, 0 }
 0x21a   : > { %s6101_s2 = smov (%p67_p8, %s65_s2), 0  ;;  %p87_p12 = scmp.ne.s32.totalorder %s6048_s21, %s6049_s0 }
 0x21b   : > { %p5509_p3 = por %p82_p1, %p81_p11  ;;  %s69_s29 = ssub.s32 %s6046_s28, %s6101_s2 }
 0x21c   : > { %p519_p6 = scmp.eq.s32.totalorder %s6050_s1, 1  ;;  %p72_p13 = scmp.eq.s32.totalorder %s69_s29, 0 }
 0x21d   : > { %p6052_p0 = scmp.eq.s32.totalorder %s6050_s1, 0  ;;  %p525_p7 = scmp.eq.s32.totalorder %s3634_s27, 1 }
 0x21e   : > { %p5524_p4 = por %p519_p6, %p81_p11  ;;  %p3984_p5 = scmp.lt.s32.totalorder %s6045_s11, 2 }
 0x21f   : > { %p5520_p2 = por %p6052_p0, %p87_p12  ;;  %p5531_p9 = por %p525_p7, %p87_p12 }
 0x220   : > { %s6054_s3 = scalar_select %p5524_p4, 1, 0 }
 0x221   : > { %s5529_s20 = scalar_select %p72_p13, %s6047_s26, %s74_s5  }
 0x222   : > { %s6055_s22 = scalar_select %p5531_p9, 1, 0 }
 0x223   : > { %s5537_s23 = sand.u32 1, %s6047_s26   ;;  %s3777_s7 = sshll.u32 %s6046_s28, 8 }
 0x224   : > { %s3655_s21 = sshll.u32 %s5537_s23, 4  ;;  %s6056_s29 = sld [smem:[#allocation59_spill]] }
 0x225   : > { %s803_s27 = scalar_lea.vmem [#allocation2], %s3655_s21  ;;  %p5548_p10 = pnand %p3984_p5, %p5509_p3 }
 0x226   : > { %s813_s5 = sshll.u32 %s803_s27, 4  ;;  %s800_s9 = scalar_lea.sflag [#allocation3], %s5537_s23  ;;  %s5552_s5 = int_to_ptr.vmem [resolvable:$true] %s813_s5 }
 0x227   : > { %p4653_p11 = pneg %p5548_p10 }
 0x22a   : > { %s5544_s6 = scalar_lea.hbm %s6056_s29, %s3777_s7  ;;  %s4656_s21 = scalar_lea.hbm %s6056_s29, 512 }
 0x22b   : > { %s4651_s0 = scalar_lea.hbm %s5544_s6, 256  ;;  %p4657_p3 = scmp.lt.u32.totalorder %s5544_s6, %s6056_s29 }
 0x22c   : > { %p4652_p8 = scmp.ne.s32.totalorder %s5544_s6, %s4651_s0  ;;  %p4658_p6 = scmp.lt.u32.totalorder %s4656_s21, %s4651_s0 }
 0x22d   : > { %p4660_p0 = scmp.lt.u32.totalorder %s4651_s0, %s5544_s6 }
 0x22e   : > { %p4654_p1 = pnand %p4653_p11, %p4652_p8  ;;  %p4659_p13 = por %p4658_p6, %p4657_p3 }
 0x230   : > { %p4655_p12 = pneg %p4654_p1  ;;  %p4661_p7 = por %p4660_p0, %p4659_p13 }
 0x232   : > { %p4662_p5 = pnand %p4661_p7, %p4655_p12 }
 0x234   : > { %4665 = shalt.err (!%p4662_p5)
}
 0x235   : > { %s4666_s8 = scalar_lea.vmem %s5552_s5, 256  ;;  %s4893_s7 = smov [#allocation2]  }
 0x236   : > { %p4667_p8 = scmp.ne.s32.totalorder %s5552_s5, %s4666_s8  ;;  %s4671_s4 = sshll.u32 %s4893_s7, 4  ;;  %s4672_s4 = int_to_ptr.vmem [resolvable:$false] %s4671_s4 }
 0x237   : > { %s4673_s1 = scalar_lea.vmem %s4672_s4, 512  ;;  %p4674_p4 = scmp.lt.s32.totalorder %s5552_s5, %s4672_s4 }
 0x238   : > { %p4669_p1 = pnand %p4667_p8, %p4653_p11  ;;  %p4675_p3 = scmp.lt.s32.totalorder %s4673_s1, %s4666_s8 }
 0x23a   : > { %p4670_p9 = pneg %p4669_p1  ;;  %p4676_p6 = por %p4675_p3, %p4674_p4 }
 0x23c   : > { %p4677_p13 = pnand %p4676_p6, %p4670_p9 }
 0x23e   : > { %4680 = shalt.err (!%p4677_p13)
}
 0x23f   : > { %3955 = dma.hbm_to_vmem [thread:$0]  (!%p5548_p10), %s5544_s6, 256, %s5552_s5, %s800_s9  }
 0x240   : > { %s3778_s0 = sshll.u32 %s6046_s28, 9  ;;  %s6058_s21 = sshll.u32 %s5537_s23, 5 }
 0x241   : > { %s824_s27 = scalar_lea.vmem [#allocation5], %s6058_s21  ;;  %s820_s4 = sand.u32 1, %s6045_s11  }
 0x242   : > { %s833_s7 = sshll.u32 %s824_s27, 4  ;;  %s6059_s10 = sld [smem:[#allocation60_spill]]  ;;  %s5584_s7 = int_to_ptr.vmem [resolvable:$true] %s833_s7 }
 0x243   : > { %s5592_s13 = scalar_lea.sflag [#allocation6], %s820_s4 }
 0x248   : > { %s5590_s12 = scalar_lea.hbm %s6059_s10, %s3778_s0  ;;  %s4686_s11 = scalar_lea.hbm %s6059_s10, 1024 }
 0x249   : > { %s4681_s14 = scalar_lea.hbm %s5590_s12, 512  ;;  %p4687_p0 = scmp.lt.u32.totalorder %s5590_s12, %s6059_s10 }
 0x24a   : > { %p4682_p4 = scmp.ne.s32.totalorder %s5590_s12, %s4681_s14  ;;  %p4688_p7 = scmp.lt.u32.totalorder %s4686_s11, %s4681_s14 }
 0x24b   : > { %p4690_p8 = scmp.lt.u32.totalorder %s4681_s14, %s5590_s12 }
 0x24c   : > { %p4684_p9 = pnand %p4682_p4, %p4653_p11  ;;  %p4689_p5 = por %p4688_p7, %p4687_p0 }
 0x24e   : > { %p4685_p12 = pneg %p4684_p9  ;;  %p4691_p1 = por %p4690_p8, %p4689_p5 }
 0x250   : > { %p4692_p3 = pnand %p4691_p1, %p4685_p12 }
 0x252   : > { %4695 = shalt.err (!%p4692_p3)
}
 0x253   : > { %s4696_s5 = scalar_lea.vmem %s5584_s7, 512  ;;  %s4894_s0 = smov [#allocation5]  }
 0x254   : > { %p4697_p6 = scmp.ne.s32.totalorder %s5584_s7, %s4696_s5  ;;  %s4701_s21 = sshll.u32 %s4894_s0, 4  ;;  %s4702_s21 = int_to_ptr.vmem [resolvable:$false] %s4701_s21 }
 0x255   : > { %s4703_s27 = scalar_lea.vmem %s4702_s21, 1024  ;;  %p4704_p9 = scmp.lt.s32.totalorder %s5584_s7, %s4702_s21 }
 0x256   : > { %p4699_p13 = pnand %p4697_p6, %p4653_p11  ;;  %p4705_p0 = scmp.lt.s32.totalorder %s4703_s27, %s4696_s5 }
 0x258   : > { %p4700_p4 = pneg %p4699_p13  ;;  %p4706_p7 = por %p4705_p0, %p4704_p9 }
 0x25a   : > { %p4707_p5 = pnand %p4706_p7, %p4700_p4 }
 0x25c   : > { %4710 = shalt.err (!%p4707_p5)
}
 0x25d   : > { %s4895_s14 = smov 256   ;;  %s4896_s4 = smov 16  }
 0x25e   : > { %3958 = dma.hbm_to_vmem [thread:$0]  (!%p5548_p10), %s5590_s12, 512, %s5584_s7, %s5592_s13, %s4895_s14, %s4895_s14, %s4896_s4  }
 0x25f   : > { %s6060_s8 = sld [smem:[#allocation58_spill]] }
 0x265   : > { %p6061_p11 = scmp.ne.s32.totalorder %s6060_s8, 0 }
 0x266   : > { %s6062_s1 = sld [smem:[#allocation52_spill]] (!%p6061_p11) }
 0x267   : > { %845 = sbr.rel (%p6061_p11) target bundleno = 2842 (0xb1a), region = 100 }
 0x26c   : > { %s5621_s6 = sand.u32 (!%p6061_p11), 1, %s6062_s1  }
 0x26d   : > { %s5624_s9 = sshll.u32 (!%p6061_p11), %s5621_s6, 4  ;;  %s848_s11 = scalar_lea.sflag (!%p6061_p11), [#allocation3], %s5621_s6 }
 0x26e   : > { %s851_s28 = scalar_lea.vmem [#allocation2], %s5624_s9 }
 0x26f   : > { %4792 = dma.done.wait (%p5520_p2), %s848_s11, 256  }
 0x270   : > { %4794 = vsyncadd (%p5520_p2), %s848_s11, 4294967040  ;;  %s6063_s12 = sld [smem:[#allocation57_spill]]  ;;  %s3663_s26 = sshll.u32 %s5621_s6, 5 }
 0x271   : > { %s5634_s23 = scalar_lea.vmem [#allocation5], %s3663_s26 }
 0x276   : > { %s856_s13 = sand.u32 1, %s6063_s12  }
 0x277   : > { %s857_s7 = scalar_lea.sflag [#allocation6], %s856_s13 }
 0x278   : > { %4796 = dma.done.wait (%p5520_p2), %s857_s7, 512  }
 0x279   : > { %4798 = vsyncadd (%p5520_p2), %s857_s7, 4294966784  ;;  %p6064_p10 = scmp.eq.s32.totalorder %s6063_s12, 0 }
 0x27b   : > { %4800 = dma.done.wait (%p6064_p10), [#allocation6], 512   ;;  %p6065_p12 = pmov %p6064_p10 }
 0x27c   : > { %p6066_p8 = pmov %p6064_p10 }
 0x27d   : > { %4802 = vsyncadd (%p6065_p12), [#allocation6], 4294966784 }
 0x27e   : > { %4804 = dma.done.wait (%p6066_p8), [#allocation9], 2048   ;;  %p6067_p1 = pmov %p6066_p8 }
 0x280   : > { %4806 = vsyncadd (%p6067_p1), [#allocation9], 4294965248  ;;  %p6068_p3 = pmov %p6067_p1 }
 0x281   : > { %p6069_p6 = pmov %p6067_p1 }
 0x282   : > { %4808 = dma.done.wait (%p6068_p3), [#allocation12], 4096  }
 0x283   : > { %4810 = vsyncadd (%p6069_p6), [#allocation12], 4294963200  ;;  %p6070_p2 = pmov %p6067_p1 }
 0x284   : > { %p6071_p13 = pmov %p6067_p1 }
 0x285   : > { %4812 = dma.done.wait (%p6070_p2), [#allocation15], 6144  }
 0x286   : > { %4814 = vsyncadd (%p6071_p13), [#allocation15], 4294961152  ;;  %p6072_p4 = pmov %p6067_p1 }
 0x287   : > { %p6073_p9 = pmov %p6067_p1 }
 0x288   : > { %4816 = dma.done.wait (%p6072_p4), [#allocation18], 2560  }
 0x289   : > { %4818 = vsyncadd (%p6073_p9), [#allocation18], 4294964736  ;;  %p6074_p0 = pmov %p6067_p1 }
 0x28b   : > { %4820 = dma.done.wait (%p6074_p0), [#allocation21], 1536   ;;  %p6075_p7 = pmov %p6074_p0 }
 0x28c   : > { %p6076_p5 = pmov %p6074_p0 }
 0x28d   : > { %4822 = vsyncadd (%p6075_p7), [#allocation21], 4294965760 }
 0x28e   : > { %4824 = dma.done.wait (%p6076_p5), [#allocation24], 1024   ;;  %p6077_p11 = pmov %p6074_p0 }
 0x28f   : > { %p6078_p10 = pmov %p6074_p0 }
 0x290   : > { %4826 = vsyncadd (%p6077_p11), [#allocation24], 4294966272 }
 0x291   : > { %4828 = dma.done.wait (%p6078_p10), [#allocation27], 1088   ;;  %p6079_p12 = pmov %p6074_p0 }
 0x292   : > { %p6080_p8 = pmov %p6074_p0 }
 0x293   : > { %4830 = vsyncadd (%p6079_p12), [#allocation27], 4294966208 }
 0x294   : > { %4832 = dma.done.wait (%p6080_p8), [#allocation30], 192   ;;  %p6081_p1 = pmov %p6074_p0 }
 0x295   : > { %p6082_p3 = pmov %p6074_p0 }
 0x296   : > { %4834 = vsyncadd (%p6081_p1), [#allocation30], 4294967104 }
 0x297   : > { %4836 = dma.done.wait (%p6082_p3), [#allocation33], 64   ;;  %p6083_p6 = pmov %p6074_p0 }
 0x298   : > { %v4897_v0 = vmov 0   ;;  %v1026_v1 = vld [vmem:[#allocation8 + $0x10] sm:$0xff]  ;;  %v1024_v2 = vld [vmem:[#allocation8] sm:$0xff]  ;;  %v1007_v3 = vld [vmem:[%s851_s28 + $0x8] sm:$0xff]  ;;  %vm1105_vm0 = vcmask 1043456   ;;  %vm1092_vm1 = vcmask 64512  }
 0x299   : > { %4838 = vsyncadd (%p6083_p6), [#allocation33], 4294967232  ;;  %4078 = vset.pattern.permute.xlu1 %v4897_v0  ;;  %4077 = vset.pattern.permute.xlu0 %v4897_v0  ;;  %v1009_v4 = vpack.c.bf16 %v1007_v3, %v1007_v3  ;;  %v1006_v5 = vld [vmem:[%s851_s28] sm:$0xff]  ;;  %v1027_v7 = vld [vmem:[#allocation8 + $0x18] sm:$0xff]  ;;  %vm1361_vm2 = vcmask 523264   ;;  %vm3180_vm3 = vcmask 130048  }
 0x29a   : > { %1144 = vmatprep.mubr.bf16.mxu0 %v4897_v0  ;;  %1418 = vmatprep.mubr.bf16.mxu1 %v4897_v0  ;;  %v1008_v6 = vpack.c.bf16 %v1006_v5, %v1006_v5  ;;  %v1025_v8 = vld [vmem:[#allocation8 + $0x8] sm:$0xff]  ;;  %v4079_v10 = vld [vmem:[#allocation7] sm:$0xff]   ;;  %v1031_v13 = vld [vmem:[#allocation8 + $0x38] sm:$0xff]  ;;  %s6084_s25 = sld [smem:[#allocation54_spill]]  ;;  %s993_s5 = scalar_lea.vmem [#allocation34], %s5624_s9 }
 0x29b   : > { %1044 = vperm.xlu1 %4078, %v1026_v1   ;;  %1034 = vperm.xlu0 %4077, %v1024_v2   ;;  %v1029_v11 = vld [vmem:[#allocation8 + $0x28] sm:$0xff]  ;;  %v1028_v12 = vld [vmem:[#allocation8 + $0x20] sm:$0xff]  ;;  %v1030_v14 = vld [vmem:[#allocation8 + $0x30] sm:$0xff]  ;;  %s3301_s21 = sshll.u32 %s993_s5, 4  ;;  %s6085_s4 = sld [smem:[#allocation75_spill]]  ;;  %s3302_s21 = int_to_ptr.vmem [resolvable:$true] %s3301_s21 }
 0x29c   : > { %3688 = vmatprep.subr.msk.bf16.mxu0 %vm1105_vm0, %v1009_v4  ;;  %v1107_v9 = vsel %vm1105_vm0, %v1008_v6, 0  ;;  %v4080_v15 = vld [vmem:[#allocation7 + $0x8] sm:$0xff]   ;;  %v1225_v17 = vld [vmem:[#allocation11] sm:$0xff]  ;;  %v1228_v18 = vld [vmem:[#allocation11 + $0x18] sm:$0xff]  ;;  %s3280_s1 = scalar_lea.sflag [#allocation4], %s5621_s6  ;;  %s4711_s11 = scalar_lea.vmem %s3302_s21, 256 }
 0x29d   : > { %1113 = vmatpush1.bf16.msra.mxu0 %v1107_v9  ;;  %v1226_v16 = vld [vmem:[#allocation11 + $0x8] sm:$0xff]  ;;  %v1227_v19 = vld [vmem:[#allocation11 + $0x10] sm:$0xff]  ;;  %v1229_v22 = vld [vmem:[#allocation11 + $0x20] sm:$0xff]  ;;  %p4712_p2 = scmp.ne.s32.totalorder %s3302_s21, %s4711_s11  ;;  %p6086_p13 = scmp.ne.s32.totalorder %s6054_s3, 0 }
 0x29e   : > { %v4081_v20 = vld [vmem:[#allocation7 + $0x10] sm:$0xff]   ;;  %v1230_v21 = vld [vmem:[#allocation11 + $0x28] sm:$0xff]  ;;  %v1232_v23 = vld [vmem:[#allocation11 + $0x38] sm:$0xff]  ;;  %s4898_s28 = smov [#allocation34]  }
 0x29f   : > { %1049 = vperm.xlu1 %4078, %v1027_v7   ;;  %1039 = vperm.xlu0 %4077, %v1025_v8   ;;  %v1231_v24 = vld [vmem:[#allocation11 + $0x30] sm:$0xff]  ;;  %v4082_v25 = vld [vmem:[#allocation7 + $0x18] sm:$0xff]   ;;  %v1234_v26 = vld [vmem:[#allocation11 + $0x48] sm:$0xff]  ;;  %p4713_p4 = pnand %p4712_p2, %p6086_p13  ;;  %s4715_s12 = sshll.u32 %s4898_s28, 4  ;;  %s4716_s12 = int_to_ptr.vmem [resolvable:$false] %s4715_s12 }
 0x2a0   : > { %3689 = vmatmul.mubr.msk.bf16.vlgmr.msra.gmra.mrb[0].mxu0 %vm1092_vm1, %v4079_v10  ;;  %v1233_v27 = vld [vmem:[#allocation11 + $0x40] sm:$0xff]  ;;  %v1236_v28 = vld [vmem:[#allocation11 + $0x58] sm:$0xff]  ;;  %v1235_v29 = vld [vmem:[#allocation11 + $0x50] sm:$0xff]  ;;  %s3779_s0 = sshll.u32 %s6084_s25, 8  ;;  %s4717_s13 = scalar_lea.vmem %s4716_s12, 512 }
 0x2a1   : > { %1154 = vmatprep.mubr.bf16.mxu0 %v4897_v0  ;;  %v1238_v30 = vld [vmem:[#allocation11 + $0x68] sm:$0xff]  ;;  %v1237_v31 = vld [vmem:[#allocation11 + $0x60] sm:$0xff]  ;;  %v1240_v32 = vld [vmem:[#allocation11 + $0x78] sm:$0xff]  ;;  %s5866_s8 = scalar_lea.hbm %s6085_s4, %s3779_s0  ;;  %p4714_p9 = pneg %p4713_p4 }
 0x2a2   : > { %v1239_v33 = vld [vmem:[#allocation11 + $0x70] sm:$0xff]  ;;  %v1580_v34 = vld [vmem:[#allocation14 + $0x8] sm:$0xff]  ;;  %v1579_v35 = vld [vmem:[#allocation14] sm:$0xff]  ;;  %p4718_p0 = scmp.lt.s32.totalorder %s3302_s21, %s4716_s12  ;;  %p4719_p7 = scmp.lt.s32.totalorder %s4717_s13, %s4711_s11 }
 0x2a3   : > { %1059 = vperm.xlu1 %4078, %v1029_v11   ;;  %1054 = vperm.xlu0 %4077, %v1028_v12   ;;  %v1582_v36 = vld [vmem:[#allocation14 + $0x18] sm:$0xff]  ;;  %v1581_v37 = vld [vmem:[#allocation14 + $0x10] sm:$0xff]  ;;  %v1584_v38 = vld [vmem:[#allocation14 + $0x28] sm:$0xff] }
 0x2a4   : > { %v1583_v39 = vld [vmem:[#allocation14 + $0x20] sm:$0xff]  ;;  %v1586_v40 = vld [vmem:[#allocation14 + $0x38] sm:$0xff]  ;;  %v1585_v41 = vld [vmem:[#allocation14 + $0x30] sm:$0xff]  ;;  %p4720_p5 = por %p4719_p7, %p4718_p0 }
 0x2a5   : > { %v1588_v42 = vld [vmem:[#allocation14 + $0x48] sm:$0xff]  ;;  %v1587_v43 = vld [vmem:[#allocation14 + $0x40] sm:$0xff]  ;;  %v1590_v44 = vld [vmem:[#allocation14 + $0x58] sm:$0xff] }
 0x2a6   : > { %v1589_v45 = vld [vmem:[#allocation14 + $0x50] sm:$0xff]  ;;  %v1592_v46 = vld [vmem:[#allocation14 + $0x68] sm:$0xff]  ;;  %v1591_v47 = vld [vmem:[#allocation14 + $0x60] sm:$0xff]  ;;  %p4721_p11 = pnand %p4720_p5, %p4714_p9 }
 0x2a7   : > { %1069 = vperm.xlu1 %4078, %v1031_v13   ;;  %1064 = vperm.xlu0 %4077, %v1030_v14   ;;  %v1594_v48 = vld [vmem:[#allocation14 + $0x78] sm:$0xff]  ;;  %v1593_v49 = vld [vmem:[#allocation14 + $0x70] sm:$0xff]  ;;  %v1596_v50 = vld [vmem:[#allocation14 + $0x88] sm:$0xff] }
 0x2a8   : > { %3690 = vmatmul.mubr.msk.bf16.gmra.mrb[4].mxu0 %vm1092_vm1, %v4080_v15  ;;  %v1595_v51 = vld [vmem:[#allocation14 + $0x80] sm:$0xff]  ;;  %v1598_v52 = vld [vmem:[#allocation14 + $0x98] sm:$0xff]  ;;  %v1597_v53 = vld [vmem:[#allocation14 + $0x90] sm:$0xff] }
 0x2a9   : > { %1164 = vmatprep.mubr.bf16.mxu0 %v4897_v0  ;;  %v1600_v54 = vld [vmem:[#allocation14 + $0xa8] sm:$0xff]  ;;  %v1599_v55 = vld [vmem:[#allocation14 + $0xa0] sm:$0xff]  ;;  %v1602_v56 = vld [vmem:[#allocation14 + $0xb8] sm:$0xff] }
 0x2aa   : > { %v1601_v57 = vld [vmem:[#allocation14 + $0xb0] sm:$0xff]  ;;  %v1604_v58 = vld [vmem:[#allocation14 + $0xc8] sm:$0xff]  ;;  %v1603_v59 = vld [vmem:[#allocation14 + $0xc0] sm:$0xff] }
 0x2ab   : > { %1248 = vperm.xlu1 %4078, %v1226_v16   ;;  %1243 = vperm.xlu0 %4077, %v1225_v17   ;;  %v1606_v60 = vld [vmem:[#allocation14 + $0xd8] sm:$0xff]  ;;  %v1605_v61 = vld [vmem:[#allocation14 + $0xd0] sm:$0xff]  ;;  %v1608_v62 = vld [vmem:[#allocation14 + $0xe8] sm:$0xff] }
 0x2ac   : > { %v1607_v63 = vld [vmem:[#allocation14 + $0xe0] sm:$0xff]  ;;  %v1610_v1 = vld [vmem:[#allocation14 + $0xf8] sm:$0xff]  ;;  %v1609_v2 = vld [vmem:[#allocation14 + $0xf0] sm:$0xff] }
 0x2ad   : > { %v2173_v3 = vld [vmem:[#allocation17 + $0x8] sm:$0xff]  ;;  %v2172_v4 = vld [vmem:[#allocation17] sm:$0xff]  ;;  %v2175_v5 = vld [vmem:[#allocation17 + $0x18] sm:$0xff] }
 0x2ae   : > { %v2174_v6 = vld [vmem:[#allocation17 + $0x10] sm:$0xff]  ;;  %v2177_v7 = vld [vmem:[#allocation17 + $0x28] sm:$0xff]  ;;  %v2176_v8 = vld [vmem:[#allocation17 + $0x20] sm:$0xff] }
 0x2af   : > { %1258 = vperm.xlu1 %4078, %v1228_v18   ;;  %1253 = vperm.xlu0 %4077, %v1227_v19   ;;  %v2179_v9 = vld [vmem:[#allocation17 + $0x38] sm:$0xff]  ;;  %v2178_v10 = vld [vmem:[#allocation17 + $0x30] sm:$0xff]  ;;  %v2181_v11 = vld [vmem:[#allocation17 + $0x48] sm:$0xff] }
 0x2b0   : > { %3691 = vmatmul.mubr.msk.bf16.gmra.mrb[8].mxu0 %vm1092_vm1, %v4081_v20  ;;  %v2180_v12 = vld [vmem:[#allocation17 + $0x40] sm:$0xff]  ;;  %v2183_v13 = vld [vmem:[#allocation17 + $0x58] sm:$0xff]  ;;  %v2182_v14 = vld [vmem:[#allocation17 + $0x50] sm:$0xff] }
 0x2b1   : > { %1174 = vmatprep.mubr.bf16.mxu0 %v4897_v0  ;;  %v2185_v15 = vld [vmem:[#allocation17 + $0x68] sm:$0xff]  ;;  %v2184_v16 = vld [vmem:[#allocation17 + $0x60] sm:$0xff]  ;;  %v2187_v17 = vld [vmem:[#allocation17 + $0x78] sm:$0xff] }
 0x2b2   : > { %v2186_v18 = vld [vmem:[#allocation17 + $0x70] sm:$0xff]  ;;  %v2720_v19 = vld [vmem:[#allocation22 + $0x8] sm:$0xff]  ;;  %v2719_v20 = vld [vmem:[#allocation22] sm:$0xff] }
 0x2b3   : > { %1268 = vperm.xlu1 %4078, %v1230_v21   ;;  %1263 = vperm.xlu0 %4077, %v1229_v22   ;;  %v2722_v21 = vld [vmem:[#allocation22 + $0x18] sm:$0xff]  ;;  %v2721_v22 = vld [vmem:[#allocation22 + $0x10] sm:$0xff] }
 0x2b7   : > { %1278 = vperm.xlu1 %4078, %v1232_v23   ;;  %1273 = vperm.xlu0 %4077, %v1231_v24   ;;  %v2724_v23 = vld [vmem:[#allocation22 + $0x28] sm:$0xff]  ;;  %v2723_v24 = vld [vmem:[#allocation22 + $0x20] sm:$0xff] }
 0x2b8   : > { %3692 = vmatmul.mubr.msk.bf16.gmra.mrb[12].mxu0 %vm1092_vm1, %v4082_v25  ;;  %v2726_v25 = vld [vmem:[#allocation22 + $0x38] sm:$0xff] }
 0x2b9   : > { %1899 = vmatprep.mubr.bf16.mxu0 %v4897_v0 }
 0x2bb   : > { %1288 = vperm.xlu1 %4078, %v1234_v26   ;;  %1283 = vperm.xlu0 %4077, %v1233_v27   ;;  %v2725_v26 = vld [vmem:[#allocation22 + $0x30] sm:$0xff]  ;;  %v3034_v27 = vld [vmem:[#allocation26 + $0x8] sm:$0xff] }
 0x2bf   : > { %1298 = vperm.xlu1 %4078, %v1236_v28   ;;  %1293 = vperm.xlu0 %4077, %v1235_v29   ;;  %v3033_v28 = vld [vmem:[#allocation26] sm:$0xff]  ;;  %v3036_v29 = vld [vmem:[#allocation26 + $0x18] sm:$0xff] }
 0x2c3   : > { %1308 = vperm.xlu1 %4078, %v1238_v30   ;;  %1303 = vperm.xlu0 %4077, %v1237_v31   ;;  %v3035_v30 = vld [vmem:[#allocation26 + $0x10] sm:$0xff]  ;;  %v3038_v31 = vld [vmem:[#allocation26 + $0x28] sm:$0xff] }
 0x2c7   : > { %1318 = vperm.xlu1 %4078, %v1240_v32   ;;  %1313 = vperm.xlu0 %4077, %v1239_v33   ;;  %v3037_v32 = vld [vmem:[#allocation26 + $0x20] sm:$0xff]  ;;  %v3040_v33 = vld [vmem:[#allocation26 + $0x38] sm:$0xff] }
 0x2cb   : > { %1618 = vperm.xlu1 %4078, %v1580_v34   ;;  %1613 = vperm.xlu0 %4077, %v1579_v35   ;;  %v3039_v34 = vld [vmem:[#allocation26 + $0x30] sm:$0xff]  ;;  %v3122_v35 = vld [vmem:[#allocation29] sm:$0xff] }
 0x2cf   : > { %1628 = vperm.xlu1 %4078, %v1582_v36   ;;  %1623 = vperm.xlu0 %4077, %v1581_v37  }
 0x2d3   : > { %1638 = vperm.xlu1 %4078, %v1584_v38   ;;  %1633 = vperm.xlu0 %4077, %v1583_v39  }
 0x2d7   : > { %1648 = vperm.xlu1 %4078, %v1586_v40   ;;  %1643 = vperm.xlu0 %4077, %v1585_v41  }
 0x2db   : > { %1658 = vperm.xlu1 %4078, %v1588_v42   ;;  %1653 = vperm.xlu0 %4077, %v1587_v43  }
 0x2df   : > { %1668 = vperm.xlu1 %4078, %v1590_v44   ;;  %1663 = vperm.xlu0 %4077, %v1589_v45  }
 0x2e3   : > { %1678 = vperm.xlu1 %4078, %v1592_v46   ;;  %1673 = vperm.xlu0 %4077, %v1591_v47  }
 0x2e7   : > { %1688 = vperm.xlu1 %4078, %v1594_v48   ;;  %1683 = vperm.xlu0 %4077, %v1593_v49  }
 0x2eb   : > { %1698 = vperm.xlu1 %4078, %v1596_v50   ;;  %1693 = vperm.xlu0 %4077, %v1595_v51  }
 0x2ef   : > { %1708 = vperm.xlu1 %4078, %v1598_v52   ;;  %1703 = vperm.xlu0 %4077, %v1597_v53  }
 0x2f3   : > { %1718 = vperm.xlu1 %4078, %v1600_v54   ;;  %1713 = vperm.xlu0 %4077, %v1599_v55  }
 0x2f7   : > { %1728 = vperm.xlu1 %4078, %v1602_v56   ;;  %1723 = vperm.xlu0 %4077, %v1601_v57  }
 0x2fb   : > { %1738 = vperm.xlu1 %4078, %v1604_v58   ;;  %1733 = vperm.xlu0 %4077, %v1603_v59  }
 0x2ff   : > { %1748 = vperm.xlu1 %4078, %v1606_v60   ;;  %1743 = vperm.xlu0 %4077, %v1605_v61  }
 0x303   : > { %1758 = vperm.xlu1 %4078, %v1608_v62   ;;  %1753 = vperm.xlu0 %4077, %v1607_v63  }
 0x307   : > { %1768 = vperm.xlu1 %4078, %v1610_v1   ;;  %1763 = vperm.xlu0 %4077, %v1609_v2  }
 0x30b   : > { %2195 = vperm.xlu1 %4078, %v2173_v3   ;;  %2190 = vperm.xlu0 %4077, %v2172_v4  }
 0x30f   : > { %2205 = vperm.xlu1 %4078, %v2175_v5   ;;  %2200 = vperm.xlu0 %4077, %v2174_v6  }
 0x313   : > { %2215 = vperm.xlu1 %4078, %v2177_v7   ;;  %2210 = vperm.xlu0 %4077, %v2176_v8  }
 0x317   : > { %2225 = vperm.xlu1 %4078, %v2179_v9   ;;  %2220 = vperm.xlu0 %4077, %v2178_v10  }
 0x31a   : > { %v1035_v36 = vpop.permute.xlu0 %1034  ;;  %v1045_v45 = vpop.permute.xlu1 %1044 }
 0x31b   : > { %2235 = vperm.xlu1 %4078, %v2181_v11   ;;  %2230 = vperm.xlu0 %4077, %v2180_v12  }
 0x31e   : > { %v1040_v40 = vpop.permute.xlu0 %1039  ;;  %v1050_v56 = vpop.permute.xlu1 %1049 }
 0x31f   : > { %2245 = vperm.xlu1 %4078, %v2183_v13   ;;  %2240 = vperm.xlu0 %4077, %v2182_v14  }
 0x322   : > { %v1055_v4 = vpop.permute.xlu0 %1054  ;;  %v1060_v9 = vpop.permute.xlu1 %1059 }
 0x323   : > { %2255 = vperm.xlu1 %4078, %v2185_v15   ;;  %2250 = vperm.xlu0 %4077, %v2184_v16  }
 0x327   : > { %2265 = vperm.xlu1 %4078, %v2187_v17   ;;  %2260 = vperm.xlu0 %4077, %v2186_v18  }
 0x32b   : > { %2734 = vperm.xlu1 %4078, %v2720_v19   ;;  %2729 = vperm.xlu0 %4077, %v2719_v20   ;;  %v1065_v20 = vpop.permute.xlu0 %1064 }
 0x32f   : > { %2744 = vperm.xlu1 %4078, %v2722_v21   ;;  %2739 = vperm.xlu0 %4077, %v2721_v22  }
 0x333   : > { %2754 = vperm.xlu1 %4078, %v2724_v23   ;;  %2749 = vperm.xlu0 %4077, %v2723_v24  }
 0x337   : > { %2764 = vperm.xlu1 %4078, %v2726_v25   ;;  %2759 = vperm.xlu0 %4077, %v2725_v26   ;;  %v1070_v25 = vpop.permute.xlu1 %1069 }
 0x33b   : > { %3048 = vperm.xlu1 %4078, %v3034_v27   ;;  %3043 = vperm.xlu0 %4077, %v3033_v28  }
 0x33f   : > { %3058 = vperm.xlu1 %4078, %v3036_v29   ;;  %3053 = vperm.xlu0 %4077, %v3035_v30  }
 0x343   : > { %3068 = vperm.xlu1 %4078, %v3038_v31   ;;  %3063 = vperm.xlu0 %4077, %v3037_v32  }
 0x347   : > { %3078 = vperm.xlu1 %4078, %v3040_v33   ;;  %3073 = vperm.xlu0 %4077, %v3039_v34  }
 0x34b   : > { %3125 = vperm.xlu0 %4077, %v3122_v35  }
 0x373   : > { %v1146_v37 = vpop.f32.mrb[0].mxu0 }
 0x374   : > { %v1147_v38 = vadd.f32 %v1146_v37, %v1035_v36  ;;  %v1148_v39 = vpop.f32.mrb[1].mxu0  ;;  %v4083_v37 = vld [vmem:[#allocation10] sm:$0xff]  }
 0x375   : > { %v1149_v41 = vadd.f32 %v1148_v39, %v1035_v36  ;;  %v1150_v42 = vpop.f32.mrb[2].mxu0  ;;  %v4085_v39 = vld [vmem:[#allocation10 + $0x10] sm:$0xff]  }
 0x376   : > { %v1151_v43 = vadd.f32 %v1150_v42, %v1040_v40  ;;  %v1152_v44 = vpop.f32.mrb[3].mxu0  ;;  %v1185_v47 = vmax.f32 %v1147_v38, 0.0  ;;  %v4084_v38 = vld [vmem:[#allocation10 + $0x8] sm:$0xff]  }
 0x377   : > { %v1153_v46 = vadd.f32 %v1152_v44, %v1040_v40  ;;  %v1186_v49 = vmax.f32 %v1149_v41, 0.0  ;;  %v4086_v40 = vld [vmem:[#allocation10 + $0x18] sm:$0xff]   ;;  %v4087_v41 = vld [vmem:[#allocation10 + $0x20] sm:$0xff]   ;;  %v4088_v42 = vld [vmem:[#allocation10 + $0x28] sm:$0xff]  }
 0x378   : > { %v1187_v48 = vmax.f32 %v1151_v43, 0.0  ;;  %v4089_v43 = vld [vmem:[#allocation10 + $0x30] sm:$0xff]   ;;  %v4090_v44 = vld [vmem:[#allocation10 + $0x38] sm:$0xff]  }
 0x379   : > { %v1188_v50 = vmax.f32 %v1153_v46, 0.0 }
 0x37a   : > { %v5698_v51 = vpack.c.bf16 %v1187_v48, %v1185_v47 }
 0x37b   : > { %v1156_v52 = vpop.f32.mrb[4].mxu0  ;;  %v5700_v53 = vpack.c.bf16 %v1188_v50, %v1186_v49  ;;  %v1249_v49 = vpop.permute.xlu1 %1248 }
 0x37c   : > { %v1157_v54 = vadd.f32 %v1156_v52, %v1045_v45  ;;  %v1158_v55 = vpop.f32.mrb[5].mxu0 }
 0x37d   : > { %v1159_v57 = vadd.f32 %v1158_v55, %v1045_v45  ;;  %v1160_v58 = vpop.f32.mrb[6].mxu0  ;;  %1386 = vmatprep.subr.bf16.mxu1 %v5700_v53  ;;  %v1244_v45 = vpop.permute.xlu0 %1243 }
 0x37e   : > { %v1161_v59 = vadd.f32 %v1160_v58, %v1050_v56  ;;  %v1162_v60 = vpop.f32.mrb[7].mxu0  ;;  %1387 = vmatpush1.bf16.msra.mxu1 %v5698_v51  ;;  %v1189_v62 = vmax.f32 %v1157_v54, 0.0 }
 0x37f   : > { %v1163_v61 = vadd.f32 %v1162_v60, %v1050_v56  ;;  %v1190_v1 = vmax.f32 %v1159_v57, 0.0 }
 0x380   : > { %v1191_v63 = vmax.f32 %v1161_v59, 0.0 }
 0x381   : > { %v1192_v2 = vmax.f32 %v1163_v61, 0.0 }
 0x382   : > { %v5704_v3 = vpack.c.bf16 %v1191_v63, %v1189_v62  ;;  %v1254_v62 = vpop.permute.xlu0 %1253 }
 0x383   : > { %v5706_v5 = vpack.c.bf16 %v1192_v2, %v1190_v1  ;;  %v1166_v6 = vpop.f32.mrb[8].mxu0 }
 0x384   : > { %v1167_v7 = vadd.f32 %v1166_v6, %v1055_v4  ;;  %v1168_v8 = vpop.f32.mrb[9].mxu0  ;;  %v1259_v6 = vpop.permute.xlu1 %1258 }
 0x385   : > { %v1169_v10 = vadd.f32 %v1168_v8, %v1055_v4  ;;  %v1170_v11 = vpop.f32.mrb[10].mxu0  ;;  %1388 = vmatprep.subr.bf16.mxu1 %v5706_v5 }
 0x386   : > { %v1171_v12 = vadd.f32 %v1170_v11, %v1060_v9  ;;  %v1172_v13 = vpop.f32.mrb[11].mxu0  ;;  %1389 = vmatpush1.bf16.msra.mxu1 %v5704_v3  ;;  %v1193_v15 = vmax.f32 %v1167_v7, 0.0 }
 0x387   : > { %v1173_v14 = vadd.f32 %v1172_v13, %v1060_v9  ;;  %v1194_v17 = vmax.f32 %v1169_v10, 0.0 }
 0x388   : > { %v1195_v16 = vmax.f32 %v1171_v12, 0.0 }
 0x389   : > { %v1196_v18 = vmax.f32 %v1173_v14, 0.0 }
 0x38a   : > { %v5710_v19 = vpack.c.bf16 %v1195_v16, %v1193_v15 }
 0x38b   : > { %v5712_v21 = vpack.c.bf16 %v1196_v18, %v1194_v17  ;;  %v1176_v22 = vpop.f32.mrb[12].mxu0  ;;  %v1264_v17 = vpop.permute.xlu0 %1263 }
 0x38c   : > { %v1177_v23 = vadd.f32 %v1176_v22, %v1065_v20  ;;  %v1178_v24 = vpop.f32.mrb[13].mxu0 }
 0x38d   : > { %v1179_v26 = vadd.f32 %v1178_v24, %v1065_v20  ;;  %v1180_v27 = vpop.f32.mrb[14].mxu0  ;;  %1390 = vmatprep.subr.bf16.mxu1 %v5712_v21  ;;  %v1269_v24 = vpop.permute.xlu1 %1268 }
 0x38e   : > { %v1181_v28 = vadd.f32 %v1180_v27, %v1070_v25  ;;  %v1182_v29 = vpop.f32.mrb[15].mxu0  ;;  %1391 = vmatpush1.bf16.msra.mxu1 %v5710_v19  ;;  %v1197_v31 = vmax.f32 %v1177_v23, 0.0 }
 0x38f   : > { %v1183_v30 = vadd.f32 %v1182_v29, %v1070_v25  ;;  %v1198_v33 = vmax.f32 %v1179_v26, 0.0 }
 0x390   : > { %v1199_v32 = vmax.f32 %v1181_v28, 0.0 }
 0x391   : > { %v1200_v34 = vmax.f32 %v1183_v30, 0.0 }
 0x392   : > { %v5716_v35 = vpack.c.bf16 %v1199_v32, %v1197_v31 }
 0x393   : > { %v5718_v36 = vpack.c.bf16 %v1200_v34, %v1198_v33 }
 0x395   : > { %1392 = vmatprep.subr.bf16.mxu1 %v5718_v36 }
 0x396   : > { %1393 = vmatpush1.bf16.msra.mxu1 %v5716_v35 }
 0x399   : > { %3701 = vmatmul.mubr.msk.bf16.vlgmr.msra.gmra.mrb[0].mxu1 %vm1361_vm2, %v4083_v37  ;;  %v1274_v37 = vpop.permute.xlu0 %1273 }
 0x39a   : > { %1428 = vmatprep.mubr.bf16.mxu1 %v4897_v0 }
 0x3a1   : > { %3702 = vmatmul.mubr.msk.bf16.gmra.mrb[4].mxu1 %vm1361_vm2, %v4084_v38 }
 0x3a2   : > { %1438 = vmatprep.mubr.bf16.mxu1 %v4897_v0 }
 0x3a9   : > { %3703 = vmatmul.mubr.msk.bf16.gmra.mrb[8].mxu1 %vm1361_vm2, %v4085_v39 }
 0x3aa   : > { %1448 = vmatprep.mubr.bf16.mxu1 %v4897_v0 }
 0x3b1   : > { %3704 = vmatmul.mubr.msk.bf16.gmra.mrb[12].mxu1 %vm1361_vm2, %v4086_v40 }
 0x3b2   : > { %1458 = vmatprep.mubr.bf16.mxu1 %v4897_v0 }
 0x3b9   : > { %3705 = vmatmul.mubr.msk.bf16.gmra.mrb[16].mxu1 %vm1361_vm2, %v4087_v41 }
 0x3ba   : > { %1468 = vmatprep.mubr.bf16.mxu1 %v4897_v0 }
 0x3c1   : > { %3706 = vmatmul.mubr.msk.bf16.gmra.mrb[20].mxu1 %vm1361_vm2, %v4088_v42  ;;  %v1279_v42 = vpop.permute.xlu1 %1278 }
 0x3c2   : > { %1478 = vmatprep.mubr.bf16.mxu1 %v4897_v0 }
 0x3c9   : > { %3707 = vmatmul.mubr.msk.bf16.gmra.mrb[24].mxu1 %vm1361_vm2, %v4089_v43 }
 0x3ca   : > { %1488 = vmatprep.mubr.bf16.mxu1 %v4897_v0 }
 0x3d1   : > { %3708 = vmatmul.mubr.msk.bf16.gmra.mrb[28].mxu1 %vm1361_vm2, %v4090_v44 }
 0x46c   : > { %v1420_v46 = vpop.f32.mrb[0].mxu1 }
 0x46d   : > { %v1421_v47 = vadd.f32 %v1420_v46, %v1244_v45  ;;  %v1422_v48 = vpop.f32.mrb[1].mxu1 }
 0x46e   : > { %v1423_v50 = vadd.f32 %v1422_v48, %v1244_v45  ;;  %v1424_v52 = vpop.f32.mrb[2].mxu1 }
 0x46f   : > { %v1425_v54 = vadd.f32 %v1424_v52, %v1249_v49  ;;  %v1426_v55 = vpop.f32.mrb[3].mxu1  ;;  %v1499_v57 = vmax.f32 %v1421_v47, 0.0 }
 0x470   : > { %v1427_v56 = vadd.f32 %v1426_v55, %v1249_v49  ;;  %v1500_v59 = vmax.f32 %v1423_v50, 0.0  ;;  %v1284_v55 = vpop.permute.xlu0 %1283 }
 0x471   : > { %v1501_v58 = vmax.f32 %v1425_v54, 0.0 }
 0x472   : > { %v1502_v60 = vmax.f32 %v1427_v56, 0.0 }
 0x473   : > { %v5737_v61 = vpack.c.bf16 %v1501_v58, %v1499_v57 }
 0x474   : > { %v5739_v63 = vpack.c.bf16 %v1502_v60, %v1500_v59  ;;  %v1430_v1 = vpop.f32.mrb[4].mxu1  ;;  %v1289_v60 = vpop.permute.xlu1 %1288 }
 0x475   : > { %v1431_v2 = vadd.f32 %v1430_v1, %v1254_v62  ;;  %v1432_v4 = vpop.f32.mrb[5].mxu1 }
 0x476   : > { %v1433_v7 = vadd.f32 %v1432_v4, %v1254_v62  ;;  %v1434_v8 = vpop.f32.mrb[6].mxu1  ;;  %1867 = vmatprep.subr.bf16.mxu0 %v5739_v63 }
 0x477   : > { %v1435_v9 = vadd.f32 %v1434_v8, %v1259_v6  ;;  %v1436_v10 = vpop.f32.mrb[7].mxu1  ;;  %1868 = vmatpush1.bf16.msra.mxu0 %v5737_v61  ;;  %v1503_v12 = vmax.f32 %v1431_v2, 0.0 }
 0x478   : > { %v1437_v11 = vadd.f32 %v1436_v10, %v1259_v6  ;;  %v1504_v14 = vmax.f32 %v1433_v7, 0.0 }
 0x479   : > { %v1505_v13 = vmax.f32 %v1435_v9, 0.0 }
 0x47a   : > { %v1506_v15 = vmax.f32 %v1437_v11, 0.0 }
 0x47b   : > { %v5743_v16 = vpack.c.bf16 %v1505_v13, %v1503_v12  ;;  %v1294_v12 = vpop.permute.xlu0 %1293 }
 0x47c   : > { %v5745_v18 = vpack.c.bf16 %v1506_v15, %v1504_v14  ;;  %v1440_v20 = vpop.f32.mrb[8].mxu1 }
 0x47d   : > { %v1441_v22 = vadd.f32 %v1440_v20, %v1264_v17  ;;  %v1442_v23 = vpop.f32.mrb[9].mxu1  ;;  %v1299_v20 = vpop.permute.xlu1 %1298 }
 0x47e   : > { %v1443_v25 = vadd.f32 %v1442_v23, %v1264_v17  ;;  %v1444_v26 = vpop.f32.mrb[10].mxu1  ;;  %1869 = vmatprep.subr.bf16.mxu0 %v5745_v18 }
 0x47f   : > { %v1445_v27 = vadd.f32 %v1444_v26, %v1269_v24  ;;  %v1446_v28 = vpop.f32.mrb[11].mxu1  ;;  %1870 = vmatpush1.bf16.msra.mxu0 %v5743_v16  ;;  %v1507_v30 = vmax.f32 %v1441_v22, 0.0 }
 0x480   : > { %v1447_v29 = vadd.f32 %v1446_v28, %v1269_v24  ;;  %v1508_v32 = vmax.f32 %v1443_v25, 0.0 }
 0x481   : > { %v1509_v31 = vmax.f32 %v1445_v27, 0.0 }
 0x482   : > { %v1510_v33 = vmax.f32 %v1447_v29, 0.0 }
 0x483   : > { %v5749_v34 = vpack.c.bf16 %v1509_v31, %v1507_v30 }
 0x484   : > { %v5751_v38 = vpack.c.bf16 %v1510_v33, %v1508_v32  ;;  %v1450_v39 = vpop.f32.mrb[12].mxu1  ;;  %v1304_v32 = vpop.permute.xlu0 %1303 }
 0x485   : > { %v1451_v40 = vadd.f32 %v1450_v39, %v1274_v37  ;;  %v1452_v41 = vpop.f32.mrb[13].mxu1 }
 0x486   : > { %v1453_v43 = vadd.f32 %v1452_v41, %v1274_v37  ;;  %v1454_v44 = vpop.f32.mrb[14].mxu1  ;;  %1871 = vmatprep.subr.bf16.mxu0 %v5751_v38  ;;  %v1309_v41 = vpop.permute.xlu1 %1308 }
 0x487   : > { %v1455_v45 = vadd.f32 %v1454_v44, %v1279_v42  ;;  %v1456_v46 = vpop.f32.mrb[15].mxu1  ;;  %1872 = vmatpush1.bf16.msra.mxu0 %v5749_v34  ;;  %v1511_v48 = vmax.f32 %v1451_v40, 0.0 }
 0x488   : > { %v1457_v47 = vadd.f32 %v1456_v46, %v1279_v42  ;;  %v1512_v50 = vmax.f32 %v1453_v43, 0.0 }
 0x489   : > { %v1513_v49 = vmax.f32 %v1455_v45, 0.0 }
 0x48a   : > { %v1514_v52 = vmax.f32 %v1457_v47, 0.0 }
 0x48b   : > { %v5755_v54 = vpack.c.bf16 %v1513_v49, %v1511_v48 }
 0x48c   : > { %v5757_v56 = vpack.c.bf16 %v1514_v52, %v1512_v50  ;;  %v1460_v57 = vpop.f32.mrb[16].mxu1 }
 0x48d   : > { %v1461_v58 = vadd.f32 %v1460_v57, %v1284_v55  ;;  %v1462_v59 = vpop.f32.mrb[17].mxu1 }
 0x48e   : > { %v1463_v62 = vadd.f32 %v1462_v59, %v1284_v55  ;;  %v1464_v1 = vpop.f32.mrb[18].mxu1  ;;  %1873 = vmatprep.subr.bf16.mxu0 %v5757_v56  ;;  %v1314_v55 = vpop.permute.xlu0 %1313 }
 0x48f   : > { %v1465_v2 = vadd.f32 %v1464_v1, %v1289_v60  ;;  %v1466_v4 = vpop.f32.mrb[19].mxu1  ;;  %1874 = vmatpush1.bf16.msra.mxu0 %v5755_v54  ;;  %v1515_v7 = vmax.f32 %v1461_v58, 0.0 }
 0x490   : > { %v1467_v6 = vadd.f32 %v1466_v4, %v1289_v60  ;;  %v1516_v9 = vmax.f32 %v1463_v62, 0.0  ;;  %v1319_v62 = vpop.permute.xlu1 %1318 }
 0x491   : > { %v1517_v8 = vmax.f32 %v1465_v2, 0.0 }
 0x492   : > { %v1518_v10 = vmax.f32 %v1467_v6, 0.0 }
 0x493   : > { %v5761_v11 = vpack.c.bf16 %v1517_v8, %v1515_v7 }
 0x494   : > { %v5763_v13 = vpack.c.bf16 %v1518_v10, %v1516_v9  ;;  %v1470_v14 = vpop.f32.mrb[20].mxu1 }
 0x495   : > { %v1471_v15 = vadd.f32 %v1470_v14, %v1294_v12  ;;  %v1472_v17 = vpop.f32.mrb[21].mxu1 }
 0x496   : > { %v1473_v22 = vadd.f32 %v1472_v17, %v1294_v12  ;;  %v1474_v23 = vpop.f32.mrb[22].mxu1  ;;  %1875 = vmatprep.subr.bf16.mxu0 %v5763_v13  ;;  %v4091_v17 = vld [vmem:[#allocation13] sm:$0xff]  }
 0x497   : > { %v1475_v24 = vadd.f32 %v1474_v23, %v1299_v20  ;;  %v1476_v25 = vpop.f32.mrb[23].mxu1  ;;  %1876 = vmatpush1.bf16.msra.mxu0 %v5761_v11  ;;  %v1519_v27 = vmax.f32 %v1471_v15, 0.0  ;;  %v4094_v23 = vld [vmem:[#allocation13 + $0x18] sm:$0xff]  }
 0x498   : > { %v1477_v26 = vadd.f32 %v1476_v25, %v1299_v20  ;;  %v1520_v29 = vmax.f32 %v1473_v22, 0.0  ;;  %v4092_v20 = vld [vmem:[#allocation13 + $0x8] sm:$0xff]   ;;  %v4093_v22 = vld [vmem:[#allocation13 + $0x10] sm:$0xff]  }
 0x499   : > { %v1521_v28 = vmax.f32 %v1475_v24, 0.0  ;;  %v4095_v24 = vld [vmem:[#allocation13 + $0x20] sm:$0xff]   ;;  %v4096_v25 = vld [vmem:[#allocation13 + $0x28] sm:$0xff]  }
 0x49a   : > { %v1522_v30 = vmax.f32 %v1477_v26, 0.0  ;;  %v4097_v26 = vld [vmem:[#allocation13 + $0x30] sm:$0xff]  }
 0x49b   : > { %v5767_v31 = vpack.c.bf16 %v1521_v28, %v1519_v27  ;;  %v4098_v27 = vld [vmem:[#allocation13 + $0x38] sm:$0xff]   ;;  %v4099_v28 = vld [vmem:[#allocation13 + $0x40] sm:$0xff]  }
 0x49c   : > { %v5769_v33 = vpack.c.bf16 %v1522_v30, %v1520_v29  ;;  %v1480_v37 = vpop.f32.mrb[24].mxu1  ;;  %v4100_v29 = vld [vmem:[#allocation13 + $0x48] sm:$0xff]   ;;  %v4101_v30 = vld [vmem:[#allocation13 + $0x50] sm:$0xff]  }
 0x49d   : > { %v1481_v39 = vadd.f32 %v1480_v37, %v1304_v32  ;;  %v1482_v40 = vpop.f32.mrb[25].mxu1  ;;  %v4103_v37 = vld [vmem:[#allocation13 + $0x60] sm:$0xff]  }
 0x49e   : > { %v1483_v42 = vadd.f32 %v1482_v40, %v1304_v32  ;;  %v1484_v43 = vpop.f32.mrb[26].mxu1  ;;  %1877 = vmatprep.subr.bf16.mxu0 %v5769_v33  ;;  %v4102_v32 = vld [vmem:[#allocation13 + $0x58] sm:$0xff]   ;;  %v4105_v40 = vld [vmem:[#allocation13 + $0x70] sm:$0xff]  }
 0x49f   : > { %v1485_v44 = vadd.f32 %v1484_v43, %v1309_v41  ;;  %v1486_v45 = vpop.f32.mrb[27].mxu1  ;;  %1878 = vmatpush1.bf16.msra.mxu0 %v5767_v31  ;;  %v1523_v47 = vmax.f32 %v1481_v39, 0.0  ;;  %v4104_v39 = vld [vmem:[#allocation13 + $0x68] sm:$0xff]  }
 0x4a0   : > { %v1487_v46 = vadd.f32 %v1486_v45, %v1309_v41  ;;  %v1524_v49 = vmax.f32 %v1483_v42, 0.0  ;;  %v4106_v41 = vld [vmem:[#allocation13 + $0x78] sm:$0xff]   ;;  %v1614_v42 = vpop.permute.xlu0 %1613 }
 0x4a1   : > { %v1525_v48 = vmax.f32 %v1485_v44, 0.0 }
 0x4a2   : > { %v1526_v50 = vmax.f32 %v1487_v46, 0.0  ;;  %v1619_v46 = vpop.permute.xlu1 %1618 }
 0x4a3   : > { %v5773_v52 = vpack.c.bf16 %v1525_v48, %v1523_v47 }
 0x4a4   : > { %v5775_v57 = vpack.c.bf16 %v1526_v50, %v1524_v49  ;;  %v1490_v58 = vpop.f32.mrb[28].mxu1 }
 0x4a5   : > { %v1491_v59 = vadd.f32 %v1490_v58, %v1314_v55  ;;  %v1492_v60 = vpop.f32.mrb[29].mxu1 }
 0x4a6   : > { %v1493_v1 = vadd.f32 %v1492_v60, %v1314_v55  ;;  %v1494_v2 = vpop.f32.mrb[30].mxu1  ;;  %1879 = vmatprep.subr.bf16.mxu0 %v5775_v57  ;;  %v4109_v55 = vld [vmem:[#allocation16 + $0x4] ss:$8 sps:$4 sm:$0xff]  }
 0x4a7   : > { %v1495_v4 = vadd.f32 %v1494_v2, %v1319_v62  ;;  %v1496_v6 = vpop.f32.mrb[31].mxu1  ;;  %1880 = vmatpush1.bf16.msra.mxu0 %v5773_v52  ;;  %v1527_v8 = vmax.f32 %v1491_v59, 0.0  ;;  %2380 = vmatprep.mubr.bf16.mxu1 %v4109_v55 }
 0x4a8   : > { %v1497_v7 = vadd.f32 %v1496_v6, %v1319_v62  ;;  %v1528_v10 = vmax.f32 %v1493_v1, 0.0 }
 0x4a9   : > { %v1529_v9 = vmax.f32 %v1495_v4, 0.0  ;;  %v1624_v4 = vpop.permute.xlu0 %1623 }
 0x4aa   : > { %v1530_v12 = vmax.f32 %v1497_v7, 0.0 }
 0x4ab   : > { %v5779_v14 = vpack.c.bf16 %v1529_v9, %v1527_v8 }
 0x4ac   : > { %v5781_v15 = vpack.c.bf16 %v1530_v12, %v1528_v10  ;;  %v1629_v10 = vpop.permute.xlu1 %1628 }
 0x4ae   : > { %1881 = vmatprep.subr.bf16.mxu0 %v5781_v15 }
 0x4af   : > { %1882 = vmatpush1.bf16.msra.mxu0 %v5779_v14 }
 0x4b2   : > { %1900 = vmatmul.mubr.bf16.vlgmr.msra.gmra.mrb[16].mxu0 %v4091_v17 }
 0x4b3   : > { %1909 = vmatprep.mubr.bf16.mxu0 %v4897_v0 }
 0x4ba   : > { %1910 = vmatmul.mubr.bf16.gmra.mrb[20].mxu0 %v4092_v20 }
 0x4bb   : > { %1919 = vmatprep.mubr.bf16.mxu0 %v4897_v0 }
 0x4c2   : > { %1920 = vmatmul.mubr.bf16.gmra.mrb[24].mxu0 %v4093_v22 }
 0x4c3   : > { %1929 = vmatprep.mubr.bf16.mxu0 %v4897_v0 }
 0x4ca   : > { %1930 = vmatmul.mubr.bf16.gmra.mrb[28].mxu0 %v4094_v23 }
 0x4cb   : > { %1939 = vmatprep.mubr.bf16.mxu0 %v4897_v0 }
 0x4d2   : > { %1940 = vmatmul.mubr.bf16.gmra.mrb[32].mxu0 %v4095_v24 }
 0x4d3   : > { %1949 = vmatprep.mubr.bf16.mxu0 %v4897_v0 }
 0x4da   : > { %1950 = vmatmul.mubr.bf16.gmra.mrb[36].mxu0 %v4096_v25 }
 0x4db   : > { %1959 = vmatprep.mubr.bf16.mxu0 %v4897_v0 }
 0x4e2   : > { %1960 = vmatmul.mubr.bf16.gmra.mrb[40].mxu0 %v4097_v26 }
 0x4e3   : > { %1969 = vmatprep.mubr.bf16.mxu0 %v4897_v0 }
 0x4ea   : > { %1970 = vmatmul.mubr.bf16.gmra.mrb[44].mxu0 %v4098_v27 }
 0x4eb   : > { %1979 = vmatprep.mubr.bf16.mxu0 %v4897_v0 }
 0x4f2   : > { %1980 = vmatmul.mubr.bf16.gmra.mrb[48].mxu0 %v4099_v28 }
 0x4f3   : > { %1989 = vmatprep.mubr.bf16.mxu0 %v4897_v0 }
 0x4fa   : > { %1990 = vmatmul.mubr.bf16.gmra.mrb[52].mxu0 %v4100_v29  ;;  %v1634_v29 = vpop.permute.xlu0 %1633 }
 0x4fb   : > { %1999 = vmatprep.mubr.bf16.mxu0 %v4897_v0 }
 0x4fe   : > { %v1644_v55 = vpop.permute.xlu0 %1643 }
 0x502   : > { %2000 = vmatmul.mubr.bf16.gmra.mrb[56].mxu0 %v4101_v30 }
 0x503   : > { %2009 = vmatprep.mubr.bf16.mxu0 %v4897_v0 }
 0x50a   : > { %2010 = vmatmul.mubr.bf16.gmra.mrb[60].mxu0 %v4102_v32 }
 0x50b   : > { %2019 = vmatprep.mubr.bf16.mxu0 %v4897_v0 }
 0x512   : > { %2020 = vmatmul.mubr.bf16.gmra.mrb[64].mxu0 %v4103_v37 }
 0x513   : > { %2029 = vmatprep.mubr.bf16.mxu0 %v4897_v0 }
 0x51a   : > { %2030 = vmatmul.mubr.bf16.gmra.mrb[68].mxu0 %v4104_v39 }
 0x51b   : > { %2039 = vmatprep.mubr.bf16.mxu0 %v4897_v0 }
 0x522   : > { %2040 = vmatmul.mubr.bf16.gmra.mrb[72].mxu0 %v4105_v40  ;;  %v1639_v40 = vpop.permute.xlu1 %1638 }
 0x523   : > { %2049 = vmatprep.mubr.bf16.mxu0 %v4897_v0 }
 0x52a   : > { %2050 = vmatmul.mubr.bf16.gmra.mrb[76].mxu0 %v4106_v41 }
 0x52b   : > { %2887 = vmatprep.mubr.bf16.mxu0 %v4897_v0 }
 0x585   : > { %v1901_v43 = vpop.f32.mrb[16].mxu0 }
 0x586   : > { %v1902_v44 = vadd.f32 %v1901_v43, %v1614_v42  ;;  %v1903_v45 = vpop.f32.mrb[17].mxu0 }
 0x587   : > { %v1904_v47 = vadd.f32 %v1903_v45, %v1614_v42  ;;  %v1905_v48 = vpop.f32.mrb[18].mxu0 }
 0x588   : > { %v1906_v49 = vadd.f32 %v1905_v48, %v1619_v46  ;;  %v1907_v50 = vpop.f32.mrb[19].mxu0  ;;  %v2060_v59 = vmax.f32 %v1902_v44, 0.0 }
 0x589   : > { %v1908_v58 = vadd.f32 %v1907_v50, %v1619_v46  ;;  %v2061_v62 = vmax.f32 %v1904_v47, 0.0 }
 0x58a   : > { %v2062_v60 = vmax.f32 %v1906_v49, 0.0 }
 0x58b   : > { %v2063_v1 = vmax.f32 %v1908_v58, 0.0 }
 0x58c   : > { %v2124_v2 = vpack.c.bf16 %v2062_v60, %v2060_v59 }
 0x58d   : > { %v2125_v6 = vpack.c.bf16 %v2063_v1, %v2061_v62  ;;  %v1911_v7 = vpop.f32.mrb[20].mxu0  ;;  %v1649_v1 = vpop.permute.xlu1 %1648 }
 0x58e   : > { %v1912_v8 = vadd.f32 %v1911_v7, %v1624_v4  ;;  %v1913_v9 = vpop.f32.mrb[21].mxu0 }
 0x58f   : > { %v1914_v12 = vadd.f32 %v1913_v9, %v1624_v4  ;;  %v1915_v17 = vpop.f32.mrb[22].mxu0  ;;  %2348 = vmatprep.subr.bf16.mxu1 %v2125_v6 }
 0x590   : > { %v1916_v20 = vadd.f32 %v1915_v17, %v1629_v10  ;;  %v1917_v22 = vpop.f32.mrb[23].mxu0  ;;  %2349 = vmatpush1.bf16.msra.mxu1 %v2124_v2  ;;  %v2064_v24 = vmax.f32 %v1912_v8, 0.0 }
 0x591   : > { %v1918_v23 = vadd.f32 %v1917_v22, %v1629_v10  ;;  %v2065_v26 = vmax.f32 %v1914_v12, 0.0  ;;  %v1654_v22 = vpop.permute.xlu0 %1653 }
 0x592   : > { %v2066_v25 = vmax.f32 %v1916_v20, 0.0 }
 0x593   : > { %v2067_v27 = vmax.f32 %v1918_v23, 0.0 }
 0x594   : > { %v2126_v28 = vpack.c.bf16 %v2066_v25, %v2064_v24 }
 0x595   : > { %v2127_v30 = vpack.c.bf16 %v2067_v27, %v2065_v26  ;;  %v1921_v32 = vpop.f32.mrb[24].mxu0  ;;  %v1659_v27 = vpop.permute.xlu1 %1658 }
 0x596   : > { %v1922_v37 = vadd.f32 %v1921_v32, %v1634_v29  ;;  %v1923_v39 = vpop.f32.mrb[25].mxu0 }
 0x597   : > { %v1924_v41 = vadd.f32 %v1923_v39, %v1634_v29  ;;  %v1925_v42 = vpop.f32.mrb[26].mxu0  ;;  %2350 = vmatprep.subr.bf16.mxu1 %v2127_v30 }
 0x598   : > { %v1926_v43 = vadd.f32 %v1925_v42, %v1639_v40  ;;  %v1927_v44 = vpop.f32.mrb[27].mxu0  ;;  %2351 = vmatpush1.bf16.msra.mxu1 %v2126_v28  ;;  %v2068_v46 = vmax.f32 %v1922_v37, 0.0 }
 0x599   : > { %v1928_v45 = vadd.f32 %v1927_v44, %v1639_v40  ;;  %v2069_v48 = vmax.f32 %v1924_v41, 0.0  ;;  %v1664_v44 = vpop.permute.xlu0 %1663 }
 0x59a   : > { %v2070_v47 = vmax.f32 %v1926_v43, 0.0 }
 0x59b   : > { %v2071_v49 = vmax.f32 %v1928_v45, 0.0 }
 0x59c   : > { %v2128_v50 = vpack.c.bf16 %v2070_v47, %v2068_v46 }
 0x59d   : > { %v2129_v58 = vpack.c.bf16 %v2071_v49, %v2069_v48  ;;  %v1931_v59 = vpop.f32.mrb[28].mxu0  ;;  %v1669_v49 = vpop.permute.xlu1 %1668 }
 0x59e   : > { %v1932_v60 = vadd.f32 %v1931_v59, %v1644_v55  ;;  %v1933_v62 = vpop.f32.mrb[29].mxu0 }
 0x59f   : > { %v1934_v2 = vadd.f32 %v1933_v62, %v1644_v55  ;;  %v1935_v4 = vpop.f32.mrb[30].mxu0  ;;  %2352 = vmatprep.subr.bf16.mxu1 %v2129_v58 }
 0x5a0   : > { %v1936_v6 = vadd.f32 %v1935_v4, %v1649_v1  ;;  %v1937_v7 = vpop.f32.mrb[31].mxu0  ;;  %2353 = vmatpush1.bf16.msra.mxu1 %v2128_v50  ;;  %v2072_v9 = vmax.f32 %v1932_v60, 0.0 }
 0x5a1   : > { %v1938_v8 = vadd.f32 %v1937_v7, %v1649_v1  ;;  %v2073_v12 = vmax.f32 %v1934_v2, 0.0  ;;  %v1674_v7 = vpop.permute.xlu0 %1673 }
 0x5a2   : > { %v2074_v10 = vmax.f32 %v1936_v6, 0.0 }
 0x5a3   : > { %v2075_v17 = vmax.f32 %v1938_v8, 0.0 }
 0x5a4   : > { %v2130_v20 = vpack.c.bf16 %v2074_v10, %v2072_v9 }
 0x5a5   : > { %v2131_v23 = vpack.c.bf16 %v2075_v17, %v2073_v12  ;;  %v1941_v24 = vpop.f32.mrb[32].mxu0  ;;  %v1679_v17 = vpop.permute.xlu1 %1678 }
 0x5a6   : > { %v1942_v25 = vadd.f32 %v1941_v24, %v1654_v22  ;;  %v1943_v26 = vpop.f32.mrb[33].mxu0 }
 0x5a7   : > { %v1944_v28 = vadd.f32 %v1943_v26, %v1654_v22  ;;  %v1945_v29 = vpop.f32.mrb[34].mxu0  ;;  %2354 = vmatprep.subr.bf16.mxu1 %v2131_v23 }
 0x5a8   : > { %v1946_v30 = vadd.f32 %v1945_v29, %v1659_v27  ;;  %v1947_v32 = vpop.f32.mrb[35].mxu0  ;;  %2355 = vmatpush1.bf16.msra.mxu1 %v2130_v20  ;;  %v2076_v39 = vmax.f32 %v1942_v25, 0.0 }
 0x5a9   : > { %v1948_v37 = vadd.f32 %v1947_v32, %v1659_v27  ;;  %v2077_v41 = vmax.f32 %v1944_v28, 0.0  ;;  %v1684_v32 = vpop.permute.xlu0 %1683 }
 0x5aa   : > { %v2078_v40 = vmax.f32 %v1946_v30, 0.0 }
 0x5ab   : > { %v2079_v42 = vmax.f32 %v1948_v37, 0.0 }
 0x5ac   : > { %v2132_v43 = vpack.c.bf16 %v2078_v40, %v2076_v39 }
 0x5ad   : > { %v2133_v45 = vpack.c.bf16 %v2079_v42, %v2077_v41  ;;  %v1951_v46 = vpop.f32.mrb[36].mxu0  ;;  %v1689_v42 = vpop.permute.xlu1 %1688 }
 0x5ae   : > { %v1952_v47 = vadd.f32 %v1951_v46, %v1664_v44  ;;  %v1953_v48 = vpop.f32.mrb[37].mxu0 }
 0x5af   : > { %v1954_v50 = vadd.f32 %v1953_v48, %v1664_v44  ;;  %v1955_v55 = vpop.f32.mrb[38].mxu0  ;;  %2356 = vmatprep.subr.bf16.mxu1 %v2133_v45 }
 0x5b0   : > { %v1956_v58 = vadd.f32 %v1955_v55, %v1669_v49  ;;  %v1957_v59 = vpop.f32.mrb[39].mxu0  ;;  %2357 = vmatpush1.bf16.msra.mxu1 %v2132_v43  ;;  %v2080_v62 = vmax.f32 %v1952_v47, 0.0 }
 0x5b1   : > { %v1958_v60 = vadd.f32 %v1957_v59, %v1669_v49  ;;  %v2081_v2 = vmax.f32 %v1954_v50, 0.0  ;;  %v1694_v59 = vpop.permute.xlu0 %1693 }
 0x5b2   : > { %v2082_v1 = vmax.f32 %v1956_v58, 0.0 }
 0x5b3   : > { %v2083_v4 = vmax.f32 %v1958_v60, 0.0 }
 0x5b4   : > { %v2134_v6 = vpack.c.bf16 %v2082_v1, %v2080_v62 }
 0x5b5   : > { %v2135_v8 = vpack.c.bf16 %v2083_v4, %v2081_v2  ;;  %v1961_v9 = vpop.f32.mrb[40].mxu0  ;;  %v1699_v4 = vpop.permute.xlu1 %1698 }
 0x5b6   : > { %v1962_v10 = vadd.f32 %v1961_v9, %v1674_v7  ;;  %v1963_v12 = vpop.f32.mrb[41].mxu0 }
 0x5b7   : > { %v1964_v20 = vadd.f32 %v1963_v12, %v1674_v7  ;;  %v1965_v22 = vpop.f32.mrb[42].mxu0  ;;  %2358 = vmatprep.subr.bf16.mxu1 %v2135_v8 }
 0x5b8   : > { %v1966_v23 = vadd.f32 %v1965_v22, %v1679_v17  ;;  %v1967_v24 = vpop.f32.mrb[43].mxu0  ;;  %2359 = vmatpush1.bf16.msra.mxu1 %v2134_v6  ;;  %v2084_v26 = vmax.f32 %v1962_v10, 0.0 }
 0x5b9   : > { %v1968_v25 = vadd.f32 %v1967_v24, %v1679_v17  ;;  %v2085_v28 = vmax.f32 %v1964_v20, 0.0  ;;  %v1704_v24 = vpop.permute.xlu0 %1703 }
 0x5ba   : > { %v2086_v27 = vmax.f32 %v1966_v23, 0.0 }
 0x5bb   : > { %v2087_v29 = vmax.f32 %v1968_v25, 0.0 }
 0x5bc   : > { %v2136_v30 = vpack.c.bf16 %v2086_v27, %v2084_v26 }
 0x5bd   : > { %v2137_v37 = vpack.c.bf16 %v2087_v29, %v2085_v28  ;;  %v1971_v39 = vpop.f32.mrb[44].mxu0  ;;  %v1709_v29 = vpop.permute.xlu1 %1708 }
 0x5be   : > { %v1972_v40 = vadd.f32 %v1971_v39, %v1684_v32  ;;  %v1973_v41 = vpop.f32.mrb[45].mxu0 }
 0x5bf   : > { %v1974_v43 = vadd.f32 %v1973_v41, %v1684_v32  ;;  %v1975_v44 = vpop.f32.mrb[46].mxu0  ;;  %2360 = vmatprep.subr.bf16.mxu1 %v2137_v37 }
 0x5c0   : > { %v1976_v45 = vadd.f32 %v1975_v44, %v1689_v42  ;;  %v1977_v46 = vpop.f32.mrb[47].mxu0  ;;  %2361 = vmatpush1.bf16.msra.mxu1 %v2136_v30  ;;  %v2088_v48 = vmax.f32 %v1972_v40, 0.0 }
 0x5c1   : > { %v1978_v47 = vadd.f32 %v1977_v46, %v1689_v42  ;;  %v2089_v50 = vmax.f32 %v1974_v43, 0.0  ;;  %v1714_v46 = vpop.permute.xlu0 %1713 }
 0x5c2   : > { %v2090_v49 = vmax.f32 %v1976_v45, 0.0 }
 0x5c3   : > { %v2091_v55 = vmax.f32 %v1978_v47, 0.0 }
 0x5c4   : > { %v2138_v58 = vpack.c.bf16 %v2090_v49, %v2088_v48 }
 0x5c5   : > { %v2139_v60 = vpack.c.bf16 %v2091_v55, %v2089_v50  ;;  %v1981_v62 = vpop.f32.mrb[48].mxu0  ;;  %v1719_v55 = vpop.permute.xlu1 %1718 }
 0x5c6   : > { %v1982_v1 = vadd.f32 %v1981_v62, %v1694_v59  ;;  %v1983_v2 = vpop.f32.mrb[49].mxu0 }
 0x5c7   : > { %v1984_v6 = vadd.f32 %v1983_v2, %v1694_v59  ;;  %v1985_v7 = vpop.f32.mrb[50].mxu0  ;;  %2362 = vmatprep.subr.bf16.mxu1 %v2139_v60 }
 0x5c8   : > { %v1986_v8 = vadd.f32 %v1985_v7, %v1699_v4  ;;  %v1987_v9 = vpop.f32.mrb[51].mxu0  ;;  %2363 = vmatpush1.bf16.msra.mxu1 %v2138_v58  ;;  %v2092_v12 = vmax.f32 %v1982_v1, 0.0 }
 0x5c9   : > { %v1988_v10 = vadd.f32 %v1987_v9, %v1699_v4  ;;  %v2093_v20 = vmax.f32 %v1984_v6, 0.0  ;;  %v1724_v9 = vpop.permute.xlu0 %1723 }
 0x5ca   : > { %v2094_v17 = vmax.f32 %v1986_v8, 0.0 }
 0x5cb   : > { %v2095_v22 = vmax.f32 %v1988_v10, 0.0 }
 0x5cc   : > { %v2140_v23 = vpack.c.bf16 %v2094_v17, %v2092_v12 }
 0x5cd   : > { %v2141_v25 = vpack.c.bf16 %v2095_v22, %v2093_v20  ;;  %v1991_v26 = vpop.f32.mrb[52].mxu0  ;;  %v1729_v22 = vpop.permute.xlu1 %1728 }
 0x5ce   : > { %v1992_v27 = vadd.f32 %v1991_v26, %v1704_v24  ;;  %v1993_v28 = vpop.f32.mrb[53].mxu0 }
 0x5cf   : > { %v1994_v30 = vadd.f32 %v1993_v28, %v1704_v24  ;;  %v1995_v32 = vpop.f32.mrb[54].mxu0  ;;  %2364 = vmatprep.subr.bf16.mxu1 %v2141_v25 }
 0x5d0   : > { %v1996_v37 = vadd.f32 %v1995_v32, %v1709_v29  ;;  %v1997_v39 = vpop.f32.mrb[55].mxu0  ;;  %2365 = vmatpush1.bf16.msra.mxu1 %v2140_v23  ;;  %v2096_v41 = vmax.f32 %v1992_v27, 0.0 }
 0x5d1   : > { %v1998_v40 = vadd.f32 %v1997_v39, %v1709_v29  ;;  %v2097_v43 = vmax.f32 %v1994_v30, 0.0  ;;  %v1734_v39 = vpop.permute.xlu0 %1733 }
 0x5d2   : > { %v2098_v42 = vmax.f32 %v1996_v37, 0.0 }
 0x5d3   : > { %v2099_v44 = vmax.f32 %v1998_v40, 0.0 }
 0x5d4   : > { %v2142_v45 = vpack.c.bf16 %v2098_v42, %v2096_v41 }
 0x5d5   : > { %v2143_v47 = vpack.c.bf16 %v2099_v44, %v2097_v43  ;;  %v2001_v48 = vpop.f32.mrb[56].mxu0  ;;  %v1739_v44 = vpop.permute.xlu1 %1738 }
 0x5d6   : > { %v2002_v49 = vadd.f32 %v2001_v48, %v1714_v46  ;;  %v2003_v50 = vpop.f32.mrb[57].mxu0 }
 0x5d7   : > { %v2004_v58 = vadd.f32 %v2003_v50, %v1714_v46  ;;  %v2005_v59 = vpop.f32.mrb[58].mxu0  ;;  %2366 = vmatprep.subr.bf16.mxu1 %v2143_v47 }
 0x5d8   : > { %v2006_v60 = vadd.f32 %v2005_v59, %v1719_v55  ;;  %v2007_v62 = vpop.f32.mrb[59].mxu0  ;;  %2367 = vmatpush1.bf16.msra.mxu1 %v2142_v45  ;;  %v2100_v2 = vmax.f32 %v2002_v49, 0.0 }
 0x5d9   : > { %v2008_v1 = vadd.f32 %v2007_v62, %v1719_v55  ;;  %v2101_v6 = vmax.f32 %v2004_v58, 0.0  ;;  %v1744_v62 = vpop.permute.xlu0 %1743 }
 0x5da   : > { %v2102_v4 = vmax.f32 %v2006_v60, 0.0 }
 0x5db   : > { %v2103_v7 = vmax.f32 %v2008_v1, 0.0 }
 0x5dc   : > { %v2144_v8 = vpack.c.bf16 %v2102_v4, %v2100_v2 }
 0x5dd   : > { %v2145_v10 = vpack.c.bf16 %v2103_v7, %v2101_v6  ;;  %v2011_v12 = vpop.f32.mrb[60].mxu0  ;;  %v1749_v7 = vpop.permute.xlu1 %1748 }
 0x5de   : > { %v2012_v17 = vadd.f32 %v2011_v12, %v1724_v9  ;;  %v2013_v20 = vpop.f32.mrb[61].mxu0 }
 0x5df   : > { %v2014_v23 = vadd.f32 %v2013_v20, %v1724_v9  ;;  %v2015_v24 = vpop.f32.mrb[62].mxu0  ;;  %2368 = vmatprep.subr.bf16.mxu1 %v2145_v10 }
 0x5e0   : > { %v2016_v25 = vadd.f32 %v2015_v24, %v1729_v22  ;;  %v2017_v26 = vpop.f32.mrb[63].mxu0  ;;  %2369 = vmatpush1.bf16.msra.mxu1 %v2144_v8  ;;  %v2104_v28 = vmax.f32 %v2012_v17, 0.0 }
 0x5e1   : > { %v2018_v27 = vadd.f32 %v2017_v26, %v1729_v22  ;;  %v2105_v30 = vmax.f32 %v2014_v23, 0.0  ;;  %v1754_v26 = vpop.permute.xlu0 %1753 }
 0x5e2   : > { %v2106_v29 = vmax.f32 %v2016_v25, 0.0 }
 0x5e3   : > { %v2107_v32 = vmax.f32 %v2018_v27, 0.0 }
 0x5e4   : > { %v2146_v37 = vpack.c.bf16 %v2106_v29, %v2104_v28 }
 0x5e5   : > { %v2147_v40 = vpack.c.bf16 %v2107_v32, %v2105_v30  ;;  %v2021_v41 = vpop.f32.mrb[64].mxu0  ;;  %v1759_v32 = vpop.permute.xlu1 %1758 }
 0x5e6   : > { %v2022_v42 = vadd.f32 %v2021_v41, %v1734_v39  ;;  %v2023_v43 = vpop.f32.mrb[65].mxu0 }
 0x5e7   : > { %v2024_v45 = vadd.f32 %v2023_v43, %v1734_v39  ;;  %v2025_v46 = vpop.f32.mrb[66].mxu0  ;;  %2370 = vmatprep.subr.bf16.mxu1 %v2147_v40 }
 0x5e8   : > { %v2026_v47 = vadd.f32 %v2025_v46, %v1739_v44  ;;  %v2027_v48 = vpop.f32.mrb[67].mxu0  ;;  %2371 = vmatpush1.bf16.msra.mxu1 %v2146_v37  ;;  %v2108_v50 = vmax.f32 %v2022_v42, 0.0 }
 0x5e9   : > { %v2028_v49 = vadd.f32 %v2027_v48, %v1739_v44  ;;  %v2109_v58 = vmax.f32 %v2024_v45, 0.0  ;;  %v1764_v48 = vpop.permute.xlu0 %1763 }
 0x5ea   : > { %v2110_v55 = vmax.f32 %v2026_v47, 0.0 }
 0x5eb   : > { %v2111_v59 = vmax.f32 %v2028_v49, 0.0 }
 0x5ec   : > { %v2148_v60 = vpack.c.bf16 %v2110_v55, %v2108_v50 }
 0x5ed   : > { %v2149_v1 = vpack.c.bf16 %v2111_v59, %v2109_v58  ;;  %v2031_v2 = vpop.f32.mrb[68].mxu0  ;;  %v1769_v59 = vpop.permute.xlu1 %1768 }
 0x5ee   : > { %v2032_v4 = vadd.f32 %v2031_v2, %v1744_v62  ;;  %v2033_v6 = vpop.f32.mrb[69].mxu0 }
 0x5ef   : > { %v2034_v8 = vadd.f32 %v2033_v6, %v1744_v62  ;;  %v2035_v9 = vpop.f32.mrb[70].mxu0  ;;  %2372 = vmatprep.subr.bf16.mxu1 %v2149_v1 }
 0x5f0   : > { %v2036_v10 = vadd.f32 %v2035_v9, %v1749_v7  ;;  %v2037_v12 = vpop.f32.mrb[71].mxu0  ;;  %2373 = vmatpush1.bf16.msra.mxu1 %v2148_v60  ;;  %v2112_v20 = vmax.f32 %v2032_v4, 0.0 }
 0x5f1   : > { %v2038_v17 = vadd.f32 %v2037_v12, %v1749_v7  ;;  %v2113_v23 = vmax.f32 %v2034_v8, 0.0 }
 0x5f2   : > { %v2114_v22 = vmax.f32 %v2036_v10, 0.0 }
 0x5f3   : > { %v2115_v24 = vmax.f32 %v2038_v17, 0.0  ;;  %v4107_v17 = vld [vmem:[#allocation16] ss:$8 sps:$4 sm:$0xff]  }
 0x5f4   : > { %v2150_v25 = vpack.c.bf16 %v2114_v22, %v2112_v20  ;;  %v4110_v20 = vld [vmem:[#allocation16 + $0x14] ss:$8 sps:$4 sm:$0xff]   ;;  %v4112_v22 = vld [vmem:[#allocation16 + $0x10] ss:$8 sps:$4 sm:$0xff]  }
 0x5f5   : > { %v2151_v27 = vpack.c.bf16 %v2115_v24, %v2113_v23  ;;  %v2041_v28 = vpop.f32.mrb[72].mxu0  ;;  %v4113_v23 = vld [vmem:[#allocation16 + $0x24] ss:$8 sps:$4 sm:$0xff]   ;;  %v4115_v24 = vld [vmem:[#allocation16 + $0x20] ss:$8 sps:$4 sm:$0xff]  }
 0x5f6   : > { %v2042_v29 = vadd.f32 %v2041_v28, %v1754_v26  ;;  %v2043_v30 = vpop.f32.mrb[73].mxu0  ;;  %v4121_v28 = vld [vmem:[#allocation16 + $0x40] ss:$8 sps:$4 sm:$0xff]  }
 0x5f7   : > { %v2044_v37 = vadd.f32 %v2043_v30, %v1754_v26  ;;  %v2045_v39 = vpop.f32.mrb[74].mxu0  ;;  %2374 = vmatprep.subr.bf16.mxu1 %v2151_v27  ;;  %v4118_v26 = vld [vmem:[#allocation16 + $0x30] ss:$8 sps:$4 sm:$0xff]   ;;  %v4119_v27 = vld [vmem:[#allocation16 + $0x44] ss:$8 sps:$4 sm:$0xff]  }
 0x5f8   : > { %v2046_v40 = vadd.f32 %v2045_v39, %v1759_v32  ;;  %v2047_v41 = vpop.f32.mrb[75].mxu0  ;;  %2375 = vmatpush1.bf16.msra.mxu1 %v2150_v25  ;;  %v2116_v43 = vmax.f32 %v2042_v29, 0.0  ;;  %v4116_v25 = vld [vmem:[#allocation16 + $0x34] ss:$8 sps:$4 sm:$0xff]   ;;  %v4124_v30 = vld [vmem:[#allocation16 + $0x50] ss:$8 sps:$4 sm:$0xff]  }
 0x5f9   : > { %v2048_v42 = vadd.f32 %v2047_v41, %v1759_v32  ;;  %v2117_v45 = vmax.f32 %v2044_v37, 0.0  ;;  %v4122_v29 = vld [vmem:[#allocation16 + $0x54] ss:$8 sps:$4 sm:$0xff]   ;;  %v4125_v32 = vld [vmem:[#allocation16 + $0x64] ss:$8 sps:$4 sm:$0xff]   ;;  %v2191_v41 = vpop.permute.xlu0 %2190 }
 0x5fa   : > { %v2118_v44 = vmax.f32 %v2046_v40, 0.0  ;;  %v4127_v37 = vld [vmem:[#allocation16 + $0x60] ss:$8 sps:$4 sm:$0xff]   ;;  %v4128_v39 = vld [vmem:[#allocation16 + $0x74] ss:$8 sps:$4 sm:$0xff]  }
 0x5fb   : > { %v2119_v46 = vmax.f32 %v2048_v42, 0.0  ;;  %v4130_v40 = vld [vmem:[#allocation16 + $0x70] ss:$8 sps:$4 sm:$0xff]  }
 0x5fc   : > { %v2152_v47 = vpack.c.bf16 %v2118_v44, %v2116_v43 }
 0x5fd   : > { %v2153_v49 = vpack.c.bf16 %v2119_v46, %v2117_v45  ;;  %v2051_v50 = vpop.f32.mrb[76].mxu0  ;;  %v2196_v45 = vpop.permute.xlu1 %2195 }
 0x5fe   : > { %v2052_v55 = vadd.f32 %v2051_v50, %v1764_v48  ;;  %v2053_v58 = vpop.f32.mrb[77].mxu0 }
 0x5ff   : > { %v2054_v60 = vadd.f32 %v2053_v58, %v1764_v48  ;;  %v2055_v62 = vpop.f32.mrb[78].mxu0  ;;  %2376 = vmatprep.subr.bf16.mxu1 %v2153_v49 }
 0x600   : > { %v2056_v1 = vadd.f32 %v2055_v62, %v1769_v59  ;;  %v2057_v2 = vpop.f32.mrb[79].mxu0  ;;  %2377 = vmatpush1.bf16.msra.mxu1 %v2152_v47  ;;  %v2120_v6 = vmax.f32 %v2052_v55, 0.0 }
 0x601   : > { %v2058_v4 = vadd.f32 %v2057_v2, %v1769_v59  ;;  %v2121_v8 = vmax.f32 %v2054_v60, 0.0 }
 0x602   : > { %v2122_v7 = vmax.f32 %v2056_v1, 0.0  ;;  %v2201_v1 = vpop.permute.xlu0 %2200 }
 0x603   : > { %v2123_v9 = vmax.f32 %v2058_v4, 0.0 }
 0x604   : > { %v2154_v10 = vpack.c.bf16 %v2122_v7, %v2120_v6 }
 0x605   : > { %v2155_v12 = vpack.c.bf16 %v2123_v9, %v2121_v8  ;;  %v2206_v8 = vpop.permute.xlu1 %2205 }
 0x607   : > { %2378 = vmatprep.subr.bf16.mxu1 %v2155_v12 }
 0x608   : > { %2379 = vmatpush1.bf16.msra.mxu1 %v2154_v10 }
 0x60b   : > { %2381 = vmatmul.mubr.bf16.vlgmr.msra.gmra.mrb[32].mxu1 %v4107_v17 }
 0x60c   : > { %2390 = vmatprep.mubr.bf16.mxu1 %v4110_v20 }
 0x613   : > { %2391 = vmatmul.mubr.bf16.gmra.mrb[36].mxu1 %v4112_v22 }
 0x614   : > { %2400 = vmatprep.mubr.bf16.mxu1 %v4113_v23 }
 0x61b   : > { %2401 = vmatmul.mubr.bf16.gmra.mrb[40].mxu1 %v4115_v24 }
 0x61c   : > { %2410 = vmatprep.mubr.bf16.mxu1 %v4116_v25 }
 0x623   : > { %2411 = vmatmul.mubr.bf16.gmra.mrb[44].mxu1 %v4118_v26 }
 0x624   : > { %2420 = vmatprep.mubr.bf16.mxu1 %v4119_v27  ;;  %v2211_v27 = vpop.permute.xlu0 %2210 }
 0x62b   : > { %2421 = vmatmul.mubr.bf16.gmra.mrb[48].mxu1 %v4121_v28 }
 0x62c   : > { %2430 = vmatprep.mubr.bf16.mxu1 %v4122_v29 }
 0x633   : > { %2431 = vmatmul.mubr.bf16.gmra.mrb[52].mxu1 %v4124_v30 }
 0x634   : > { %2440 = vmatprep.mubr.bf16.mxu1 %v4125_v32 }
 0x63b   : > { %2441 = vmatmul.mubr.bf16.gmra.mrb[56].mxu1 %v4127_v37  ;;  %v2216_v37 = vpop.permute.xlu1 %2215 }
 0x63c   : > { %2450 = vmatprep.mubr.bf16.mxu1 %v4128_v39 }
 0x643   : > { %2451 = vmatmul.mubr.bf16.gmra.mrb[60].mxu1 %v4130_v40 }
 0x644   : > { %2581 = vmatprep.mubr.bf16.mxu1 %v4897_v0 }
 0x6de   : > { %v2382_v42 = vpop.f32.mrb[32].mxu1 }
 0x6df   : > { %v2383_v43 = vadd.f32 %v2382_v42, %v2191_v41  ;;  %v2384_v44 = vpop.f32.mrb[33].mxu1 }
 0x6e0   : > { %v2385_v46 = vadd.f32 %v2384_v44, %v2191_v41  ;;  %v2386_v47 = vpop.f32.mrb[34].mxu1 }
 0x6e1   : > { %v2387_v48 = vadd.f32 %v2386_v47, %v2196_v45  ;;  %v2388_v49 = vpop.f32.mrb[35].mxu1  ;;  %v2461_v55 = vmax.f32 %v2383_v43, 0.0 }
 0x6e2   : > { %v2389_v50 = vadd.f32 %v2388_v49, %v2196_v45  ;;  %v2462_v59 = vmax.f32 %v2385_v46, 0.0  ;;  %v2221_v49 = vpop.permute.xlu0 %2220 }
 0x6e3   : > { %v2463_v58 = vmax.f32 %v2387_v48, 0.0 }
 0x6e4   : > { %v2464_v60 = vmax.f32 %v2389_v50, 0.0 }
 0x6e5   : > { %v2493_v62 = vpack.c.bf16 %v2463_v58, %v2461_v55 }
 0x6e6   : > { %v2494_v2 = vpack.c.bf16 %v2464_v60, %v2462_v59  ;;  %v2392_v4 = vpop.f32.mrb[36].mxu1  ;;  %v2226_v60 = vpop.permute.xlu1 %2225 }
 0x6e7   : > { %v2393_v6 = vadd.f32 %v2392_v4, %v2201_v1  ;;  %v2394_v7 = vpop.f32.mrb[37].mxu1 }
 0x6e8   : > { %v2395_v9 = vadd.f32 %v2394_v7, %v2201_v1  ;;  %v2396_v10 = vpop.f32.mrb[38].mxu1  ;;  %2549 = vmatprep.subr.bf16.mxu1 %v2494_v2 }
 0x6e9   : > { %v2397_v12 = vadd.f32 %v2396_v10, %v2206_v8  ;;  %v2398_v17 = vpop.f32.mrb[39].mxu1  ;;  %2550 = vmatpush1.bf16.msra.mxu1 %v2493_v62  ;;  %v2465_v22 = vmax.f32 %v2393_v6, 0.0 }
 0x6ea   : > { %v2399_v20 = vadd.f32 %v2398_v17, %v2206_v8  ;;  %v2466_v24 = vmax.f32 %v2395_v9, 0.0  ;;  %v2231_v17 = vpop.permute.xlu0 %2230 }
 0x6eb   : > { %v2467_v23 = vmax.f32 %v2397_v12, 0.0 }
 0x6ec   : > { %v2468_v25 = vmax.f32 %v2399_v20, 0.0 }
 0x6ed   : > { %v2495_v26 = vpack.c.bf16 %v2467_v23, %v2465_v22 }
 0x6ee   : > { %v2496_v28 = vpack.c.bf16 %v2468_v25, %v2466_v24  ;;  %v2402_v29 = vpop.f32.mrb[40].mxu1  ;;  %v2236_v25 = vpop.permute.xlu1 %2235 }
 0x6ef   : > { %v2403_v30 = vadd.f32 %v2402_v29, %v2211_v27  ;;  %v2404_v32 = vpop.f32.mrb[41].mxu1 }
 0x6f0   : > { %v2405_v39 = vadd.f32 %v2404_v32, %v2211_v27  ;;  %v2406_v40 = vpop.f32.mrb[42].mxu1  ;;  %2551 = vmatprep.subr.bf16.mxu1 %v2496_v28 }
 0x6f1   : > { %v2407_v41 = vadd.f32 %v2406_v40, %v2216_v37  ;;  %v2408_v42 = vpop.f32.mrb[43].mxu1  ;;  %2552 = vmatpush1.bf16.msra.mxu1 %v2495_v26  ;;  %v2469_v44 = vmax.f32 %v2403_v30, 0.0 }
 0x6f2   : > { %v2409_v43 = vadd.f32 %v2408_v42, %v2216_v37  ;;  %v2470_v46 = vmax.f32 %v2405_v39, 0.0  ;;  %v2241_v42 = vpop.permute.xlu0 %2240 }
 0x6f3   : > { %v2471_v45 = vmax.f32 %v2407_v41, 0.0 }
 0x6f4   : > { %v2472_v47 = vmax.f32 %v2409_v43, 0.0 }
 0x6f5   : > { %v2497_v48 = vpack.c.bf16 %v2471_v45, %v2469_v44 }
 0x6f6   : > { %v2498_v50 = vpack.c.bf16 %v2472_v47, %v2470_v46  ;;  %v2412_v55 = vpop.f32.mrb[44].mxu1  ;;  %v2246_v47 = vpop.permute.xlu1 %2245 }
 0x6f7   : > { %v2413_v58 = vadd.f32 %v2412_v55, %v2221_v49  ;;  %v2414_v59 = vpop.f32.mrb[45].mxu1 }
 0x6f8   : > { %v2415_v62 = vadd.f32 %v2414_v59, %v2221_v49  ;;  %v2416_v1 = vpop.f32.mrb[46].mxu1  ;;  %2553 = vmatprep.subr.bf16.mxu1 %v2498_v50 }
 0x6f9   : > { %v2417_v2 = vadd.f32 %v2416_v1, %v2226_v60  ;;  %v2418_v4 = vpop.f32.mrb[47].mxu1  ;;  %2554 = vmatpush1.bf16.msra.mxu1 %v2497_v48  ;;  %v2473_v7 = vmax.f32 %v2413_v58, 0.0 }
 0x6fa   : > { %v2419_v6 = vadd.f32 %v2418_v4, %v2226_v60  ;;  %v2474_v9 = vmax.f32 %v2415_v62, 0.0  ;;  %v2251_v4 = vpop.permute.xlu0 %2250 }
 0x6fb   : > { %v2475_v8 = vmax.f32 %v2417_v2, 0.0 }
 0x6fc   : > { %v2476_v10 = vmax.f32 %v2419_v6, 0.0 }
 0x6fd   : > { %v2499_v12 = vpack.c.bf16 %v2475_v8, %v2473_v7 }
 0x6fe   : > { %v2500_v20 = vpack.c.bf16 %v2476_v10, %v2474_v9  ;;  %v2422_v22 = vpop.f32.mrb[48].mxu1  ;;  %v2256_v10 = vpop.permute.xlu1 %2255 }
 0x6ff   : > { %v2423_v23 = vadd.f32 %v2422_v22, %v2231_v17  ;;  %v2424_v24 = vpop.f32.mrb[49].mxu1 }
 0x700   : > { %v2425_v26 = vadd.f32 %v2424_v24, %v2231_v17  ;;  %v2426_v27 = vpop.f32.mrb[50].mxu1  ;;  %2555 = vmatprep.subr.bf16.mxu1 %v2500_v20 }
 0x701   : > { %v2427_v28 = vadd.f32 %v2426_v27, %v2236_v25  ;;  %v2428_v29 = vpop.f32.mrb[51].mxu1  ;;  %2556 = vmatpush1.bf16.msra.mxu1 %v2499_v12  ;;  %v2477_v32 = vmax.f32 %v2423_v23, 0.0 }
 0x702   : > { %v2429_v30 = vadd.f32 %v2428_v29, %v2236_v25  ;;  %v2478_v39 = vmax.f32 %v2425_v26, 0.0  ;;  %v2261_v29 = vpop.permute.xlu0 %2260 }
 0x703   : > { %v2479_v37 = vmax.f32 %v2427_v28, 0.0 }
 0x704   : > { %v2480_v40 = vmax.f32 %v2429_v30, 0.0 }
 0x705   : > { %v2501_v41 = vpack.c.bf16 %v2479_v37, %v2477_v32 }
 0x706   : > { %v2502_v43 = vpack.c.bf16 %v2480_v40, %v2478_v39  ;;  %v2432_v44 = vpop.f32.mrb[52].mxu1  ;;  %v2266_v40 = vpop.permute.xlu1 %2265 }
 0x707   : > { %v2433_v45 = vadd.f32 %v2432_v44, %v2241_v42  ;;  %v2434_v46 = vpop.f32.mrb[53].mxu1 }
 0x708   : > { %v2435_v48 = vadd.f32 %v2434_v46, %v2241_v42  ;;  %v2436_v49 = vpop.f32.mrb[54].mxu1  ;;  %2557 = vmatprep.subr.bf16.mxu1 %v2502_v43 }
 0x709   : > { %v2437_v50 = vadd.f32 %v2436_v49, %v2246_v47  ;;  %v2438_v55 = vpop.f32.mrb[55].mxu1  ;;  %2558 = vmatpush1.bf16.msra.mxu1 %v2501_v41  ;;  %v2481_v59 = vmax.f32 %v2433_v45, 0.0 }
 0x70a   : > { %v2439_v58 = vadd.f32 %v2438_v55, %v2246_v47  ;;  %v2482_v62 = vmax.f32 %v2435_v48, 0.0 }
 0x70b   : > { %v2483_v60 = vmax.f32 %v2437_v50, 0.0 }
 0x70c   : > { %v2484_v1 = vmax.f32 %v2439_v58, 0.0  ;;  %v4131_v58 = vld [vmem:[#allocation20] sm:$0xff]  }
 0x70d   : > { %v2503_v2 = vpack.c.bf16 %v2483_v60, %v2481_v59  ;;  %v4132_v59 = vld [vmem:[#allocation20 + $0x8] sm:$0xff]  }
 0x70e   : > { %v2504_v6 = vpack.c.bf16 %v2484_v1, %v2482_v62  ;;  %v2442_v7 = vpop.f32.mrb[56].mxu1 }
 0x70f   : > { %v2443_v8 = vadd.f32 %v2442_v7, %v2251_v4  ;;  %v2444_v9 = vpop.f32.mrb[57].mxu1 }
 0x710   : > { %v2445_v12 = vadd.f32 %v2444_v9, %v2251_v4  ;;  %v2446_v17 = vpop.f32.mrb[58].mxu1  ;;  %2559 = vmatprep.subr.bf16.mxu1 %v2504_v6 }
 0x711   : > { %v2447_v20 = vadd.f32 %v2446_v17, %v2256_v10  ;;  %v2448_v22 = vpop.f32.mrb[59].mxu1  ;;  %2560 = vmatpush1.bf16.msra.mxu1 %v2503_v2  ;;  %v2485_v24 = vmax.f32 %v2443_v8, 0.0 }
 0x712   : > { %v2449_v23 = vadd.f32 %v2448_v22, %v2256_v10  ;;  %v2486_v26 = vmax.f32 %v2445_v12, 0.0 }
 0x713   : > { %v2487_v25 = vmax.f32 %v2447_v20, 0.0 }
 0x714   : > { %v2488_v27 = vmax.f32 %v2449_v23, 0.0 }
 0x715   : > { %v2505_v28 = vpack.c.bf16 %v2487_v25, %v2485_v24 }
 0x716   : > { %v2506_v30 = vpack.c.bf16 %v2488_v27, %v2486_v26  ;;  %v2452_v32 = vpop.f32.mrb[60].mxu1 }
 0x717   : > { %v2453_v37 = vadd.f32 %v2452_v32, %v2261_v29  ;;  %v2454_v39 = vpop.f32.mrb[61].mxu1 }
 0x718   : > { %v2455_v41 = vadd.f32 %v2454_v39, %v2261_v29  ;;  %v2456_v42 = vpop.f32.mrb[62].mxu1  ;;  %2561 = vmatprep.subr.bf16.mxu1 %v2506_v30 }
 0x719   : > { %v2457_v43 = vadd.f32 %v2456_v42, %v2266_v40  ;;  %v2458_v44 = vpop.f32.mrb[63].mxu1  ;;  %2562 = vmatpush1.bf16.msra.mxu1 %v2505_v28  ;;  %v2489_v46 = vmax.f32 %v2453_v37, 0.0 }
 0x71a   : > { %v2459_v45 = vadd.f32 %v2458_v44, %v2266_v40  ;;  %v2490_v48 = vmax.f32 %v2455_v41, 0.0 }
 0x71b   : > { %v2491_v47 = vmax.f32 %v2457_v43, 0.0 }
 0x71c   : > { %v2492_v49 = vmax.f32 %v2459_v45, 0.0 }
 0x71d   : > { %v2507_v50 = vpack.c.bf16 %v2491_v47, %v2489_v46 }
 0x71e   : > { %v2508_v55 = vpack.c.bf16 %v2492_v49, %v2490_v48 }
 0x720   : > { %2563 = vmatprep.subr.bf16.mxu1 %v2508_v55 }
 0x721   : > { %2564 = vmatpush1.bf16.msra.mxu1 %v2507_v50 }
 0x722   : > { %2646 = vmatprep.subr.bf16.mxu1 %v5739_v63  ;;  %v4133_v63 = vld [vmem:[#allocation20 + $0x10] sm:$0xff]  }
 0x724   : > { %2582 = vmatmul.mubr.bf16.vlgmr.msra.gmra.mrb[64].mxu1 %v4131_v58 }
 0x725   : > { %2647 = vmatpush1.bf16.msra.mxu1 %v5737_v61  ;;  %2591 = vmatprep.mubr.bf16.mxu1 %v4897_v0  ;;  %v4134_v61 = vld [vmem:[#allocation20 + $0x18] sm:$0xff]  }
 0x726   : > { %2648 = vmatprep.subr.bf16.mxu1 %v5745_v18  ;;  %v4136_v18 = vld [vmem:[#allocation19 + $0x8] sm:$0xff]  }
 0x729   : > { %2649 = vmatpush1.bf16.msra.mxu1 %v5743_v16  ;;  %v4135_v16 = vld [vmem:[#allocation19] sm:$0xff]  }
 0x72a   : > { %2650 = vmatprep.subr.bf16.mxu1 %v5751_v38  ;;  %v4138_v38 = vld [vmem:[#allocation19 + $0x18] sm:$0xff]  }
 0x72c   : > { %2592 = vmatmul.mubr.bf16.gmra.mrb[68].mxu1 %v4132_v59 }
 0x72d   : > { %2651 = vmatpush1.bf16.msra.mxu1 %v5749_v34  ;;  %2601 = vmatprep.mubr.bf16.mxu1 %v4897_v0  ;;  %v4137_v34 = vld [vmem:[#allocation19 + $0x10] sm:$0xff]  }
 0x72e   : > { %2652 = vmatprep.subr.bf16.mxu1 %v5757_v56 }
 0x731   : > { %2653 = vmatpush1.bf16.msra.mxu1 %v5755_v54  ;;  %v2730_v54 = vpop.permute.xlu0 %2729 }
 0x732   : > { %2654 = vmatprep.subr.bf16.mxu1 %v5763_v13 }
 0x734   : > { %2602 = vmatmul.mubr.bf16.gmra.mrb[72].mxu1 %v4133_v63 }
 0x735   : > { %2655 = vmatpush1.bf16.msra.mxu1 %v5761_v11  ;;  %2611 = vmatprep.mubr.bf16.mxu1 %v4897_v0  ;;  %v2740_v6 = vpop.permute.xlu0 %2739 }
 0x736   : > { %2656 = vmatprep.subr.bf16.mxu1 %v5769_v33 }
 0x739   : > { %2657 = vmatpush1.bf16.msra.mxu1 %v5767_v31  ;;  %v2735_v31 = vpop.permute.xlu1 %2734  ;;  %v2750_v30 = vpop.permute.xlu0 %2749 }
 0x73a   : > { %2658 = vmatprep.subr.bf16.mxu1 %v5775_v57 }
 0x73c   : > { %2612 = vmatmul.mubr.bf16.gmra.mrb[76].mxu1 %v4134_v61 }
 0x73d   : > { %2659 = vmatpush1.bf16.msra.mxu1 %v5773_v52  ;;  %2678 = vmatprep.mubr.bf16.mxu1 %v4897_v0  ;;  %v2745_v12 = vpop.permute.xlu1 %2744  ;;  %v2760_v58 = vpop.permute.xlu0 %2759 }
 0x73e   : > { %2660 = vmatprep.subr.bf16.mxu1 %v5781_v15 }
 0x741   : > { %2661 = vmatpush1.bf16.msra.mxu1 %v5779_v14  ;;  %v2755_v41 = vpop.permute.xlu1 %2754 }
 0x744   : > { %2679 = vmatmul.mubr.bf16.vlgmr.msra.gmra.mrb[64].mxu1 %v4135_v16 }
 0x745   : > { %2688 = vmatprep.mubr.bf16.mxu1 %v4897_v0 }
 0x74c   : > { %2689 = vmatmul.mubr.bf16.gmra.mrb[68].mxu1 %v4136_v18  ;;  %v2765_v18 = vpop.permute.xlu1 %2764 }
 0x74d   : > { %2698 = vmatprep.mubr.bf16.mxu1 %v4897_v0 }
 0x754   : > { %2699 = vmatmul.mubr.bf16.gmra.mrb[72].mxu1 %v4137_v34 }
 0x755   : > { %2708 = vmatprep.mubr.bf16.mxu1 %v4897_v0 }
 0x75c   : > { %2709 = vmatmul.mubr.bf16.gmra.mrb[76].mxu1 %v4138_v38 }
 0x75d   : > { %3163 = vmatprep.mubr.bf16.mxu1 %v4897_v0 }
 0x817   : > { %v2680_v56 = vpop.f32.mrb[64].mxu1 }
 0x818   : > { %v2767_v11 = vadd.f32 %v2730_v54, %v2680_v56  ;;  %v2682_v13 = vpop.f32.mrb[65].mxu1 }
 0x819   : > { %v2768_v33 = vadd.f32 %v2730_v54, %v2682_v13  ;;  %v2684_v52 = vpop.f32.mrb[66].mxu1 }
 0x81a   : > { %v2769_v57 = vadd.f32 %v2735_v31, %v2684_v52  ;;  %v2686_v14 = vpop.f32.mrb[67].mxu1  ;;  %v2783_v60 = vmax.f32 %v2767_v11, 0.0 }
 0x81b   : > { %v2770_v15 = vadd.f32 %v2735_v31, %v2686_v14  ;;  %v2784_v1 = vmax.f32 %v2768_v33, 0.0 }
 0x81c   : > { %v2785_v62 = vmax.f32 %v2769_v57, 0.0 }
 0x81d   : > { %v2786_v2 = vmax.f32 %v2770_v15, 0.0  ;;  %v4139_v15 = vld [vmem:[#allocation25] sm:$0xff]  }
 0x81e   : > { %v2799_v4 = vpack.c.bf16 %v2785_v62, %v2783_v60  ;;  %v4140_v60 = vld [vmem:[#allocation25 + $0x8] sm:$0xff]  }
 0x81f   : > { %v2800_v7 = vpack.c.bf16 %v2786_v2, %v2784_v1  ;;  %v2690_v8 = vpop.f32.mrb[68].mxu1  ;;  %v3049_v2 = vpop.permute.xlu1 %3048 }
 0x820   : > { %v2771_v9 = vadd.f32 %v2740_v6, %v2690_v8  ;;  %v2692_v10 = vpop.f32.mrb[69].mxu1 }
 0x821   : > { %v2772_v17 = vadd.f32 %v2740_v6, %v2692_v10  ;;  %v2694_v20 = vpop.f32.mrb[70].mxu1  ;;  %2855 = vmatprep.subr.bf16.mxu0 %v2800_v7 }
 0x822   : > { %v2773_v22 = vadd.f32 %v2745_v12, %v2694_v20  ;;  %v2696_v23 = vpop.f32.mrb[71].mxu1  ;;  %2856 = vmatpush1.bf16.msra.mxu0 %v2799_v4  ;;  %v2787_v25 = vmax.f32 %v2771_v9, 0.0 }
 0x823   : > { %v2774_v24 = vadd.f32 %v2745_v12, %v2696_v23  ;;  %v2788_v27 = vmax.f32 %v2772_v17, 0.0 }
 0x824   : > { %v2789_v26 = vmax.f32 %v2773_v22, 0.0 }
 0x825   : > { %v2790_v28 = vmax.f32 %v2774_v24, 0.0 }
 0x826   : > { %v2801_v29 = vpack.c.bf16 %v2789_v26, %v2787_v25 }
 0x827   : > { %v2802_v32 = vpack.c.bf16 %v2790_v28, %v2788_v27  ;;  %v2700_v37 = vpop.f32.mrb[72].mxu1  ;;  %v3059_v28 = vpop.permute.xlu1 %3058 }
 0x828   : > { %v2775_v39 = vadd.f32 %v2750_v30, %v2700_v37  ;;  %v2702_v40 = vpop.f32.mrb[73].mxu1 }
 0x829   : > { %v2776_v42 = vadd.f32 %v2750_v30, %v2702_v40  ;;  %v2704_v43 = vpop.f32.mrb[74].mxu1  ;;  %2857 = vmatprep.subr.bf16.mxu0 %v2802_v32 }
 0x82a   : > { %v2777_v44 = vadd.f32 %v2755_v41, %v2704_v43  ;;  %v2706_v45 = vpop.f32.mrb[75].mxu1  ;;  %2858 = vmatpush1.bf16.msra.mxu0 %v2801_v29  ;;  %v2791_v47 = vmax.f32 %v2775_v39, 0.0 }
 0x82b   : > { %v2778_v46 = vadd.f32 %v2755_v41, %v2706_v45  ;;  %v2792_v49 = vmax.f32 %v2776_v42, 0.0 }
 0x82c   : > { %v2793_v48 = vmax.f32 %v2777_v44, 0.0 }
 0x82d   : > { %v2794_v50 = vmax.f32 %v2778_v46, 0.0 }
 0x82e   : > { %v2803_v55 = vpack.c.bf16 %v2793_v48, %v2791_v47 }
 0x82f   : > { %v2804_v59 = vpack.c.bf16 %v2794_v50, %v2792_v49  ;;  %v2710_v63 = vpop.f32.mrb[76].mxu1  ;;  %v3069_v50 = vpop.permute.xlu1 %3068 }
 0x830   : > { %v2779_v61 = vadd.f32 %v2760_v58, %v2710_v63  ;;  %v2712_v16 = vpop.f32.mrb[77].mxu1 }
 0x831   : > { %v2780_v34 = vadd.f32 %v2760_v58, %v2712_v16  ;;  %v2714_v38 = vpop.f32.mrb[78].mxu1  ;;  %2859 = vmatprep.subr.bf16.mxu0 %v2804_v59 }
 0x832   : > { %v2781_v54 = vadd.f32 %v2765_v18, %v2714_v38  ;;  %v2716_v56 = vpop.f32.mrb[79].mxu1  ;;  %2860 = vmatpush1.bf16.msra.mxu0 %v2803_v55  ;;  %v2795_v13 = vmax.f32 %v2779_v61, 0.0 }
 0x833   : > { %v2782_v11 = vadd.f32 %v2765_v18, %v2716_v56  ;;  %v2796_v33 = vmax.f32 %v2780_v34, 0.0 }
 0x834   : > { %v2797_v31 = vmax.f32 %v2781_v54, 0.0 }
 0x835   : > { %v2798_v52 = vmax.f32 %v2782_v11, 0.0 }
 0x836   : > { %v2805_v57 = vpack.c.bf16 %v2797_v31, %v2795_v13 }
 0x837   : > { %v2806_v14 = vpack.c.bf16 %v2798_v52, %v2796_v33  ;;  %v3079_v52 = vpop.permute.xlu1 %3078 }
 0x839   : > { %2861 = vmatprep.subr.bf16.mxu0 %v2806_v14 }
 0x83a   : > { %2862 = vmatpush1.bf16.msra.mxu0 %v2805_v57 }
 0x83b   : > { %2960 = vmatprep.subr.bf16.mxu0 %v5700_v53  ;;  %v4141_v53 = vld [vmem:[#allocation25 + $0x10] sm:$0xff]  }
 0x83d   : > { %3753 = vmatmul.mubr.msk.bf16.vlgmr.msra.gmra.mrb[80].mxu0 %vm1361_vm2, %v4139_v15 }
 0x83e   : > { %2961 = vmatpush1.bf16.msra.mxu0 %v5698_v51  ;;  %2897 = vmatprep.mubr.bf16.mxu0 %v4897_v0  ;;  %v4142_v51 = vld [vmem:[#allocation25 + $0x18] sm:$0xff]  }
 0x83f   : > { %2962 = vmatprep.subr.bf16.mxu0 %v5706_v5  ;;  %v4144_v5 = vld [vmem:[#allocation23 + $0x8] sm:$0xff]  }
 0x842   : > { %2963 = vmatpush1.bf16.msra.mxu0 %v5704_v3  ;;  %v4143_v3 = vld [vmem:[#allocation23] sm:$0xff]  }
 0x843   : > { %2964 = vmatprep.subr.bf16.mxu0 %v5712_v21  ;;  %v4146_v21 = vld [vmem:[#allocation23 + $0x18] sm:$0xff]  }
 0x845   : > { %3754 = vmatmul.mubr.msk.bf16.gmra.mrb[84].mxu0 %vm1361_vm2, %v4140_v60 }
 0x846   : > { %2965 = vmatpush1.bf16.msra.mxu0 %v5710_v19  ;;  %2907 = vmatprep.mubr.bf16.mxu0 %v4897_v0  ;;  %v4145_v19 = vld [vmem:[#allocation23 + $0x10] sm:$0xff]  }
 0x847   : > { %2966 = vmatprep.subr.bf16.mxu0 %v5718_v36 }
 0x84a   : > { %2967 = vmatpush1.bf16.msra.mxu0 %v5716_v35  ;;  %v3044_v35 = vpop.permute.xlu0 %3043 }
 0x84d   : > { %3755 = vmatmul.mubr.msk.bf16.gmra.mrb[88].mxu0 %vm1361_vm2, %v4141_v53 }
 0x84e   : > { %2917 = vmatprep.mubr.bf16.mxu0 %v4897_v0  ;;  %v3054_v23 = vpop.permute.xlu0 %3053 }
 0x852   : > { %v3064_v45 = vpop.permute.xlu0 %3063 }
 0x855   : > { %3756 = vmatmul.mubr.msk.bf16.gmra.mrb[92].mxu0 %vm1361_vm2, %v4142_v51 }
 0x856   : > { %2992 = vmatprep.mubr.bf16.mxu0 %v4897_v0  ;;  %v3074_v56 = vpop.permute.xlu0 %3073 }
 0x85d   : > { %3761 = vmatmul.mubr.msk.bf16.vlgmr.msra.gmra.mrb[80].mxu0 %vm1361_vm2, %v4143_v3 }
 0x85e   : > { %3002 = vmatprep.mubr.bf16.mxu0 %v4897_v0 }
 0x865   : > { %3762 = vmatmul.mubr.msk.bf16.gmra.mrb[84].mxu0 %vm1361_vm2, %v4144_v5 }
 0x866   : > { %3012 = vmatprep.mubr.bf16.mxu0 %v4897_v0 }
 0x86d   : > { %3763 = vmatmul.mubr.msk.bf16.gmra.mrb[88].mxu0 %vm1361_vm2, %v4145_v19 }
 0x86e   : > { %3022 = vmatprep.mubr.bf16.mxu0 %v4897_v0 }
 0x875   : > { %3764 = vmatmul.mubr.msk.bf16.gmra.mrb[92].mxu0 %vm1361_vm2, %v4146_v21 }
 0x930   : > { %v2994_v36 = vpop.f32.mrb[80].mxu0 }
 0x931   : > { %v3081_v62 = vadd.f32 %v3044_v35, %v2994_v36  ;;  %v2996_v1 = vpop.f32.mrb[81].mxu0  ;;  %v3121_v36 = vld [vmem:[#allocation28] sm:$0xf] }
 0x932   : > { %v3082_v4 = vadd.f32 %v3044_v35, %v2996_v1  ;;  %v2998_v6 = vpop.f32.mrb[82].mxu0  ;;  %v1013_v1 = vld [vmem:[%s5634_s23 + $0x18] sm:$0xff] }
 0x933   : > { %v3083_v7 = vadd.f32 %v3049_v2, %v2998_v6  ;;  %v3000_v8 = vpop.f32.mrb[83].mxu0  ;;  %v3097_v10 = vmax.f32 %v3081_v62, 0.0  ;;  %v1011_v62 = vld [vmem:[%s5634_s23 + $0x8] sm:$0xff]  ;;  %v1012_v6 = vld [vmem:[%s5634_s23 + $0x10] sm:$0xff] }
 0x934   : > { %v3084_v9 = vadd.f32 %v3049_v2, %v3000_v8  ;;  %v3098_v17 = vmax.f32 %v3082_v4, 0.0  ;;  %v1015_v2 = vpack.c.bf16 %v1013_v1, %v1011_v62  ;;  %v1010_v4 = vld [vmem:[%s5634_s23] sm:$0xff]  ;;  %v3179_v8 = vld [vmem:[#allocation32] sm:$0xf] }
 0x935   : > { %v3099_v12 = vmax.f32 %v3083_v7, 0.0  ;;  %v1014_v7 = vpack.c.bf16 %v1012_v6, %v1010_v4 }
 0x936   : > { %v3100_v20 = vmax.f32 %v3084_v9, 0.0  ;;  %v3126_v9 = vpop.permute.xlu0 %3125 }
 0x937   : > { %v3113_v22 = vpack.c.bf16 %v3099_v12, %v3097_v10 }
 0x938   : > { %v3114_v24 = vpack.c.bf16 %v3100_v20, %v3098_v17  ;;  %v3004_v25 = vpop.f32.mrb[84].mxu0 }
 0x939   : > { %v3085_v26 = vadd.f32 %v3054_v23, %v3004_v25  ;;  %v3006_v27 = vpop.f32.mrb[85].mxu0 }
 0x93a   : > { %v3086_v29 = vadd.f32 %v3054_v23, %v3006_v27  ;;  %v3008_v30 = vpop.f32.mrb[86].mxu0  ;;  %3131 = vmatprep.subr.bf16.mxu1 %v3114_v24 }
 0x93b   : > { %v3087_v32 = vadd.f32 %v3059_v28, %v3008_v30  ;;  %v3010_v37 = vpop.f32.mrb[87].mxu0  ;;  %3132 = vmatpush1.bf16.msra.mxu1 %v3113_v22  ;;  %v3101_v40 = vmax.f32 %v3085_v26, 0.0 }
 0x93c   : > { %v3088_v39 = vadd.f32 %v3059_v28, %v3010_v37  ;;  %v3102_v42 = vmax.f32 %v3086_v29, 0.0  ;;  %v3178_v28 = vld [vmem:[#allocation31] sm:$0xf] }
 0x93d   : > { %v3103_v41 = vmax.f32 %v3087_v32, 0.0 }
 0x93e   : > { %v3104_v43 = vmax.f32 %v3088_v39, 0.0 }
 0x93f   : > { %v3115_v44 = vpack.c.bf16 %v3103_v41, %v3101_v40 }
 0x940   : > { %v3116_v46 = vpack.c.bf16 %v3104_v43, %v3102_v42  ;;  %v3014_v47 = vpop.f32.mrb[88].mxu0 }
 0x941   : > { %v3089_v48 = vadd.f32 %v3064_v45, %v3014_v47  ;;  %v3016_v49 = vpop.f32.mrb[89].mxu0 }
 0x942   : > { %v3090_v55 = vadd.f32 %v3064_v45, %v3016_v49  ;;  %v3018_v58 = vpop.f32.mrb[90].mxu0  ;;  %3133 = vmatprep.subr.bf16.mxu1 %v3116_v46 }
 0x943   : > { %v3091_v59 = vadd.f32 %v3069_v50, %v3018_v58  ;;  %v3020_v63 = vpop.f32.mrb[91].mxu0  ;;  %3134 = vmatpush1.bf16.msra.mxu1 %v3115_v44  ;;  %v3105_v16 = vmax.f32 %v3089_v48, 0.0 }
 0x944   : > { %v3092_v61 = vadd.f32 %v3069_v50, %v3020_v63  ;;  %v3106_v34 = vmax.f32 %v3090_v55, 0.0 }
 0x945   : > { %v3107_v18 = vmax.f32 %v3091_v59, 0.0 }
 0x946   : > { %v3108_v38 = vmax.f32 %v3092_v61, 0.0 }
 0x947   : > { %v3117_v54 = vpack.c.bf16 %v3107_v18, %v3105_v16 }
 0x948   : > { %v3118_v11 = vpack.c.bf16 %v3108_v38, %v3106_v34  ;;  %v3024_v13 = vpop.f32.mrb[92].mxu0 }
 0x949   : > { %v3093_v31 = vadd.f32 %v3074_v56, %v3024_v13  ;;  %v3026_v33 = vpop.f32.mrb[93].mxu0 }
 0x94a   : > { %v3094_v57 = vadd.f32 %v3074_v56, %v3026_v33  ;;  %v3028_v14 = vpop.f32.mrb[94].mxu0  ;;  %3135 = vmatprep.subr.bf16.mxu1 %v3118_v11 }
 0x94b   : > { %v3095_v15 = vadd.f32 %v3079_v52, %v3028_v14  ;;  %v3030_v60 = vpop.f32.mrb[95].mxu0  ;;  %3136 = vmatpush1.bf16.msra.mxu1 %v3117_v54  ;;  %v3109_v51 = vmax.f32 %v3093_v31, 0.0 }
 0x94c   : > { %v3096_v53 = vadd.f32 %v3079_v52, %v3030_v60  ;;  %v3110_v5 = vmax.f32 %v3094_v57, 0.0 }
 0x94d   : > { %v3111_v3 = vmax.f32 %v3095_v15, 0.0 }
 0x94e   : > { %v3112_v19 = vmax.f32 %v3096_v53, 0.0 }
 0x94f   : > { %v3119_v21 = vpack.c.bf16 %v3111_v3, %v3109_v51 }
 0x950   : > { %v3120_v35 = vpack.c.bf16 %v3112_v19, %v3110_v5 }
 0x952   : > { %3137 = vmatprep.subr.bf16.mxu1 %v3120_v35 }
 0x953   : > { %3138 = vmatpush1.bf16.msra.mxu1 %v3119_v21 }
 0x954   : > { %3184 = vmatprep.subr.bf16.mxu1 %v1015_v2 }
 0x956   : > { %3765 = vmatmul.mubr.msk.bf16.vlgmr.msra.gmra.mrb[80].mxu1 %vm1361_vm2, %v3121_v36 }
 0x957   : > { %3216 = vmatprep.mubr.bf16.mxu1 %v4897_v0  ;;  %3185 = vmatpush1.bf16.msra.mxu1 %v1014_v7 }
 0x95e   : > { %3766 = vmatmul.mubr.msk.bf16.vlgmr.msra.gmra.mrb[84].mxu1 %vm3180_vm3, %v3179_v8 }
 0x95f   : > { %3266 = vmatprep.mubr.bf16.mxu1 %v4897_v0 }
 0xa29   : > { %v3165_v10 = vpop.f32.mrb[80].mxu1 }
 0xa2a   : > { %v3166_v12 = vadd.f32 %v3165_v10, %v3126_v9  ;;  %v3167_v17 = vpop.f32.mrb[81].mxu1 }
 0xa2b   : > { %v3168_v20 = vadd.f32 %v3167_v17, %v3126_v9  ;;  %v3169_v22 = vpop.f32.mrb[82].mxu1 }
 0xa2c   : > { %v3172_v23 = vmax.f32 %v3166_v12, 0.0  ;;  %v3170_v24 = vpop.f32.mrb[83].mxu1 }
 0xa2d   : > { %v3173_v25 = vmax.f32 %v3168_v20, 0.0 }
 0xa2e   : > { %3174 = vst [vmem:[%s993_s5] sm:$0xff] %v3172_v23  ;;  %v3176_v26 = vpack.c.bf16 %v3172_v23, %v3172_v23 }
 0xa2f   : > { %3175 = vst [vmem:[%s993_s5 + $0x8] sm:$0xff] %v3173_v25  ;;  %v3177_v27 = vpack.c.bf16 %v3173_v25, %v3173_v25 }
 0xa30   : > { %v3229_v0 = vsel %vm1105_vm0, %v3176_v26, 0 }
 0xa31   : > { %3767 = vmatprep.subr.msk.bf16.mxu1 %vm1105_vm0, %v3177_v27 }
 0xa32   : > { %3235 = vmatpush1.bf16.msra.mxu1 %v3229_v0 }
 0xa35   : > { %3768 = vmatmul.mubr.msk.bf16.vlgmr.msra.gmra.mrb[84].mxu1 %vm1092_vm1, %v3178_v28 }
 0xa36   : > { %4724 = shalt.err (!%p4721_p11)
}
 0xa37   : > { %s4725_s26 = scalar_lea.hbm %s5866_s8, 256  ;;  %s4729_s5 = scalar_lea.hbm %s6085_s4, 512 }
 0xa38   : > { %p4726_p10 = scmp.ne.s32.totalorder %s5866_s8, %s4725_s26  ;;  %p4730_p1 = scmp.lt.u32.totalorder %s5866_s8, %s6085_s4 }
 0xa39   : > { %p4731_p3 = scmp.lt.u32.totalorder %s4729_s5, %s4725_s26  ;;  %p4733_p2 = scmp.lt.u32.totalorder %s4725_s26, %s5866_s8 }
 0xa3a   : > { %p4727_p12 = pnand %p4726_p10, %p6086_p13 }
 0xa3b   : > { %p4732_p6 = por %p4731_p3, %p4730_p1 }
 0xa3c   : > { %p4728_p8 = pneg %p4727_p12 }
 0xa3d   : > { %p4734_p4 = por %p4733_p2, %p4732_p6 }
 0xa3f   : > { %p4735_p9 = pnand %p4734_p4, %p4728_p8 }
 0xa41   : > { %4738 = shalt.err (!%p4735_p9)
}
 0xa42   : > { %3893 = dma.vmem_to_hbm [thread:$0]  (%p6086_p13), %s3302_s21, 256, %s5866_s8, %s3280_s1  }
 0xa43   : > { %s1000_s11 = scalar_lea.vmem [#allocation35], %s5624_s9  ;;  %s6087_s26 = sld [smem:[#allocation76_spill]] }
 0xa44   : > { %s3317_s28 = sshll.u32 %s1000_s11, 4  ;;  %s3285_s9 = scalar_lea.sflag [#allocation36], %s5621_s6  ;;  %s5894_s28 = int_to_ptr.vmem [resolvable:$true] %s3317_s28 }
 0xa45   : > { %s4739_s21 = scalar_lea.vmem %s5894_s28, 256  ;;  %s4899_s25 = smov [#allocation35]  }
 0xa46   : > { %p4740_p0 = scmp.ne.s32.totalorder %s5894_s28, %s4739_s21  ;;  %s4743_s8 = sshll.u32 %s4899_s25, 4  ;;  %s4744_s8 = int_to_ptr.vmem [resolvable:$false] %s4743_s8 }
 0xa47   : > { %s4745_s1 = scalar_lea.vmem %s4744_s8, 512  ;;  %p4746_p11 = scmp.lt.s32.totalorder %s5894_s28, %s4744_s8 }
 0xa48   : > { %p4741_p7 = pnand %p4740_p0, %p6086_p13  ;;  %p4747_p10 = scmp.lt.s32.totalorder %s4745_s1, %s4739_s21 }
 0xa49   : > { %s6088_s7 = smov %s6087_s26  ;;  %s5892_s23 = scalar_lea.hbm %s6087_s26, %s3779_s0 }
 0xa4a   : > { %p4742_p5 = pneg %p4741_p7  ;;  %p4748_p12 = por %p4747_p10, %p4746_p11 }
 0xa4c   : > { %p4749_p8 = pnand %p4748_p12, %p4742_p5 }
 0xb08   : > { %v3268_v29 = vpop.f32.mrb[84].mxu1 }
 0xb09   : > { %v3275_v30 = vmax.f32 %v3268_v29, 0.0  ;;  %v3270_v32 = vpop.f32.mrb[85].mxu1 }
 0xb0a   : > { %v3276_v37 = vmax.f32 %v3270_v32, 0.0  ;;  %v3272_v39 = vpop.f32.mrb[86].mxu1 }
 0xb0b   : > { %3277 = vst [vmem:[%s1000_s11] sm:$0xff] %v3275_v30  ;;  %v3273_v40 = vpop.f32.mrb[87].mxu1 }
 0xb0c   : > { %3278 = vst [vmem:[%s1000_s11 + $0x8] sm:$0xff] %v3276_v37 }
 0xb0d   : > { %4752 = shalt.err (!%p4749_p8)
}
 0xb0e   : > { %s4753_s6 = scalar_lea.hbm %s5892_s23, 256  ;;  %s4757_s27 = scalar_lea.hbm %s6088_s7, 512 }
 0xb0f   : > { %p4754_p1 = scmp.ne.s32.totalorder %s5892_s23, %s4753_s6  ;;  %p4758_p2 = scmp.lt.u32.totalorder %s5892_s23, %s6088_s7 }
 0xb10   : > { %p4759_p4 = scmp.lt.u32.totalorder %s4757_s27, %s4753_s6  ;;  %p4761_p0 = scmp.lt.u32.totalorder %s4753_s6, %s5892_s23 }
 0xb11   : > { %p4755_p3 = pnand %p4754_p1, %p6086_p13 }
 0xb12   : > { %p4760_p9 = por %p4759_p4, %p4758_p2 }
 0xb13   : > { %p4756_p6 = pneg %p4755_p3 }
 0xb14   : > { %p4762_p7 = por %p4761_p0, %p4760_p9 }
 0xb16   : > { %p4763_p5 = pnand %p4762_p7, %p4756_p6 }
 0xb18   : > { %4766 = shalt.err (!%p4763_p5)
}
 0xb19   : > { %3894 = dma.vmem_to_hbm [thread:$0]  (%p6086_p13), %s5894_s28, 256, %s5892_s23, %s3285_s9  }
 0xb1a PF: > { %s6089_s12 = sld [smem:[#allocation51_spill]]  ;;  %s6090_s13 = sld [smem:[#allocation56_spill]] }
 0xb1b   : > { %p6091_p11 = scmp.ne.s32.totalorder %s6055_s22, 0 }
 0xb20   : > { %s3329_s26 = sand.u32 1, %s6089_s12   ;;  %p6092_p10 = scmp.ge.s32.totalorder %s6090_s13, 2 }
 0xb21   : > { %s3330_s21 = scalar_lea.sflag [#allocation4], %s3329_s26 }
 0xb22   : > { %p3960_p12 = pnand %p6092_p10, %p6091_p11 }
 0xb24   : > { %4840 = dma.done.wait (!%p3960_p12), %s3330_s21, 256  }
 0xb25   : > { %4842 = vsyncadd (!%p3960_p12), %s3330_s21, 4294967040  ;;  %s3339_s25 = scalar_lea.sflag [#allocation36], %s3329_s26 }
 0xb26   : > { %4844 = dma.done.wait (!%p3960_p12), %s3339_s25, 256  }
 0xb27   : > { %4846 = vsyncadd (!%p3960_p12), %s3339_s25, 4294967040  ;;  %s53_s28 = sadd.s32 1, %s6090_s13   ;;  %s6093_s3 = sld [smem:[#allocation52_spill]] }
 0xb28   : > { %p50_p8 = scmp.ge.s32.totalorder %s53_s28, 4   ;;  %s6094_s25 = sld [smem:[#allocation53_spill]] }
 0xb29   : > { %s6095_s27 = sld [smem:[#allocation55_spill]]  ;;  %s6096_s23 = smov %s6101_s2 }
 0xb2a   : > { %s6098_s26 = smov %s5529_s20  ;;  %52 = sbr.rel (!%p50_p8) target bundleno = 38 (0x26), region = 247 }
 0xb2d   : > { %s6097_s2 = smov %s6093_s3  ;;  %s6099_s3 = smov %s6096_s23 }
 0xb31   :  { %3344 = vsyncpa [#allocation3], 1 }
 0xb32   :  { %3346 = vsyncpa [#allocation3 + $0x1], 1 }
 0xb33   :  { %3347 = vsyncpa [#allocation6], 1 }
 0xb34   :  { %3349 = vsyncpa [#allocation6 + $0x1], 1 }
 0xb35   :  { %3350 = vsyncpa [#allocation9], 1 }
 0xb36   :  { %3351 = vsyncpa [#allocation12], 1 }
 0xb37   :  { %3352 = vsyncpa [#allocation15], 1 }
 0xb38   :  { %3353 = vsyncpa [#allocation18], 1 }
 0xb39   :  { %3354 = vsyncpa [#allocation21], 1 }
 0xb3a   :  { %3355 = vsyncpa [#allocation24], 1 }
 0xb3b   :  { %3356 = vsyncpa [#allocation27], 1 }
 0xb3c   :  { %3357 = vsyncpa [#allocation30], 1 }
 0xb3d   :  { %3358 = vsyncpa [#allocation33], 1 }
 0xb3e   :  { %3359 = vsyncpa [#allocation4], 1 }
 0xb3f   :  { %3361 = vsyncpa [#allocation4 + $0x1], 1 }
 0xb40   :  { %3362 = vsyncpa [#allocation36], 1 }
 0xb41   :  { %3364 = vsyncpa [#allocation36 + $0x1], 1 }

</bundles_post_ra>
